<compile_context>
chip_gen: v7x
topology: tpu7x:2x2x1
jax: 0.10.0
libtpu: 0.0.40
codegen_flags: <defaults>
</compile_context>

<pallas_src>
import functools

import jax
import jax.numpy as jnp
from jax.experimental import pallas as pl
from jax.experimental.pallas import tpu as pltpu

LANE = 128
_EPS = 1e-5


def _round_up(c, m=LANE):
    return ((c + m - 1) // m) * m


@functools.lru_cache(maxsize=None)
def _vmem_limit_bytes():
    """Generation-dependent scoped-VMEM limit (~3/4 of physical, capped)."""
    try:
        cap = int(pltpu.get_tpu_info().vmem_capacity_bytes)
    except Exception:
        cap = 64 * 1024 * 1024          # conservative (v7x physical)
    return min(cap * 3 // 4, 100 * 1024 * 1024)


# ---------------------------------------------------------------------------
# Kernel 1: fused 3x3 conv (+ optional BN+ReLU applied to the *input* tile)
#           + per-image per-channel sum / sum-of-squares for BatchNorm stats.
# ---------------------------------------------------------------------------
def _conv3x3_kernel(x_ref, w_ref, scale_ref, shift_ref,       # inputs
                    y_ref, psum_ref, psq_ref,                  # outputs
                    xpad_ref,                                  # scratch (bf16)
                    *, H, W, fuse_input_bnrelu):
    cin = xpad_ref.shape[-1]
    cout = y_ref.shape[-1]

    x = x_ref[0]                                        # (H, W, Cin_p) bf16
    if fuse_input_bnrelu:
        # Previous layer's BatchNorm affine + ReLU fused into this read; the
        # halo is added AFTER the activation so padding matches Conv2d(pad=1)
        # applied to the activated feature map.  Single downcast of the tile.
        x = jnp.maximum(x.astype(jnp.float32) * scale_ref[...] + shift_ref[...],
                        0.0)
        x = x.astype(jnp.bfloat16)

    # Build the zero-halo tile in VMEM using only lane/sublane-aligned stores:
    # W-halo folded into the value via concatenate, H-halo written as zero
    # rows.  Every scratch element is rewritten each grid step.
    zcol = jnp.zeros((H, 1, cin), jnp.bfloat16)
    zrow = jnp.zeros((1, W + 2, cin), jnp.bfloat16)
    xpad_ref[0:1, :, :] = zrow
    xpad_ref[H + 1:H + 2, :, :] = zrow
    xpad_ref[1:H + 1, :, :] = jnp.concatenate([zcol, x, zcol], axis=1)

    # 3x3 conv as 9 shifted bf16 MXU dots with f32 accumulation.  dx (the
    # sublane-misaligned shift) is the outer loop so only 2 of 9 taps pay a
    # misaligned full-tile load; dy is a cheap leading-dim slice.
    acc = jnp.zeros((H * W, cout), jnp.float32)
    for dx in range(3):
        x_dx = xpad_ref[:, dx:dx + W, :]                # (H+2, W, Cin_p) bf16
        for dy in range(3):
            patch = x_dx[dy:dy + H].reshape(H * W, cin)
            acc = acc + jnp.dot(patch, w_ref[dy, dx],
                                preferred_element_type=jnp.float32)

    # Conv bias omitted: a per-channel pre-BN bias cancels exactly in BN.
    y_ref[...] = acc.reshape(1, H, W, cout).astype(y_ref.dtype)   # bf16 to HBM

    # Per-image partial reductions (from the f32 accumulator) feeding the
    # BatchNorm batch statistics; finalized in JAX glue -> grid stays parallel.
    psum_ref[...] = jnp.sum(acc, axis=0).reshape(1, 1, cout)
    psq_ref[...] = jnp.sum(acc * acc, axis=0).reshape(1, 1, cout)


def _conv3x3_bn_stats(x, w, in_scale, in_shift, *, fuse_input_bnrelu):
    N, H, W, cin_p = x.shape
    cout_p = w.shape[-1]

    kern = functools.partial(_conv3x3_kernel, H=H, W=W,
                             fuse_input_bnrelu=fuse_input_bnrelu)

    cost = pl.CostEstimate(
        flops=2 * N * H * W * 9 * cin_p * cout_p,
        transcendentals=0,
        bytes_accessed=(x.size * x.dtype.itemsize
                        + w.size * w.dtype.itemsize
                        + N * H * W * cout_p * 2          # bf16 output
                        + 2 * N * cout_p * 4
                        + (in_scale.size + in_shift.size) * 4))

    return pl.pallas_call(
        kern,
        out_shape=(jax.ShapeDtypeStruct((N, H, W, cout_p), jnp.bfloat16),
                   jax.ShapeDtypeStruct((N, 1, cout_p), jnp.float32),
                   jax.ShapeDtypeStruct((N, 1, cout_p), jnp.float32)),
        grid_spec=pltpu.PrefetchScalarGridSpec(
            num_scalar_prefetch=0,
            grid=(N,),
            in_specs=[
                pl.BlockSpec((1, H, W, cin_p), lambda n: (n, 0, 0, 0)),
                pl.BlockSpec((3, 3, cin_p, cout_p), lambda n: (0, 0, 0, 0)),
                pl.BlockSpec((1, cin_p), lambda n: (0, 0)),
                pl.BlockSpec((1, cin_p), lambda n: (0, 0)),
            ],
            out_specs=(
                pl.BlockSpec((1, H, W, cout_p), lambda n: (n, 0, 0, 0)),
                pl.BlockSpec((1, 1, cout_p), lambda n: (n, 0, 0)),
                pl.BlockSpec((1, 1, cout_p), lambda n: (n, 0, 0)),
            ),
            scratch_shapes=[pltpu.VMEM((H + 2, W + 2, cin_p), jnp.bfloat16)]),
        compiler_params=pltpu.CompilerParams(
            dimension_semantics=("parallel",),     # no resident accumulators
            vmem_limit_bytes=_vmem_limit_bytes()),
        cost_estimate=cost,
    )(x, w, in_scale, in_shift)


# ---------------------------------------------------------------------------
# Kernel 2: affine BatchNorm (precomputed scale/shift) + ReLU, bf16 in/out.
# Only used for the *final* conv output; conv1's BN+ReLU is fused into conv2.
# ---------------------------------------------------------------------------
def _bn_relu_kernel(y_ref, scale_ref, shift_ref, o_ref):
    y = y_ref[...].astype(jnp.float32)
    o_ref[...] = jnp.maximum(y * scale_ref[...] + shift_ref[...],
                             0.0).astype(o_ref.dtype)


def _bn_relu(y, scale, shift):
    N, H, W, c_p = y.shape
    return pl.pallas_call(
        _bn_relu_kernel,
        out_shape=jax.ShapeDtypeStruct((N, H, W, c_p), jnp.bfloat16),
        grid_spec=pltpu.PrefetchScalarGridSpec(
            num_scalar_prefetch=0,
            grid=(N,),
            in_specs=[pl.BlockSpec((1, H, W, c_p), lambda n: (n, 0, 0, 0)),
                      pl.BlockSpec((1, c_p), lambda n: (0, 0)),
                      pl.BlockSpec((1, c_p), lambda n: (0, 0))],
            out_specs=pl.BlockSpec((1, H, W, c_p), lambda n: (n, 0, 0, 0))),
        compiler_params=pltpu.CompilerParams(
            dimension_semantics=("parallel",),
            vmem_limit_bytes=_vmem_limit_bytes()),
    )(y, scale, shift)


# ---------------------------------------------------------------------------
# JAX glue: BN stat finalize, layout / padding, full forward
# ---------------------------------------------------------------------------
def _bn_affine(psum, psq, gamma_p, beta_p, m, eps=_EPS):
    s = jnp.sum(psum, axis=(0, 1))
    q = jnp.sum(psq, axis=(0, 1))
    mean = s / m
    # TODO(synk): E[y^2]-E[y]^2 can cancel catastrophically for very large M;
    # switch to a shifted / two-pass finalize for production UNet sizes.
    var = jnp.maximum(q / m - mean * mean, 0.0)       # biased var (BN train fwd)
    scale = gamma_p * jax.lax.rsqrt(var + eps)
    shift = beta_p - mean * scale
    return scale.reshape(1, -1), shift.reshape(1, -1)


@jax.jit
def double_conv_forward(x_nchw, params):
    n, cin, h, w = x_nchw.shape
    m = n * h * w
    cin_p = params["w1p"].shape[2]
    cout = params["g2"].shape[0]

    # NCHW -> NHWC, bf16 (MXU operand dtype), zero-pad channels to lane width.
    # TODO(synk): skip the 128-channel pad for tiny true Cin on the first conv.
    x = jnp.transpose(x_nchw, (0, 2, 3, 1)).astype(jnp.bfloat16)
    x = jnp.pad(x, ((0, 0), (0, 0), (0, 0), (0, cin_p - cin)))

    ones_c = jnp.ones((1, cin_p), jnp.float32)
    zeros_c = jnp.zeros((1, cin_p), jnp.float32)

    # conv1: raw pre-BN output (bf16) + per-image channel stats (f32).
    y1, s1, q1 = _conv3x3_bn_stats(x, params["w1p"], ones_c, zeros_c,
                                   fuse_input_bnrelu=False)
    sc1, sh1 = _bn_affine(s1, q1, params["g1p"], params["be1p"], m)

    # conv2: conv1's BN+ReLU is applied to the input tile inside the kernel.
    y2, s2, q2 = _conv3x3_bn_stats(y1, params["w2p"], sc1, sh1,
                                   fuse_input_bnrelu=True)
    sc2, sh2 = _bn_affine(s2, q2, params["g2p"], params["be2p"], m)

    a2 = _bn_relu(y2, sc2, sh2)                       # bf16, padded NHWC
    # Network-boundary depad / layout restore only (inside a full UNet keep
    # the lane-dense padded NHWC format between DoubleConv blocks instead).
    a2 = a2[..., :cout]
    return jnp.transpose(a2, (0, 3, 1, 2)).astype(jnp.float32)   # NHWC -> NCHW


# ---------------------------------------------------------------------------
# Parameter init (PyTorch layout + padded kernel layout)
# ---------------------------------------------------------------------------
def _prep_conv_params(tag, w_t, gamma, beta):
    cout, cin = w_t.shape[0], w_t.shape[1]
    cin_p, cout_p = _round_up(cin), _round_up(cout)
    # (cout,cin,kh,kw) -> (kh,kw,cin,cout), zero-pad channels, bf16 for MXU.
    wm = jnp.transpose(w_t, (2, 3, 1, 0))
    wm = jnp.pad(wm, ((0, 0), (0, 0), (0, cin_p - cin), (0, cout_p - cout)))
    return {
        f"w{tag}p": wm.astype(jnp.bfloat16),
        f"g{tag}p": jnp.pad(gamma, (0, cout_p - cout)).astype(jnp.float32),
        f"be{tag}p": jnp.pad(beta, (0, cout_p - cout)).astype(jnp.float32),
    }


def init_params(key, in_channels, out_channels, mid_channels=None):
    if mid_channels is None:
        mid_channels = out_channels
    ks = jax.random.split(key, 4)

    def conv_init(kw, kb, cin, cout):
        bound = 1.0 / jnp.sqrt(cin * 9.0)
        w_t = jax.random.uniform(kw, (cout, cin, 3, 3), jnp.float32, -bound, bound)
        b = jax.random.uniform(kb, (cout,), jnp.float32, -bound, bound)
        return w_t, b

    w1_t, b1 = conv_init(ks[0], ks[1], in_channels, mid_channels)
    w2_t, b2 = conv_init(ks[2], ks[3], mid_channels, out_channels)
    g1 = jnp.ones((mid_channels,), jnp.float32); be1 = jnp.zeros_like(g1)
    g2 = jnp.ones((out_channels,), jnp.float32); be2 = jnp.zeros_like(g2)

    # Raw params feed the reference; the conv bias is kept there only (it
    # cancels exactly in BatchNorm, so the kernel path drops it).
    params = {"w1_t": w1_t, "b1": b1, "g1": g1, "be1": be1,
              "w2_t": w2_t, "b2": b2, "g2": g2, "be2": be2}
    params.update(_prep_conv_params("1", w1_t, g1, be1))
    params.update(_prep_conv_params("2", w2_t, g2, be2))
    return params


# ---------------------------------------------------------------------------
# Pure-JAX reference (bf16 conv operands, f32 BN — mirrors the kernel policy)
# ---------------------------------------------------------------------------
def _ref_conv_bn_relu(x, w_t, b, gamma, beta, eps=_EPS):
    cout = w_t.shape[0]
    y = jax.lax.conv_general_dilated(
        x.astype(jnp.bfloat16), w_t.astype(jnp.bfloat16),
        window_strides=(1, 1), padding=((1, 1), (1, 1)),
        dimension_numbers=("NCHW", "OIHW", "NCHW"),
        preferred_element_type=jnp.float32) + b.reshape(1, cout, 1, 1)
    mean = jnp.mean(y, axis=(0, 2, 3), keepdims=True)
    var = jnp.mean((y - mean) ** 2, axis=(0, 2, 3), keepdims=True)
    yn = (y - mean) * jax.lax.rsqrt(var + eps)
    return jnp.maximum(yn * gamma.reshape(1, cout, 1, 1)
                       + beta.reshape(1, cout, 1, 1), 0.0)


def _ref_double_conv(x, p):
    h = _ref_conv_bn_relu(x, p["w1_t"], p["b1"], p["g1"], p["be1"])
    return _ref_conv_bn_relu(h, p["w2_t"], p["b2"], p["g2"], p["be2"])


if __name__ == "__main__":
    key = jax.random.PRNGKey(0)
    kx, kp = jax.random.split(key)

    N, C_IN, H, W = 2, 4, 16, 16
    C_OUT = 8

    x = jax.random.normal(kx, (N, C_IN, H, W), jnp.float32)
    params = init_params(kp, C_IN, C_OUT)

    out = jax.block_until_ready(double_conv_forward(x, params))
    assert out.shape == (N, C_OUT, H, W), out.shape

    ref = _ref_double_conv(x, params)
    max_err = float(jnp.max(jnp.abs(out - ref)))
    # bf16 intermediates / bf16 final store -> slightly looser tolerance.
    assert jnp.allclose(out, ref, atol=3e-2, rtol=3e-2), max_err

    print("KERNEL_OK")
</pallas_src>

<mosaic_0001>
module attributes {stable_mosaic.version = 11 : i64} {
  func.func @_conv3x3_kernel(%arg0: i32, %arg1: memref<1x16x16x128xbf16, #tpu.memory_space<vmem>>, %arg2: memref<3x3x128x128xbf16, #tpu.memory_space<vmem>>, %arg3: memref<1x128xf32, #tpu.memory_space<vmem>>, %arg4: memref<1x128xf32, #tpu.memory_space<vmem>>, %arg5: memref<1x16x16x128xbf16, #tpu.memory_space<vmem>>, %arg6: memref<1x1x128xf32, #tpu.memory_space<vmem>>, %arg7: memref<1x1x128xf32, #tpu.memory_space<vmem>>, %arg8: memref<18x18x128xbf16, #tpu.memory_space<vmem>>) attributes {dimension_semantics = [#tpu.dimension_semantics<parallel>], iteration_bounds = array<i64: 2>, scalar_prefetch = 0 : i64, scratch_operands = 1 : i64, tpu.core_type = #tpu.core_type<tc>, window_params = [{transform_indices = @transform_0, window_bounds = array<i64: 1, 16, 16, 128>}, {pipeline_mode = #tpu.pipeline_mode<synchronous>, transform_indices = @transform_1, window_bounds = array<i64: 3, 3, 128, 128>}, {pipeline_mode = #tpu.pipeline_mode<synchronous>, transform_indices = @transform_2, window_bounds = array<i64: 1, 128>}, {pipeline_mode = #tpu.pipeline_mode<synchronous>, transform_indices = @transform_3, window_bounds = array<i64: 1, 128>}, {transform_indices = @transform_4, window_bounds = array<i64: 1, 16, 16, 128>}, {transform_indices = @transform_5, window_bounds = array<i64: 1, 1, 128>}, {transform_indices = @transform_6, window_bounds = array<i64: 1, 1, 128>}]} {
    %c0 = arith.constant 0 : index
    %c0_0 = arith.constant 0 : index
    %c0_1 = arith.constant 0 : index
    %c0_2 = arith.constant 0 : index
    %0 = vector.load %arg1[%c0, %c0_0, %c0_1, %c0_2] : memref<1x16x16x128xbf16, #tpu.memory_space<vmem>>, vector<1x16x16x128xbf16>
    %1 = vector.shape_cast %0 : vector<1x16x16x128xbf16> to vector<16x16x128xbf16>
    %2 = arith.extf %1 : vector<16x16x128xbf16> to vector<16x16x128xf32>
    %c0_3 = arith.constant 0 : index
    %c0_4 = arith.constant 0 : index
    %3 = vector.load %arg3[%c0_3, %c0_4] : memref<1x128xf32, #tpu.memory_space<vmem>>, vector<1x128xf32>
    %4 = vector.shape_cast %3 : vector<1x128xf32> to vector<1x1x128xf32>
    %5 = vector.broadcast %4 : vector<1x1x128xf32> to vector<16x16x128xf32>
    %6 = arith.mulf %2, %5 : vector<16x16x128xf32>
    %c0_5 = arith.constant 0 : index
    %c0_6 = arith.constant 0 : index
    %7 = vector.load %arg4[%c0_5, %c0_6] : memref<1x128xf32, #tpu.memory_space<vmem>>, vector<1x128xf32>
    %8 = vector.shape_cast %7 : vector<1x128xf32> to vector<1x1x128xf32>
    %9 = vector.broadcast %8 : vector<1x1x128xf32> to vector<16x16x128xf32>
    %10 = arith.addf %6, %9 : vector<16x16x128xf32>
    %cst = arith.constant 0.000000e+00 : f32
    %11 = vector.broadcast %cst : f32 to vector<16x16x128xf32>
    %12 = arith.maximumf %10, %11 : vector<16x16x128xf32>
    %13 = arith.truncf %12 : vector<16x16x128xf32> to vector<16x16x128xbf16>
    %cst_7 = arith.constant 0.000000e+00 : bf16
    %14 = vector.broadcast %cst_7 : bf16 to vector<16x1x128xbf16>
    %cst_8 = arith.constant 0.000000e+00 : bf16
    %15 = vector.broadcast %cst_8 : bf16 to vector<1x18x128xbf16>
    %c0_9 = arith.constant 0 : index
    %c0_10 = arith.constant 0 : index
    %c0_11 = arith.constant 0 : index
    %16 = vector.load %arg8[%c0_9, %c0_10, %c0_11] : memref<18x18x128xbf16, #tpu.memory_space<vmem>>, vector<1x18x128xbf16>
    tpu.vector_store %arg8[%c0_9, %c0_10, %c0_11], %15 {strides = array<i32>} : memref<18x18x128xbf16, #tpu.memory_space<vmem>>, vector<1x18x128xbf16>,
    %c17 = arith.constant 17 : index
    %c0_12 = arith.constant 0 : index
    %c0_13 = arith.constant 0 : index
    %17 = vector.load %arg8[%c17, %c0_12, %c0_13] : memref<18x18x128xbf16, #tpu.memory_space<vmem>>, vector<1x18x128xbf16>
    tpu.vector_store %arg8[%c17, %c0_12, %c0_13], %15 {strides = array<i32>} : memref<18x18x128xbf16, #tpu.memory_space<vmem>>, vector<1x18x128xbf16>,
    %18 = tpu.concatenate %14, %13, %14 in 1 : vector<16x1x128xbf16>, vector<16x16x128xbf16>, vector<16x1x128xbf16> -> vector<16x18x128xbf16>
    %c1 = arith.constant 1 : index
    %c0_14 = arith.constant 0 : index
    %c0_15 = arith.constant 0 : index
    %19 = vector.load %arg8[%c1, %c0_14, %c0_15] : memref<18x18x128xbf16, #tpu.memory_space<vmem>>, vector<16x18x128xbf16>
    tpu.vector_store %arg8[%c1, %c0_14, %c0_15], %18 {strides = array<i32>} : memref<18x18x128xbf16, #tpu.memory_space<vmem>>, vector<16x18x128xbf16>,
    %cst_16 = arith.constant 0.000000e+00 : f32
    %20 = vector.broadcast %cst_16 : f32 to vector<256x128xf32>
    %c0_17 = arith.constant 0 : index
    %c0_18 = arith.constant 0 : index
    %c0_19 = arith.constant 0 : index
    %21 = vector.load %arg8[%c0_17, %c0_18, %c0_19] : memref<18x18x128xbf16, #tpu.memory_space<vmem>>, vector<18x16x128xbf16>
    %22 = vector.extract_strided_slice %21 {offsets = [0, 0, 0], sizes = [16, 16, 128], strides = [1, 1, 1]} : vector<18x16x128xbf16> to vector<16x16x128xbf16>
    %23 = vector.shape_cast %22 : vector<16x16x128xbf16> to vector<256x128xbf16>
    %c0_20 = arith.constant 0 : index
    %c0_21 = arith.constant 0 : index
    %c0_22 = arith.constant 0 : index
    %c0_23 = arith.constant 0 : index
    %24 = vector.load %arg2[%c0_20, %c0_21, %c0_22, %c0_23] : memref<3x3x128x128xbf16, #tpu.memory_space<vmem>>, vector<1x1x128x128xbf16>
    %25 = vector.shape_cast %24 : vector<1x1x128x128xbf16> to vector<128x128xbf16>
    %cst_24 = arith.constant dense<0.000000e+00> : vector<256x128xf32>
    %26 = tpu.matmul %23, %25, %cst_24 {dimension_numbers = #tpu.dot_dimension_numbers<[1], [0], [0], [1], [0, 0, 1, 1], [], []>} : vector<256x128xbf16>, vector<128x128xbf16>, vector<256x128xf32> -> vector<256x128xf32>
    %27 = arith.addf %20, %26 : vector<256x128xf32>
    %28 = vector.extract_strided_slice %21 {offsets = [1, 0, 0], sizes = [16, 16, 128], strides = [1, 1, 1]} : vector<18x16x128xbf16> to vector<16x16x128xbf16>
    %29 = vector.shape_cast %28 : vector<16x16x128xbf16> to vector<256x128xbf16>
    %c1_25 = arith.constant 1 : index
    %c0_26 = arith.constant 0 : index
    %c0_27 = arith.constant 0 : index
    %c0_28 = arith.constant 0 : index
    %30 = vector.load %arg2[%c1_25, %c0_26, %c0_27, %c0_28] : memref<3x3x128x128xbf16, #tpu.memory_space<vmem>>, vector<1x1x128x128xbf16>
    %31 = vector.shape_cast %30 : vector<1x1x128x128xbf16> to vector<128x128xbf16>
    %cst_29 = arith.constant dense<0.000000e+00> : vector<256x128xf32>
    %32 = tpu.matmul %29, %31, %cst_29 {dimension_numbers = #tpu.dot_dimension_numbers<[1], [0], [0], [1], [0, 0, 1, 1], [], []>} : vector<256x128xbf16>, vector<128x128xbf16>, vector<256x128xf32> -> vector<256x128xf32>
    %33 = arith.addf %27, %32 : vector<256x128xf32>
    %34 = vector.extract_strided_slice %21 {offsets = [2, 0, 0], sizes = [16, 16, 128], strides = [1, 1, 1]} : vector<18x16x128xbf16> to vector<16x16x128xbf16>
    %35 = vector.shape_cast %34 : vector<16x16x128xbf16> to vector<256x128xbf16>
    %c2 = arith.constant 2 : index
    %c0_30 = arith.constant 0 : index
    %c0_31 = arith.constant 0 : index
    %c0_32 = arith.constant 0 : index
    %36 = vector.load %arg2[%c2, %c0_30, %c0_31, %c0_32] : memref<3x3x128x128xbf16, #tpu.memory_space<vmem>>, vector<1x1x128x128xbf16>
    %37 = vector.shape_cast %36 : vector<1x1x128x128xbf16> to vector<128x128xbf16>
    %cst_33 = arith.constant dense<0.000000e+00> : vector<256x128xf32>
    %38 = tpu.matmul %35, %37, %cst_33 {dimension_numbers = #tpu.dot_dimension_numbers<[1], [0], [0], [1], [0, 0, 1, 1], [], []>} : vector<256x128xbf16>, vector<128x128xbf16>, vector<256x128xf32> -> vector<256x128xf32>
    %39 = arith.addf %33, %38 : vector<256x128xf32>
    %c0_34 = arith.constant 0 : index
    %c1_35 = arith.constant 1 : index
    %c0_36 = arith.constant 0 : index
    %40 = vector.load %arg8[%c0_34, %c1_35, %c0_36] : memref<18x18x128xbf16, #tpu.memory_space<vmem>>, vector<18x16x128xbf16>
    %41 = vector.extract_strided_slice %40 {offsets = [0, 0, 0], sizes = [16, 16, 128], strides = [1, 1, 1]} : vector<18x16x128xbf16> to vector<16x16x128xbf16>
    %42 = vector.shape_cast %41 : vector<16x16x128xbf16> to vector<256x128xbf16>
    %c0_37 = arith.constant 0 : index
    %c1_38 = arith.constant 1 : index
    %c0_39 = arith.constant 0 : index
    %c0_40 = arith.constant 0 : index
    %43 = vector.load %arg2[%c0_37, %c1_38, %c0_39, %c0_40] : memref<3x3x128x128xbf16, #tpu.memory_space<vmem>>, vector<1x1x128x128xbf16>
    %44 = vector.shape_cast %43 : vector<1x1x128x128xbf16> to vector<128x128xbf16>
    %cst_41 = arith.constant dense<0.000000e+00> : vector<256x128xf32>
    %45 = tpu.matmul %42, %44, %cst_41 {dimension_numbers = #tpu.dot_dimension_numbers<[1], [0], [0], [1], [0, 0, 1, 1], [], []>} : vector<256x128xbf16>, vector<128x128xbf16>, vector<256x128xf32> -> vector<256x128xf32>
    %46 = arith.addf %39, %45 : vector<256x128xf32>
    %47 = vector.extract_strided_slice %40 {offsets = [1, 0, 0], sizes = [16, 16, 128], strides = [1, 1, 1]} : vector<18x16x128xbf16> to vector<16x16x128xbf16>
    %48 = vector.shape_cast %47 : vector<16x16x128xbf16> to vector<256x128xbf16>
    %c1_42 = arith.constant 1 : index
    %c1_43 = arith.constant 1 : index
    %c0_44 = arith.constant 0 : index
    %c0_45 = arith.constant 0 : index
    %49 = vector.load %arg2[%c1_42, %c1_43, %c0_44, %c0_45] : memref<3x3x128x128xbf16, #tpu.memory_space<vmem>>, vector<1x1x128x128xbf16>
    %50 = vector.shape_cast %49 : vector<1x1x128x128xbf16> to vector<128x128xbf16>
    %cst_46 = arith.constant dense<0.000000e+00> : vector<256x128xf32>
    %51 = tpu.matmul %48, %50, %cst_46 {dimension_numbers = #tpu.dot_dimension_numbers<[1], [0], [0], [1], [0, 0, 1, 1], [], []>} : vector<256x128xbf16>, vector<128x128xbf16>, vector<256x128xf32> -> vector<256x128xf32>
    %52 = arith.addf %46, %51 : vector<256x128xf32>
    %53 = vector.extract_strided_slice %40 {offsets = [2, 0, 0], sizes = [16, 16, 128], strides = [1, 1, 1]} : vector<18x16x128xbf16> to vector<16x16x128xbf16>
    %54 = vector.shape_cast %53 : vector<16x16x128xbf16> to vector<256x128xbf16>
    %c2_47 = arith.constant 2 : index
    %c1_48 = arith.constant 1 : index
    %c0_49 = arith.constant 0 : index
    %c0_50 = arith.constant 0 : index
    %55 = vector.load %arg2[%c2_47, %c1_48, %c0_49, %c0_50] : memref<3x3x128x128xbf16, #tpu.memory_space<vmem>>, vector<1x1x128x128xbf16>
    %56 = vector.shape_cast %55 : vector<1x1x128x128xbf16> to vector<128x128xbf16>
    %cst_51 = arith.constant dense<0.000000e+00> : vector<256x128xf32>
    %57 = tpu.matmul %54, %56, %cst_51 {dimension_numbers = #tpu.dot_dimension_numbers<[1], [0], [0], [1], [0, 0, 1, 1], [], []>} : vector<256x128xbf16>, vector<128x128xbf16>, vector<256x128xf32> -> vector<256x128xf32>
    %58 = arith.addf %52, %57 : vector<256x128xf32>
    %c0_52 = arith.constant 0 : index
    %c2_53 = arith.constant 2 : index
    %c0_54 = arith.constant 0 : index
    %59 = vector.load %arg8[%c0_52, %c2_53, %c0_54] : memref<18x18x128xbf16, #tpu.memory_space<vmem>>, vector<18x16x128xbf16>
    %60 = vector.extract_strided_slice %59 {offsets = [0, 0, 0], sizes = [16, 16, 128], strides = [1, 1, 1]} : vector<18x16x128xbf16> to vector<16x16x128xbf16>
    %61 = vector.shape_cast %60 : vector<16x16x128xbf16> to vector<256x128xbf16>
    %c0_55 = arith.constant 0 : index
    %c2_56 = arith.constant 2 : index
    %c0_57 = arith.constant 0 : index
    %c0_58 = arith.constant 0 : index
    %62 = vector.load %arg2[%c0_55, %c2_56, %c0_57, %c0_58] : memref<3x3x128x128xbf16, #tpu.memory_space<vmem>>, vector<1x1x128x128xbf16>
    %63 = vector.shape_cast %62 : vector<1x1x128x128xbf16> to vector<128x128xbf16>
    %cst_59 = arith.constant dense<0.000000e+00> : vector<256x128xf32>
    %64 = tpu.matmul %61, %63, %cst_59 {dimension_numbers = #tpu.dot_dimension_numbers<[1], [0], [0], [1], [0, 0, 1, 1], [], []>} : vector<256x128xbf16>, vector<128x128xbf16>, vector<256x128xf32> -> vector<256x128xf32>
    %65 = arith.addf %58, %64 : vector<256x128xf32>
    %66 = vector.extract_strided_slice %59 {offsets = [1, 0, 0], sizes = [16, 16, 128], strides = [1, 1, 1]} : vector<18x16x128xbf16> to vector<16x16x128xbf16>
    %67 = vector.shape_cast %66 : vector<16x16x128xbf16> to vector<256x128xbf16>
    %c1_60 = arith.constant 1 : index
    %c2_61 = arith.constant 2 : index
    %c0_62 = arith.constant 0 : index
    %c0_63 = arith.constant 0 : index
    %68 = vector.load %arg2[%c1_60, %c2_61, %c0_62, %c0_63] : memref<3x3x128x128xbf16, #tpu.memory_space<vmem>>, vector<1x1x128x128xbf16>
    %69 = vector.shape_cast %68 : vector<1x1x128x128xbf16> to vector<128x128xbf16>
    %cst_64 = arith.constant dense<0.000000e+00> : vector<256x128xf32>
    %70 = tpu.matmul %67, %69, %cst_64 {dimension_numbers = #tpu.dot_dimension_numbers<[1], [0], [0], [1], [0, 0, 1, 1], [], []>} : vector<256x128xbf16>, vector<128x128xbf16>, vector<256x128xf32> -> vector<256x128xf32>
    %71 = arith.addf %65, %70 : vector<256x128xf32>
    %72 = vector.extract_strided_slice %59 {offsets = [2, 0, 0], sizes = [16, 16, 128], strides = [1, 1, 1]} : vector<18x16x128xbf16> to vector<16x16x128xbf16>
    %73 = vector.shape_cast %72 : vector<16x16x128xbf16> to vector<256x128xbf16>
    %c2_65 = arith.constant 2 : index
    %c2_66 = arith.constant 2 : index
    %c0_67 = arith.constant 0 : index
    %c0_68 = arith.constant 0 : index
    %74 = vector.load %arg2[%c2_65, %c2_66, %c0_67, %c0_68] : memref<3x3x128x128xbf16, #tpu.memory_space<vmem>>, vector<1x1x128x128xbf16>
    %75 = vector.shape_cast %74 : vector<1x1x128x128xbf16> to vector<128x128xbf16>
    %cst_69 = arith.constant dense<0.000000e+00> : vector<256x128xf32>
    %76 = tpu.matmul %73, %75, %cst_69 {dimension_numbers = #tpu.dot_dimension_numbers<[1], [0], [0], [1], [0, 0, 1, 1], [], []>} : vector<256x128xbf16>, vector<128x128xbf16>, vector<256x128xf32> -> vector<256x128xf32>
    %77 = arith.addf %71, %76 : vector<256x128xf32>
    %78 = vector.shape_cast %77 : vector<256x128xf32> to vector<1x16x16x128xf32>
    %79 = arith.truncf %78 : vector<1x16x16x128xf32> to vector<1x16x16x128xbf16>
    %c0_70 = arith.constant 0 : index
    %c0_71 = arith.constant 0 : index
    %c0_72 = arith.constant 0 : index
    %c0_73 = arith.constant 0 : index
    %80 = vector.load %arg5[%c0_70, %c0_71, %c0_72, %c0_73] : memref<1x16x16x128xbf16, #tpu.memory_space<vmem>>, vector<1x16x16x128xbf16>
    tpu.vector_store %arg5[%c0_70, %c0_71, %c0_72, %c0_73], %79 {strides = array<i32>} : memref<1x16x16x128xbf16, #tpu.memory_space<vmem>>, vector<1x16x16x128xbf16>,
    %cst_74 = arith.constant dense<0.000000e+00> : vector<128xf32>
    %81 = vector.multi_reduction <add>, %77, %cst_74 [0] : vector<256x128xf32> to vector<128xf32>
    %82 = vector.shape_cast %81 : vector<128xf32> to vector<1x1x128xf32>
    %c0_75 = arith.constant 0 : index
    %c0_76 = arith.constant 0 : index
    %c0_77 = arith.constant 0 : index
    %83 = vector.load %arg6[%c0_75, %c0_76, %c0_77] : memref<1x1x128xf32, #tpu.memory_space<vmem>>, vector<1x1x128xf32>
    tpu.vector_store %arg6[%c0_75, %c0_76, %c0_77], %82 {strides = array<i32>} : memref<1x1x128xf32, #tpu.memory_space<vmem>>, vector<1x1x128xf32>,
    %84 = arith.mulf %77, %77 : vector<256x128xf32>
    %cst_78 = arith.constant dense<0.000000e+00> : vector<128xf32>
    %85 = vector.multi_reduction <add>, %84, %cst_78 [0] : vector<256x128xf32> to vector<128xf32>
    %86 = vector.shape_cast %85 : vector<128xf32> to vector<1x1x128xf32>
    %c0_79 = arith.constant 0 : index
    %c0_80 = arith.constant 0 : index
    %c0_81 = arith.constant 0 : index
    %87 = vector.load %arg7[%c0_79, %c0_80, %c0_81] : memref<1x1x128xf32, #tpu.memory_space<vmem>>, vector<1x1x128xf32>
    tpu.vector_store %arg7[%c0_79, %c0_80, %c0_81], %86 {strides = array<i32>} : memref<1x1x128xf32, #tpu.memory_space<vmem>>, vector<1x1x128xf32>,
    return
  }
  func.func @transform_0(%arg0: i32) -> (i32, i32, i32, i32) {
    %c0_i32 = arith.constant 0 : i32
    %c0_i32_0 = arith.constant 0 : i32
    %c0_i32_1 = arith.constant 0 : i32
    %c0_i32_2 = arith.constant 0 : i32
    return %arg0, %c0_i32, %c0_i32_0, %c0_i32_1 : i32, i32, i32, i32
  }
  func.func @transform_1(%arg0: i32) -> (i32, i32, i32, i32) {
    %c0_i32 = arith.constant 0 : i32
    %c0_i32_0 = arith.constant 0 : i32
    %c0_i32_1 = arith.constant 0 : i32
    %c0_i32_2 = arith.constant 0 : i32
    %c0_i32_3 = arith.constant 0 : i32
    return %c0_i32, %c0_i32_0, %c0_i32_1, %c0_i32_2 : i32, i32, i32, i32
  }
  func.func @transform_2(%arg0: i32) -> (i32, i32) {
    %c0_i32 = arith.constant 0 : i32
    %c0_i32_0 = arith.constant 0 : i32
    %c0_i32_1 = arith.constant 0 : i32
    return %c0_i32, %c0_i32_0 : i32, i32
  }
  func.func @transform_3(%arg0: i32) -> (i32, i32) {
    %c0_i32 = arith.constant 0 : i32
    %c0_i32_0 = arith.constant 0 : i32
    %c0_i32_1 = arith.constant 0 : i32
    return %c0_i32, %c0_i32_0 : i32, i32
  }
  func.func @transform_4(%arg0: i32) -> (i32, i32, i32, i32) {
    %c0_i32 = arith.constant 0 : i32
    %c0_i32_0 = arith.constant 0 : i32
    %c0_i32_1 = arith.constant 0 : i32
    %c0_i32_2 = arith.constant 0 : i32
    return %arg0, %c0_i32, %c0_i32_0, %c0_i32_1 : i32, i32, i32, i32
  }
  func.func @transform_5(%arg0: i32) -> (i32, i32, i32) {
    %c0_i32 = arith.constant 0 : i32
    %c0_i32_0 = arith.constant 0 : i32
    %c0_i32_1 = arith.constant 0 : i32
    return %arg0, %c0_i32, %c0_i32_0 : i32, i32, i32
  }
  func.func @transform_6(%arg0: i32) -> (i32, i32, i32) {
    %c0_i32 = arith.constant 0 : i32
    %c0_i32_0 = arith.constant 0 : i32
    %c0_i32_1 = arith.constant 0 : i32
    return %arg0, %c0_i32, %c0_i32_0 : i32, i32, i32
  }
}

module attributes {stable_mosaic.version = 11 : i64} {
  func.func @_conv3x3_kernel(%arg0: i32, %arg1: memref<1x16x16x128xbf16, #tpu.memory_space<vmem>>, %arg2: memref<3x3x128x128xbf16, #tpu.memory_space<vmem>>, %arg3: memref<1x128xf32, #tpu.memory_space<vmem>>, %arg4: memref<1x128xf32, #tpu.memory_space<vmem>>, %arg5: memref<1x16x16x128xbf16, #tpu.memory_space<vmem>>, %arg6: memref<1x1x128xf32, #tpu.memory_space<vmem>>, %arg7: memref<1x1x128xf32, #tpu.memory_space<vmem>>, %arg8: memref<18x18x128xbf16, #tpu.memory_space<vmem>>) attributes {dimension_semantics = [#tpu.dimension_semantics<parallel>], iteration_bounds = array<i64: 2>, scalar_prefetch = 0 : i64, scratch_operands = 1 : i64, tpu.core_type = #tpu.core_type<tc>, window_params = [{transform_indices = @transform_0, window_bounds = array<i64: 1, 16, 16, 128>}, {pipeline_mode = #tpu.pipeline_mode<synchronous>, transform_indices = @transform_1, window_bounds = array<i64: 3, 3, 128, 128>}, {pipeline_mode = #tpu.pipeline_mode<synchronous>, transform_indices = @transform_2, window_bounds = array<i64: 1, 128>}, {pipeline_mode = #tpu.pipeline_mode<synchronous>, transform_indices = @transform_3, window_bounds = array<i64: 1, 128>}, {transform_indices = @transform_4, window_bounds = array<i64: 1, 16, 16, 128>}, {transform_indices = @transform_5, window_bounds = array<i64: 1, 1, 128>}, {transform_indices = @transform_6, window_bounds = array<i64: 1, 1, 128>}]} {
    %c0 = arith.constant 0 : index
    %c0_0 = arith.constant 0 : index
    %c0_1 = arith.constant 0 : index
    %c0_2 = arith.constant 0 : index
    %0 = vector.load %arg1[%c0, %c0_0, %c0_1, %c0_2] : memref<1x16x16x128xbf16, #tpu.memory_space<vmem>>, vector<1x16x16x128xbf16>
    %1 = vector.shape_cast %0 : vector<1x16x16x128xbf16> to vector<16x16x128xbf16>
    %cst = arith.constant 0.000000e+00 : bf16
    %2 = vector.broadcast %cst : bf16 to vector<16x1x128xbf16>
    %cst_3 = arith.constant 0.000000e+00 : bf16
    %3 = vector.broadcast %cst_3 : bf16 to vector<1x18x128xbf16>
    %c0_4 = arith.constant 0 : index
    %c0_5 = arith.constant 0 : index
    %c0_6 = arith.constant 0 : index
    %4 = vector.load %arg8[%c0_4, %c0_5, %c0_6] : memref<18x18x128xbf16, #tpu.memory_space<vmem>>, vector<1x18x128xbf16>
    tpu.vector_store %arg8[%c0_4, %c0_5, %c0_6], %3 {strides = array<i32>} : memref<18x18x128xbf16, #tpu.memory_space<vmem>>, vector<1x18x128xbf16>,
    %c17 = arith.constant 17 : index
    %c0_7 = arith.constant 0 : index
    %c0_8 = arith.constant 0 : index
    %5 = vector.load %arg8[%c17, %c0_7, %c0_8] : memref<18x18x128xbf16, #tpu.memory_space<vmem>>, vector<1x18x128xbf16>
    tpu.vector_store %arg8[%c17, %c0_7, %c0_8], %3 {strides = array<i32>} : memref<18x18x128xbf16, #tpu.memory_space<vmem>>, vector<1x18x128xbf16>,
    %6 = tpu.concatenate %2, %1, %2 in 1 : vector<16x1x128xbf16>, vector<16x16x128xbf16>, vector<16x1x128xbf16> -> vector<16x18x128xbf16>
    %c1 = arith.constant 1 : index
    %c0_9 = arith.constant 0 : index
    %c0_10 = arith.constant 0 : index
    %7 = vector.load %arg8[%c1, %c0_9, %c0_10] : memref<18x18x128xbf16, #tpu.memory_space<vmem>>, vector<16x18x128xbf16>
    tpu.vector_store %arg8[%c1, %c0_9, %c0_10], %6 {strides = array<i32>} : memref<18x18x128xbf16, #tpu.memory_space<vmem>>, vector<16x18x128xbf16>,
    %cst_11 = arith.constant 0.000000e+00 : f32
    %8 = vector.broadcast %cst_11 : f32 to vector<256x128xf32>
    %c0_12 = arith.constant 0 : index
    %c0_13 = arith.constant 0 : index
    %c0_14 = arith.constant 0 : index
    %9 = vector.load %arg8[%c0_12, %c0_13, %c0_14] : memref<18x18x128xbf16, #tpu.memory_space<vmem>>, vector<18x16x128xbf16>
    %10 = vector.extract_strided_slice %9 {offsets = [0, 0, 0], sizes = [16, 16, 128], strides = [1, 1, 1]} : vector<18x16x128xbf16> to vector<16x16x128xbf16>
    %11 = vector.shape_cast %10 : vector<16x16x128xbf16> to vector<256x128xbf16>
    %c0_15 = arith.constant 0 : index
    %c0_16 = arith.constant 0 : index
    %c0_17 = arith.constant 0 : index
    %c0_18 = arith.constant 0 : index
    %12 = vector.load %arg2[%c0_15, %c0_16, %c0_17, %c0_18] : memref<3x3x128x128xbf16, #tpu.memory_space<vmem>>, vector<1x1x128x128xbf16>
    %13 = vector.shape_cast %12 : vector<1x1x128x128xbf16> to vector<128x128xbf16>
    %cst_19 = arith.constant dense<0.000000e+00> : vector<256x128xf32>
    %14 = tpu.matmul %11, %13, %cst_19 {dimension_numbers = #tpu.dot_dimension_numbers<[1], [0], [0], [1], [0, 0, 1, 1], [], []>} : vector<256x128xbf16>, vector<128x128xbf16>, vector<256x128xf32> -> vector<256x128xf32>
    %15 = arith.addf %8, %14 : vector<256x128xf32>
    %16 = vector.extract_strided_slice %9 {offsets = [1, 0, 0], sizes = [16, 16, 128], strides = [1, 1, 1]} : vector<18x16x128xbf16> to vector<16x16x128xbf16>
    %17 = vector.shape_cast %16 : vector<16x16x128xbf16> to vector<256x128xbf16>
    %c1_20 = arith.constant 1 : index
    %c0_21 = arith.constant 0 : index
    %c0_22 = arith.constant 0 : index
    %c0_23 = arith.constant 0 : index
    %18 = vector.load %arg2[%c1_20, %c0_21, %c0_22, %c0_23] : memref<3x3x128x128xbf16, #tpu.memory_space<vmem>>, vector<1x1x128x128xbf16>
    %19 = vector.shape_cast %18 : vector<1x1x128x128xbf16> to vector<128x128xbf16>
    %cst_24 = arith.constant dense<0.000000e+00> : vector<256x128xf32>
    %20 = tpu.matmul %17, %19, %cst_24 {dimension_numbers = #tpu.dot_dimension_numbers<[1], [0], [0], [1], [0, 0, 1, 1], [], []>} : vector<256x128xbf16>, vector<128x128xbf16>, vector<256x128xf32> -> vector<256x128xf32>
    %21 = arith.addf %15, %20 : vector<256x128xf32>
    %22 = vector.extract_strided_slice %9 {offsets = [2, 0, 0], sizes = [16, 16, 128], strides = [1, 1, 1]} : vector<18x16x128xbf16> to vector<16x16x128xbf16>
    %23 = vector.shape_cast %22 : vector<16x16x128xbf16> to vector<256x128xbf16>
    %c2 = arith.constant 2 : index
    %c0_25 = arith.constant 0 : index
    %c0_26 = arith.constant 0 : index
    %c0_27 = arith.constant 0 : index
    %24 = vector.load %arg2[%c2, %c0_25, %c0_26, %c0_27] : memref<3x3x128x128xbf16, #tpu.memory_space<vmem>>, vector<1x1x128x128xbf16>
    %25 = vector.shape_cast %24 : vector<1x1x128x128xbf16> to vector<128x128xbf16>
    %cst_28 = arith.constant dense<0.000000e+00> : vector<256x128xf32>
    %26 = tpu.matmul %23, %25, %cst_28 {dimension_numbers = #tpu.dot_dimension_numbers<[1], [0], [0], [1], [0, 0, 1, 1], [], []>} : vector<256x128xbf16>, vector<128x128xbf16>, vector<256x128xf32> -> vector<256x128xf32>
    %27 = arith.addf %21, %26 : vector<256x128xf32>
    %c0_29 = arith.constant 0 : index
    %c1_30 = arith.constant 1 : index
    %c0_31 = arith.constant 0 : index
    %28 = vector.load %arg8[%c0_29, %c1_30, %c0_31] : memref<18x18x128xbf16, #tpu.memory_space<vmem>>, vector<18x16x128xbf16>
    %29 = vector.extract_strided_slice %28 {offsets = [0, 0, 0], sizes = [16, 16, 128], strides = [1, 1, 1]} : vector<18x16x128xbf16> to vector<16x16x128xbf16>
    %30 = vector.shape_cast %29 : vector<16x16x128xbf16> to vector<256x128xbf16>
    %c0_32 = arith.constant 0 : index
    %c1_33 = arith.constant 1 : index
    %c0_34 = arith.constant 0 : index
    %c0_35 = arith.constant 0 : index
    %31 = vector.load %arg2[%c0_32, %c1_33, %c0_34, %c0_35] : memref<3x3x128x128xbf16, #tpu.memory_space<vmem>>, vector<1x1x128x128xbf16>
    %32 = vector.shape_cast %31 : vector<1x1x128x128xbf16> to vector<128x128xbf16>
    %cst_36 = arith.constant dense<0.000000e+00> : vector<256x128xf32>
    %33 = tpu.matmul %30, %32, %cst_36 {dimension_numbers = #tpu.dot_dimension_numbers<[1], [0], [0], [1], [0, 0, 1, 1], [], []>} : vector<256x128xbf16>, vector<128x128xbf16>, vector<256x128xf32> -> vector<256x128xf32>
    %34 = arith.addf %27, %33 : vector<256x128xf32>
    %35 = vector.extract_strided_slice %28 {offsets = [1, 0, 0], sizes = [16, 16, 128], strides = [1, 1, 1]} : vector<18x16x128xbf16> to vector<16x16x128xbf16>
    %36 = vector.shape_cast %35 : vector<16x16x128xbf16> to vector<256x128xbf16>
    %c1_37 = arith.constant 1 : index
    %c1_38 = arith.constant 1 : index
    %c0_39 = arith.constant 0 : index
    %c0_40 = arith.constant 0 : index
    %37 = vector.load %arg2[%c1_37, %c1_38, %c0_39, %c0_40] : memref<3x3x128x128xbf16, #tpu.memory_space<vmem>>, vector<1x1x128x128xbf16>
    %38 = vector.shape_cast %37 : vector<1x1x128x128xbf16> to vector<128x128xbf16>
    %cst_41 = arith.constant dense<0.000000e+00> : vector<256x128xf32>
    %39 = tpu.matmul %36, %38, %cst_41 {dimension_numbers = #tpu.dot_dimension_numbers<[1], [0], [0], [1], [0, 0, 1, 1], [], []>} : vector<256x128xbf16>, vector<128x128xbf16>, vector<256x128xf32> -> vector<256x128xf32>
    %40 = arith.addf %34, %39 : vector<256x128xf32>
    %41 = vector.extract_strided_slice %28 {offsets = [2, 0, 0], sizes = [16, 16, 128], strides = [1, 1, 1]} : vector<18x16x128xbf16> to vector<16x16x128xbf16>
    %42 = vector.shape_cast %41 : vector<16x16x128xbf16> to vector<256x128xbf16>
    %c2_42 = arith.constant 2 : index
    %c1_43 = arith.constant 1 : index
    %c0_44 = arith.constant 0 : index
    %c0_45 = arith.constant 0 : index
    %43 = vector.load %arg2[%c2_42, %c1_43, %c0_44, %c0_45] : memref<3x3x128x128xbf16, #tpu.memory_space<vmem>>, vector<1x1x128x128xbf16>
    %44 = vector.shape_cast %43 : vector<1x1x128x128xbf16> to vector<128x128xbf16>
    %cst_46 = arith.constant dense<0.000000e+00> : vector<256x128xf32>
    %45 = tpu.matmul %42, %44, %cst_46 {dimension_numbers = #tpu.dot_dimension_numbers<[1], [0], [0], [1], [0, 0, 1, 1], [], []>} : vector<256x128xbf16>, vector<128x128xbf16>, vector<256x128xf32> -> vector<256x128xf32>
    %46 = arith.addf %40, %45 : vector<256x128xf32>
    %c0_47 = arith.constant 0 : index
    %c2_48 = arith.constant 2 : index
    %c0_49 = arith.constant 0 : index
    %47 = vector.load %arg8[%c0_47, %c2_48, %c0_49] : memref<18x18x128xbf16, #tpu.memory_space<vmem>>, vector<18x16x128xbf16>
    %48 = vector.extract_strided_slice %47 {offsets = [0, 0, 0], sizes = [16, 16, 128], strides = [1, 1, 1]} : vector<18x16x128xbf16> to vector<16x16x128xbf16>
    %49 = vector.shape_cast %48 : vector<16x16x128xbf16> to vector<256x128xbf16>
    %c0_50 = arith.constant 0 : index
    %c2_51 = arith.constant 2 : index
    %c0_52 = arith.constant 0 : index
    %c0_53 = arith.constant 0 : index
    %50 = vector.load %arg2[%c0_50, %c2_51, %c0_52, %c0_53] : memref<3x3x128x128xbf16, #tpu.memory_space<vmem>>, vector<1x1x128x128xbf16>
    %51 = vector.shape_cast %50 : vector<1x1x128x128xbf16> to vector<128x128xbf16>
    %cst_54 = arith.constant dense<0.000000e+00> : vector<256x128xf32>
    %52 = tpu.matmul %49, %51, %cst_54 {dimension_numbers = #tpu.dot_dimension_numbers<[1], [0], [0], [1], [0, 0, 1, 1], [], []>} : vector<256x128xbf16>, vector<128x128xbf16>, vector<256x128xf32> -> vector<256x128xf32>
    %53 = arith.addf %46, %52 : vector<256x128xf32>
    %54 = vector.extract_strided_slice %47 {offsets = [1, 0, 0], sizes = [16, 16, 128], strides = [1, 1, 1]} : vector<18x16x128xbf16> to vector<16x16x128xbf16>
    %55 = vector.shape_cast %54 : vector<16x16x128xbf16> to vector<256x128xbf16>
    %c1_55 = arith.constant 1 : index
    %c2_56 = arith.constant 2 : index
    %c0_57 = arith.constant 0 : index
    %c0_58 = arith.constant 0 : index
    %56 = vector.load %arg2[%c1_55, %c2_56, %c0_57, %c0_58] : memref<3x3x128x128xbf16, #tpu.memory_space<vmem>>, vector<1x1x128x128xbf16>
    %57 = vector.shape_cast %56 : vector<1x1x128x128xbf16> to vector<128x128xbf16>
    %cst_59 = arith.constant dense<0.000000e+00> : vector<256x128xf32>
    %58 = tpu.matmul %55, %57, %cst_59 {dimension_numbers = #tpu.dot_dimension_numbers<[1], [0], [0], [1], [0, 0, 1, 1], [], []>} : vector<256x128xbf16>, vector<128x128xbf16>, vector<256x128xf32> -> vector<256x128xf32>
    %59 = arith.addf %53, %58 : vector<256x128xf32>
    %60 = vector.extract_strided_slice %47 {offsets = [2, 0, 0], sizes = [16, 16, 128], strides = [1, 1, 1]} : vector<18x16x128xbf16> to vector<16x16x128xbf16>
    %61 = vector.shape_cast %60 : vector<16x16x128xbf16> to vector<256x128xbf16>
    %c2_60 = arith.constant 2 : index
    %c2_61 = arith.constant 2 : index
    %c0_62 = arith.constant 0 : index
    %c0_63 = arith.constant 0 : index
    %62 = vector.load %arg2[%c2_60, %c2_61, %c0_62, %c0_63] : memref<3x3x128x128xbf16, #tpu.memory_space<vmem>>, vector<1x1x128x128xbf16>
    %63 = vector.shape_cast %62 : vector<1x1x128x128xbf16> to vector<128x128xbf16>
    %cst_64 = arith.constant dense<0.000000e+00> : vector<256x128xf32>
    %64 = tpu.matmul %61, %63, %cst_64 {dimension_numbers = #tpu.dot_dimension_numbers<[1], [0], [0], [1], [0, 0, 1, 1], [], []>} : vector<256x128xbf16>, vector<128x128xbf16>, vector<256x128xf32> -> vector<256x128xf32>
    %65 = arith.addf %59, %64 : vector<256x128xf32>
    %66 = vector.shape_cast %65 : vector<256x128xf32> to vector<1x16x16x128xf32>
    %67 = arith.truncf %66 : vector<1x16x16x128xf32> to vector<1x16x16x128xbf16>
    %c0_65 = arith.constant 0 : index
    %c0_66 = arith.constant 0 : index
    %c0_67 = arith.constant 0 : index
    %c0_68 = arith.constant 0 : index
    %68 = vector.load %arg5[%c0_65, %c0_66, %c0_67, %c0_68] : memref<1x16x16x128xbf16, #tpu.memory_space<vmem>>, vector<1x16x16x128xbf16>
    tpu.vector_store %arg5[%c0_65, %c0_66, %c0_67, %c0_68], %67 {strides = array<i32>} : memref<1x16x16x128xbf16, #tpu.memory_space<vmem>>, vector<1x16x16x128xbf16>,
    %cst_69 = arith.constant dense<0.000000e+00> : vector<128xf32>
    %69 = vector.multi_reduction <add>, %65, %cst_69 [0] : vector<256x128xf32> to vector<128xf32>
    %70 = vector.shape_cast %69 : vector<128xf32> to vector<1x1x128xf32>
    %c0_70 = arith.constant 0 : index
    %c0_71 = arith.constant 0 : index
    %c0_72 = arith.constant 0 : index
    %71 = vector.load %arg6[%c0_70, %c0_71, %c0_72] : memref<1x1x128xf32, #tpu.memory_space<vmem>>, vector<1x1x128xf32>
    tpu.vector_store %arg6[%c0_70, %c0_71, %c0_72], %70 {strides = array<i32>} : memref<1x1x128xf32, #tpu.memory_space<vmem>>, vector<1x1x128xf32>,
    %72 = arith.mulf %65, %65 : vector<256x128xf32>
    %cst_73 = arith.constant dense<0.000000e+00> : vector<128xf32>
    %73 = vector.multi_reduction <add>, %72, %cst_73 [0] : vector<256x128xf32> to vector<128xf32>
    %74 = vector.shape_cast %73 : vector<128xf32> to vector<1x1x128xf32>
    %c0_74 = arith.constant 0 : index
    %c0_75 = arith.constant 0 : index
    %c0_76 = arith.constant 0 : index
    %75 = vector.load %arg7[%c0_74, %c0_75, %c0_76] : memref<1x1x128xf32, #tpu.memory_space<vmem>>, vector<1x1x128xf32>
    tpu.vector_store %arg7[%c0_74, %c0_75, %c0_76], %74 {strides = array<i32>} : memref<1x1x128xf32, #tpu.memory_space<vmem>>, vector<1x1x128xf32>,
    return
  }
  func.func @transform_0(%arg0: i32) -> (i32, i32, i32, i32) {
    %c0_i32 = arith.constant 0 : i32
    %c0_i32_0 = arith.constant 0 : i32
    %c0_i32_1 = arith.constant 0 : i32
    %c0_i32_2 = arith.constant 0 : i32
    return %arg0, %c0_i32, %c0_i32_0, %c0_i32_1 : i32, i32, i32, i32
  }
  func.func @transform_1(%arg0: i32) -> (i32, i32, i32, i32) {
    %c0_i32 = arith.constant 0 : i32
    %c0_i32_0 = arith.constant 0 : i32
    %c0_i32_1 = arith.constant 0 : i32
    %c0_i32_2 = arith.constant 0 : i32
    %c0_i32_3 = arith.constant 0 : i32
    return %c0_i32, %c0_i32_0, %c0_i32_1, %c0_i32_2 : i32, i32, i32, i32
  }
  func.func @transform_2(%arg0: i32) -> (i32, i32) {
    %c0_i32 = arith.constant 0 : i32
    %c0_i32_0 = arith.constant 0 : i32
    %c0_i32_1 = arith.constant 0 : i32
    return %c0_i32, %c0_i32_0 : i32, i32
  }
  func.func @transform_3(%arg0: i32) -> (i32, i32) {
    %c0_i32 = arith.constant 0 : i32
    %c0_i32_0 = arith.constant 0 : i32
    %c0_i32_1 = arith.constant 0 : i32
    return %c0_i32, %c0_i32_0 : i32, i32
  }
  func.func @transform_4(%arg0: i32) -> (i32, i32, i32, i32) {
    %c0_i32 = arith.constant 0 : i32
    %c0_i32_0 = arith.constant 0 : i32
    %c0_i32_1 = arith.constant 0 : i32
    %c0_i32_2 = arith.constant 0 : i32
    return %arg0, %c0_i32, %c0_i32_0, %c0_i32_1 : i32, i32, i32, i32
  }
  func.func @transform_5(%arg0: i32) -> (i32, i32, i32) {
    %c0_i32 = arith.constant 0 : i32
    %c0_i32_0 = arith.constant 0 : i32
    %c0_i32_1 = arith.constant 0 : i32
    return %arg0, %c0_i32, %c0_i32_0 : i32, i32, i32
  }
  func.func @transform_6(%arg0: i32) -> (i32, i32, i32) {
    %c0_i32 = arith.constant 0 : i32
    %c0_i32_0 = arith.constant 0 : i32
    %c0_i32_1 = arith.constant 0 : i32
    return %arg0, %c0_i32, %c0_i32_0 : i32, i32, i32
  }
}

module attributes {stable_mosaic.version = 11 : i64} {
  func.func @_bn_relu_kernel(%arg0: i32, %arg1: memref<1x16x16x128xbf16, #tpu.memory_space<vmem>>, %arg2: memref<1x128xf32, #tpu.memory_space<vmem>>, %arg3: memref<1x128xf32, #tpu.memory_space<vmem>>, %arg4: memref<1x16x16x128xbf16, #tpu.memory_space<vmem>>) attributes {dimension_semantics = [#tpu.dimension_semantics<parallel>], iteration_bounds = array<i64: 2>, scalar_prefetch = 0 : i64, scratch_operands = 0 : i64, tpu.core_type = #tpu.core_type<tc>, window_params = [{transform_indices = @transform_0, window_bounds = array<i64: 1, 16, 16, 128>}, {pipeline_mode = #tpu.pipeline_mode<synchronous>, transform_indices = @transform_1, window_bounds = array<i64: 1, 128>}, {pipeline_mode = #tpu.pipeline_mode<synchronous>, transform_indices = @transform_2, window_bounds = array<i64: 1, 128>}, {transform_indices = @transform_3, window_bounds = array<i64: 1, 16, 16, 128>}]} {
    %c0 = arith.constant 0 : index
    %c0_0 = arith.constant 0 : index
    %c0_1 = arith.constant 0 : index
    %c0_2 = arith.constant 0 : index
    %0 = vector.load %arg1[%c0, %c0_0, %c0_1, %c0_2] : memref<1x16x16x128xbf16, #tpu.memory_space<vmem>>, vector<1x16x16x128xbf16>
    %1 = arith.extf %0 : vector<1x16x16x128xbf16> to vector<1x16x16x128xf32>
    %c0_3 = arith.constant 0 : index
    %c0_4 = arith.constant 0 : index
    %2 = vector.load %arg2[%c0_3, %c0_4] : memref<1x128xf32, #tpu.memory_space<vmem>>, vector<1x128xf32>
    %3 = vector.shape_cast %2 : vector<1x128xf32> to vector<1x1x1x128xf32>
    %4 = vector.broadcast %3 : vector<1x1x1x128xf32> to vector<1x16x16x128xf32>
    %5 = arith.mulf %1, %4 : vector<1x16x16x128xf32>
    %c0_5 = arith.constant 0 : index
    %c0_6 = arith.constant 0 : index
    %6 = vector.load %arg3[%c0_5, %c0_6] : memref<1x128xf32, #tpu.memory_space<vmem>>, vector<1x128xf32>
    %7 = vector.shape_cast %6 : vector<1x128xf32> to vector<1x1x1x128xf32>
    %8 = vector.broadcast %7 : vector<1x1x1x128xf32> to vector<1x16x16x128xf32>
    %9 = arith.addf %5, %8 : vector<1x16x16x128xf32>
    %cst = arith.constant 0.000000e+00 : f32
    %10 = vector.broadcast %cst : f32 to vector<1x16x16x128xf32>
    %11 = arith.maximumf %9, %10 : vector<1x16x16x128xf32>
    %12 = arith.truncf %11 : vector<1x16x16x128xf32> to vector<1x16x16x128xbf16>
    %c0_7 = arith.constant 0 : index
    %c0_8 = arith.constant 0 : index
    %c0_9 = arith.constant 0 : index
    %c0_10 = arith.constant 0 : index
    %13 = vector.load %arg4[%c0_7, %c0_8, %c0_9, %c0_10] : memref<1x16x16x128xbf16, #tpu.memory_space<vmem>>, vector<1x16x16x128xbf16>
    tpu.vector_store %arg4[%c0_7, %c0_8, %c0_9, %c0_10], %12 {strides = array<i32>} : memref<1x16x16x128xbf16, #tpu.memory_space<vmem>>, vector<1x16x16x128xbf16>,
    return
  }
  func.func @transform_0(%arg0: i32) -> (i32, i32, i32, i32) {
    %c0_i32 = arith.constant 0 : i32
    %c0_i32_0 = arith.constant 0 : i32
    %c0_i32_1 = arith.constant 0 : i32
    %c0_i32_2 = arith.constant 0 : i32
    return %arg0, %c0_i32, %c0_i32_0, %c0_i32_1 : i32, i32, i32, i32
  }
  func.func @transform_1(%arg0: i32) -> (i32, i32) {
    %c0_i32 = arith.constant 0 : i32
    %c0_i32_0 = arith.constant 0 : i32
    %c0_i32_1 = arith.constant 0 : i32
    return %c0_i32, %c0_i32_0 : i32, i32
  }
  func.func @transform_2(%arg0: i32) -> (i32, i32) {
    %c0_i32 = arith.constant 0 : i32
    %c0_i32_0 = arith.constant 0 : i32
    %c0_i32_1 = arith.constant 0 : i32
    return %c0_i32, %c0_i32_0 : i32, i32
  }
  func.func @transform_3(%arg0: i32) -> (i32, i32, i32, i32) {
    %c0_i32 = arith.constant 0 : i32
    %c0_i32_0 = arith.constant 0 : i32
    %c0_i32_1 = arith.constant 0 : i32
    %c0_i32_2 = arith.constant 0 : i32
    return %arg0, %c0_i32, %c0_i32_0, %c0_i32_1 : i32, i32, i32, i32
  }
}

</mosaic_0001>

<bundles_post_ra>
// kernel: double_conv_forward.5
= control target key start
LH: loop header
LB: loop body
LE: loop exit
PB: predicated region body
PF: predicated region fallthrough
CT: control target
= control target key end

     0   :  { %s849_s12 = smov 0   ;;  %s983_s0 = inlined_call_operand.vmem [shape: bf16[2,16,16,128], index: 0, kind: input, shape index: {}]   ;;  %s984_s1 = inlined_call_operand.vmem [shape: f32[1,128], index: 1, kind: input, shape index: {}]   ;;  %s985_s2 = inlined_call_operand.vmem [shape: f32[1,128], index: 2, kind: input, shape index: {}]   ;;  %s986_s3 = inlined_call_operand.vmem [shape: bf16[2,16,16,128], index: 3, kind: output, shape index: {}]  }
   0x1 LB: > { %s560_s13 = sadd.s32 4294967295, %s827_s12   ;;  %p564_p0 = scmp.ge.s32.totalorder %s827_s12, 1  ;;  %s827_s12 = sphi %s849_s12, %s13_s12  }
   0x2   : > { %p137_p1 = scmp.lt.s32.totalorder %s827_s12, 3 }
   0x4   : > { %p138_p2 = pnand %p564_p0, %p137_p1 }
   0x5   : > { %p161_p3 = scmp.lt.s32.totalorder (!%p138_p2), %s560_s13, 1  ;;  %v870_v0 = vld [vmem:[%s984_s1] ss:$0 sm:$0xff] (!%p138_p2) }
   0x6   : > { %141 = sbr.rel (%p138_p2) target bundleno = 59 (0x3b), region = 32  ;;  %v879_v9 = vld [vmem:[%s985_s2] ss:$0 sm:$0xff] (!%p138_p2) }
   0xd   : > { %s988_s13 = smov (!%p161_p3, %s560_s13), 1 }
   0xe   : > { %s605_s14 = sshll.u32 %s988_s13, 7 }
   0xf   : > { %s865_s17 = scalar_lea.vmem %s983_s0, %s605_s14  ;;  %s904_s24 = scalar_lea.vmem %s986_s3, %s605_s14 }
  0x10   : > { %v640_v1 = vld [vmem:[%s865_s17] sm:$0xff]   ;;  %v783_v2 = vld [vmem:[%s865_s17 + $0x8] sm:$0xff]   ;;  %v784_v3 = vld [vmem:[%s865_s17 + $0x10] sm:$0xff]  }
  0x11   : > { %v641_v4 = vunpack.c.l.bf16 %v640_v1  ;;  %v642_v5 = vunpack.c.h.bf16 %v640_v1  ;;  %v645_v6 = vunpack.c.l.bf16 %v783_v2  ;;  %v646_v7 = vunpack.c.h.bf16 %v783_v2  ;;  %v785_v8 = vld [vmem:[%s865_s17 + $0x18] sm:$0xff]   ;;  %v786_v30 = vld [vmem:[%s865_s17 + $0x20] sm:$0xff]   ;;  %v787_v35 = vld [vmem:[%s865_s17 + $0x28] sm:$0xff]  }
  0x12   : > { %v649_v10 = vunpack.c.l.bf16 %v784_v3  ;;  %v650_v11 = vunpack.c.h.bf16 %v784_v3  ;;  %v653_v12 = vunpack.c.l.bf16 %v785_v8  ;;  %v654_v13 = vunpack.c.h.bf16 %v785_v8  ;;  %v788_v40 = vld [vmem:[%s865_s17 + $0x30] sm:$0xff]   ;;  %v789_v45 = vld [vmem:[%s865_s17 + $0x38] sm:$0xff]   ;;  %v790_v3 = vld [vmem:[%s865_s17 + $0x40] sm:$0xff]  }
  0x13   : > { %v242_v14 = vmul.f32 %v641_v4, %v870_v0  ;;  %v243_v15 = vmul.f32 %v642_v5, %v870_v0  ;;  %v244_v16 = vmul.f32 %v645_v6, %v870_v0  ;;  %v245_v17 = vmul.f32 %v646_v7, %v870_v0 }
  0x14   : > { %v246_v18 = vmul.f32 %v649_v10, %v870_v0  ;;  %v247_v19 = vmul.f32 %v650_v11, %v870_v0  ;;  %v248_v20 = vmul.f32 %v653_v12, %v870_v0  ;;  %v249_v21 = vmul.f32 %v654_v13, %v870_v0  ;;  %v791_v13 = vld [vmem:[%s865_s17 + $0x48] sm:$0xff]  }
  0x15   : > { %v281_v22 = vadd.f32 %v879_v9, %v242_v14  ;;  %v282_v23 = vadd.f32 %v879_v9, %v243_v15  ;;  %v283_v24 = vadd.f32 %v879_v9, %v244_v16  ;;  %v284_v25 = vadd.f32 %v879_v9, %v245_v17 }
  0x16   : > { %v285_v26 = vadd.f32 %v879_v9, %v246_v18  ;;  %v286_v27 = vadd.f32 %v879_v9, %v247_v19  ;;  %v287_v28 = vadd.f32 %v879_v9, %v248_v20  ;;  %v288_v29 = vadd.f32 %v879_v9, %v249_v21  ;;  %v792_v18 = vld [vmem:[%s865_s17 + $0x50] sm:$0xff]  }
  0x17   : > { %v313_v31 = vmax.f32 %v281_v22, 0.0  ;;  %v314_v32 = vmax.f32 %v282_v23, 0.0  ;;  %v315_v33 = vmax.f32 %v283_v24, 0.0  ;;  %v316_v34 = vmax.f32 %v284_v25, 0.0  ;;  %v793_v23 = vld [vmem:[%s865_s17 + $0x58] sm:$0xff]  }
  0x18   : > { %v317_v36 = vmax.f32 %v285_v26, 0.0  ;;  %v318_v37 = vmax.f32 %v286_v27, 0.0  ;;  %v319_v38 = vmax.f32 %v287_v28, 0.0  ;;  %v320_v39 = vmax.f32 %v288_v29, 0.0 }
  0x19   : > { %v706_v41 = vpack.c.bf16 %v314_v32, %v313_v31  ;;  %v711_v42 = vpack.c.bf16 %v316_v34, %v315_v33  ;;  %v657_v43 = vunpack.c.l.bf16 %v786_v30  ;;  %v658_v44 = vunpack.c.h.bf16 %v786_v30 }
  0x1a   : > { %v716_v46 = vpack.c.bf16 %v318_v37, %v317_v36  ;;  %v721_v47 = vpack.c.bf16 %v320_v39, %v319_v38  ;;  %v661_v48 = vunpack.c.l.bf16 %v787_v35  ;;  %v662_v49 = vunpack.c.h.bf16 %v787_v35 }
  0x1b   : > { %707 = vst [vmem:[%s904_s24] sm:$0xff] %v706_v41   ;;  %798 = vst [vmem:[%s904_s24 + $0x8] sm:$0xff] %v711_v42   ;;  %v250_v50 = vmul.f32 %v657_v43, %v870_v0  ;;  %v251_v51 = vmul.f32 %v658_v44, %v870_v0  ;;  %v665_v52 = vunpack.c.l.bf16 %v788_v40  ;;  %v666_v53 = vunpack.c.h.bf16 %v788_v40  ;;  %v794_v40 = vld [vmem:[%s865_s17 + $0x60] sm:$0xff]  }
  0x1c   : > { %799 = vst [vmem:[%s904_s24 + $0x10] sm:$0xff] %v716_v46   ;;  %800 = vst [vmem:[%s904_s24 + $0x18] sm:$0xff] %v721_v47   ;;  %v252_v54 = vmul.f32 %v661_v48, %v870_v0  ;;  %v253_v55 = vmul.f32 %v662_v49, %v870_v0  ;;  %v669_v56 = vunpack.c.l.bf16 %v789_v45  ;;  %v670_v57 = vunpack.c.h.bf16 %v789_v45 }
  0x1d   : > { %v289_v58 = vadd.f32 %v879_v9, %v250_v50  ;;  %v290_v59 = vadd.f32 %v879_v9, %v251_v51  ;;  %v254_v60 = vmul.f32 %v665_v52, %v870_v0  ;;  %v255_v61 = vmul.f32 %v666_v53, %v870_v0  ;;  %v795_v53 = vld [vmem:[%s865_s17 + $0x68] sm:$0xff]  }
  0x1e   : > { %v291_v62 = vadd.f32 %v879_v9, %v252_v54  ;;  %v292_v63 = vadd.f32 %v879_v9, %v253_v55  ;;  %v256_v1 = vmul.f32 %v669_v56, %v870_v0  ;;  %v257_v2 = vmul.f32 %v670_v57, %v870_v0 }
  0x1f   : > { %v321_v4 = vmax.f32 %v289_v58, 0.0  ;;  %v322_v5 = vmax.f32 %v290_v59, 0.0  ;;  %v293_v6 = vadd.f32 %v879_v9, %v254_v60  ;;  %v294_v7 = vadd.f32 %v879_v9, %v255_v61  ;;  %v796_v58 = vld [vmem:[%s865_s17 + $0x70] sm:$0xff]  }
  0x20   : > { %v323_v8 = vmax.f32 %v291_v62, 0.0  ;;  %v324_v10 = vmax.f32 %v292_v63, 0.0  ;;  %v295_v11 = vadd.f32 %v879_v9, %v256_v1  ;;  %v296_v12 = vadd.f32 %v879_v9, %v257_v2  ;;  %v797_v63 = vld [vmem:[%s865_s17 + $0x78] sm:$0xff]  }
  0x21   : > { %v726_v14 = vpack.c.bf16 %v322_v5, %v321_v4  ;;  %v325_v15 = vmax.f32 %v293_v6, 0.0  ;;  %v326_v16 = vmax.f32 %v294_v7, 0.0  ;;  %v673_v17 = vunpack.c.l.bf16 %v790_v3 }
  0x22   : > { %v731_v19 = vpack.c.bf16 %v324_v10, %v323_v8  ;;  %v327_v20 = vmax.f32 %v295_v11, 0.0  ;;  %v328_v21 = vmax.f32 %v296_v12, 0.0  ;;  %v674_v22 = vunpack.c.h.bf16 %v790_v3 }
  0x23   : > { %801 = vst [vmem:[%s904_s24 + $0x20] sm:$0xff] %v726_v14   ;;  %v736_v24 = vpack.c.bf16 %v326_v16, %v325_v15  ;;  %v258_v25 = vmul.f32 %v673_v17, %v870_v0  ;;  %v677_v26 = vunpack.c.l.bf16 %v791_v13  ;;  %v678_v27 = vunpack.c.h.bf16 %v791_v13 }
  0x24   : > { %802 = vst [vmem:[%s904_s24 + $0x28] sm:$0xff] %v731_v19   ;;  %v741_v28 = vpack.c.bf16 %v328_v21, %v327_v20  ;;  %v259_v29 = vmul.f32 %v674_v22, %v870_v0  ;;  %v681_v30 = vunpack.c.l.bf16 %v792_v18  ;;  %v682_v31 = vunpack.c.h.bf16 %v792_v18 }
  0x25   : > { %803 = vst [vmem:[%s904_s24 + $0x30] sm:$0xff] %v736_v24   ;;  %v297_v32 = vadd.f32 %v879_v9, %v258_v25  ;;  %v260_v33 = vmul.f32 %v677_v26, %v870_v0  ;;  %v261_v34 = vmul.f32 %v678_v27, %v870_v0  ;;  %v685_v35 = vunpack.c.l.bf16 %v793_v23 }
  0x26   : > { %804 = vst [vmem:[%s904_s24 + $0x38] sm:$0xff] %v741_v28   ;;  %v298_v36 = vadd.f32 %v879_v9, %v259_v29  ;;  %v262_v37 = vmul.f32 %v681_v30, %v870_v0  ;;  %v263_v38 = vmul.f32 %v682_v31, %v870_v0  ;;  %v686_v39 = vunpack.c.h.bf16 %v793_v23 }
  0x27   : > { %v329_v41 = vmax.f32 %v297_v32, 0.0  ;;  %v299_v42 = vadd.f32 %v879_v9, %v260_v33  ;;  %v300_v43 = vadd.f32 %v879_v9, %v261_v34  ;;  %v264_v44 = vmul.f32 %v685_v35, %v870_v0 }
  0x28   : > { %v330_v45 = vmax.f32 %v298_v36, 0.0  ;;  %v301_v46 = vadd.f32 %v879_v9, %v262_v37  ;;  %v302_v47 = vadd.f32 %v879_v9, %v263_v38  ;;  %v265_v48 = vmul.f32 %v686_v39, %v870_v0 }
  0x29   : > { %v331_v49 = vmax.f32 %v299_v42, 0.0  ;;  %v332_v50 = vmax.f32 %v300_v43, 0.0  ;;  %v303_v51 = vadd.f32 %v879_v9, %v264_v44  ;;  %v689_v52 = vunpack.c.l.bf16 %v794_v40 }
  0x2a   : > { %v746_v54 = vpack.c.bf16 %v330_v45, %v329_v41  ;;  %v333_v55 = vmax.f32 %v301_v46, 0.0  ;;  %v334_v56 = vmax.f32 %v302_v47, 0.0  ;;  %v304_v57 = vadd.f32 %v879_v9, %v265_v48 }
  0x2b   : > { %v751_v59 = vpack.c.bf16 %v332_v50, %v331_v49  ;;  %v335_v60 = vmax.f32 %v303_v51, 0.0  ;;  %v690_v61 = vunpack.c.h.bf16 %v794_v40  ;;  %v266_v62 = vmul.f32 %v689_v52, %v870_v0 }
  0x2c   : > { %805 = vst [vmem:[%s904_s24 + $0x40] sm:$0xff] %v746_v54   ;;  %v756_v1 = vpack.c.bf16 %v334_v56, %v333_v55  ;;  %v336_v2 = vmax.f32 %v304_v57, 0.0  ;;  %v693_v3 = vunpack.c.l.bf16 %v795_v53  ;;  %v694_v4 = vunpack.c.h.bf16 %v795_v53 }
  0x2d   : > { %806 = vst [vmem:[%s904_s24 + $0x48] sm:$0xff] %v751_v59   ;;  %v267_v5 = vmul.f32 %v690_v61, %v870_v0  ;;  %v305_v6 = vadd.f32 %v879_v9, %v266_v62  ;;  %v697_v7 = vunpack.c.l.bf16 %v796_v58  ;;  %v698_v8 = vunpack.c.h.bf16 %v796_v58 }
  0x2e   : > { %807 = vst [vmem:[%s904_s24 + $0x50] sm:$0xff] %v756_v1   ;;  %v761_v10 = vpack.c.bf16 %v336_v2, %v335_v60  ;;  %v268_v11 = vmul.f32 %v693_v3, %v870_v0  ;;  %v269_v12 = vmul.f32 %v694_v4, %v870_v0  ;;  %v701_v13 = vunpack.c.l.bf16 %v797_v63 }
  0x2f   : > { %v306_v14 = vadd.f32 %v879_v9, %v267_v5  ;;  %v337_v15 = vmax.f32 %v305_v6, 0.0  ;;  %v270_v16 = vmul.f32 %v697_v7, %v870_v0  ;;  %v271_v17 = vmul.f32 %v698_v8, %v870_v0 }
  0x30   : > { %808 = vst [vmem:[%s904_s24 + $0x58] sm:$0xff] %v761_v10   ;;  %v307_v18 = vadd.f32 %v879_v9, %v268_v11  ;;  %v308_v19 = vadd.f32 %v879_v9, %v269_v12  ;;  %v702_v20 = vunpack.c.h.bf16 %v797_v63  ;;  %v272_v21 = vmul.f32 %v701_v13, %v870_v0 }
  0x31   : > { %v338_v22 = vmax.f32 %v306_v14, 0.0  ;;  %v309_v23 = vadd.f32 %v879_v9, %v270_v16  ;;  %v310_v24 = vadd.f32 %v879_v9, %v271_v17 }
  0x32   : > { %v339_v25 = vmax.f32 %v307_v18, 0.0  ;;  %v340_v26 = vmax.f32 %v308_v19, 0.0  ;;  %v273_v27 = vmul.f32 %v702_v20, %v870_v0  ;;  %v311_v28 = vadd.f32 %v879_v9, %v272_v21 }
  0x33   : > { %v766_v29 = vpack.c.bf16 %v338_v22, %v337_v15  ;;  %v341_v30 = vmax.f32 %v309_v23, 0.0  ;;  %v342_v31 = vmax.f32 %v310_v24, 0.0 }
  0x34   : > { %v771_v32 = vpack.c.bf16 %v340_v26, %v339_v25  ;;  %v312_v33 = vadd.f32 %v879_v9, %v273_v27  ;;  %v343_v34 = vmax.f32 %v311_v28, 0.0 }
  0x35   : > { %809 = vst [vmem:[%s904_s24 + $0x60] sm:$0xff] %v766_v29   ;;  %v776_v35 = vpack.c.bf16 %v342_v31, %v341_v30 }
  0x36   : > { %810 = vst [vmem:[%s904_s24 + $0x68] sm:$0xff] %v771_v32   ;;  %v344_v36 = vmax.f32 %v312_v33, 0.0 }
  0x37   : > { %811 = vst [vmem:[%s904_s24 + $0x70] sm:$0xff] %v776_v35  }
  0x38   : > { %v781_v37 = vpack.c.bf16 %v344_v36, %v343_v34 }
  0x3a   : > { %812 = vst [vmem:[%s904_s24 + $0x78] sm:$0xff] %v781_v37  }
  0x3b PF: > { %s13_s12 = sadd.s32 1, %s827_s12  }
  0x3c   : > { %p10_p4 = scmp.ge.s32.totalorder %s13_s12, 4  }
  0x3e   :  { %12 = sbr.rel (!%p10_p4) target bundleno = 1 (0x1), region = 62 }

// kernel: double_conv_forward.4
= control target key start
LH: loop header
LB: loop body
LE: loop exit
PB: predicated region body
PF: predicated region fallthrough
CT: control target
= control target key end

     0   :  { %s6155_s21 = smov 0   ;;  %s7290_s0 = inlined_call_operand.vmem [shape: bf16[2,16,16,128], index: 0, kind: input, shape index: {}]   ;;  %s7291_s1 = inlined_call_operand.vmem [shape: bf16[3,3,128,128], index: 1, kind: input, shape index: {}]   ;;  %s7292_s2 = inlined_call_operand.vmem [shape: f32[1,128], index: 2, kind: input, shape index: {}]   ;;  %s7293_s3 = inlined_call_operand.vmem [shape: f32[1,128], index: 3, kind: input, shape index: {}]   ;;  %s7294_s4 = inlined_call_operand.vmem [shape: bf16[2,16,16,128], index: 4, kind: output, shape index: {0}]   ;;  %s7295_s5 = inlined_call_operand.vmem [shape: f32[2,1,128], index: 5, kind: output, shape index: {1}]   ;;  %s7296_s6 = inlined_call_operand.vmem [shape: f32[2,1,128], index: 6, kind: output, shape index: {2}]  }
   0x1 LB: > { %s4479_s22 = sadd.s32 4294967295, %s6117_s21   ;;  %p4483_p0 = scmp.ge.s32.totalorder %s6117_s21, 1  ;;  %s6117_s21 = sphi %s6155_s21, %s17_s21  }
   0x2   : > { %p217_p1 = scmp.lt.s32.totalorder %s6117_s21, 3 }
   0x4   : > { %p218_p2 = pnand %p4483_p0, %p217_p1 }
   0x6   : > { %221 = sbr.rel (%p218_p2) target bundleno = 604 (0x25c), region = 36 }
   0xd   : > { %v5981_v0 = vld [vmem:[%s7291_s1 + $0xc0] sm:$0xff]   ;;  %p253_p3 = scmp.lt.s32.totalorder %s4479_s22, 1  ;;  %v5982_v1 = vld [vmem:[%s7291_s1 + $0xc8] sm:$0xff]   ;;  %v5983_v3 = vld [vmem:[%s7291_s1 + $0xd0] sm:$0xff]   ;;  %v6119_v7 = vmov 0   ;;  %vm611_vm0 = vcmask 1040384  }
   0xe   : > { %5268 = vmatprep.subr.bf16.mxu1 %v5981_v0  ;;  %v5984_v2 = vld [vmem:[%s7291_s1 + $0x100] sm:$0xff]   ;;  %v5986_v4 = vld [vmem:[%s7291_s1 + $0x108] sm:$0xff]   ;;  %v5985_v5 = vld [vmem:[%s7291_s1 + $0xd8] sm:$0xff]   ;;  %460 = vst [vmem:[#allocation2] sm:$0xf] %v6119_v7  ;;  %vm3125_vm6 = vcmask 1042432  }
   0xf   : > { %5269 = vmatpush3.bf16.msra.mxu1 %v5981_v0  ;;  %s7386_s22 = smov (!%p253_p3, %s4479_s22), 1  ;;  %5460 = vmatprep.subr.bf16.mxu0 %v5984_v2  ;;  %v5988_v6 = vld [vmem:[%s7291_s1 + $0x110] sm:$0xff]   ;;  %461 = vst [vmem:[#allocation2 + $0x4] sm:$0xf] %v6119_v7  ;;  %462 = vst [vmem:[#allocation2 + $0x8] sm:$0x1] %v6119_v7 }
  0x10   : > { %5270 = vmatprep.subr.bf16.mxu1 %v5982_v1  ;;  %5461 = vmatpush3.bf16.msra.mxu0 %v5984_v2  ;;  %s4844_s13 = sshll.u32 %s7386_s22, 7  ;;  %464 = vst [vmem:[#allocation2 + $0xcc] sm:$0xf] %v6119_v7  ;;  %465 = vst [vmem:[#allocation2 + $0xd0] sm:$0xf] %v6119_v7  ;;  %v5990_v8 = vld [vmem:[%s7291_s1 + $0x118] sm:$0xff]   ;;  %s265_s10 = scalar_lea.vmem %s7295_s5, %s7386_s22 }
  0x11   : > { %5462 = vmatprep.subr.bf16.mxu0 %v5986_v4  ;;  %466 = vst [vmem:[#allocation2 + $0xd4] sm:$0x1] %v6119_v7  ;;  %s6195_s18 = scalar_lea.vmem %s7290_s0, %s4844_s13  ;;  %v5987_v9 = vld [vmem:[%s7291_s1 + $0xe0] sm:$0xff]   ;;  %v5989_v10 = vld [vmem:[%s7291_s1 + $0xe8] sm:$0xff]   ;;  %vm612_vm1 = vsmask.f32 256  ;;  %s7257_s8 = scalar_lea.vmem %s7294_s4, %s4844_s13 }
  0x12   : > { %v4879_v11 = vld [vmem:[%s6195_s18] sm:$0xff]   ;;  %v5022_v16 = vld [vmem:[%s6195_s18 + $0x8] sm:$0xff]   ;;  %v5023_v22 = vld [vmem:[%s6195_s18 + $0x10] sm:$0xff]   ;;  %vm1778_vm3 = vsmask.f32 3328  ;;  %vm3126_vm7 = vcmask 1046532   ;;  %s268_s14 = scalar_lea.vmem %s7296_s6, %s7386_s22 }
  0x13   : > { %5271 = vmatpush3.bf16.msra.mxu1 %v5982_v1  ;;  %v6207_v12 = vld [vmem:[%s7292_s2] ss:$0 sm:$0xff]  ;;  %v4880_v14 = vunpack.c.l.bf16 %v4879_v11  ;;  %v4881_v15 = vunpack.c.h.bf16 %v4879_v11  ;;  %v4884_v18 = vunpack.c.l.bf16 %v5022_v16  ;;  %v4885_v19 = vunpack.c.h.bf16 %v5022_v16  ;;  %v5024_v27 = vld [vmem:[%s6195_s18 + $0x18] sm:$0xff]   ;;  %v5994_v28 = vld [vmem:[%s7291_s1 + $0x128] sm:$0xff]  }
  0x14   : > { %5272 = vmatprep.subr.bf16.mxu1 %v5983_v3  ;;  %5463 = vmatpush3.bf16.msra.mxu0 %v5986_v4  ;;  %v5992_v13 = vld [vmem:[%s7291_s1 + $0x120] sm:$0xff]   ;;  %v4888_v25 = vunpack.c.l.bf16 %v5023_v22  ;;  %v4889_v26 = vunpack.c.h.bf16 %v5023_v22  ;;  %v4892_v31 = vunpack.c.l.bf16 %v5024_v27  ;;  %v4893_v32 = vunpack.c.h.bf16 %v5024_v27  ;;  %v5991_v33 = vld [vmem:[%s7291_s1 + $0xf0] sm:$0xff]   ;;  %v5993_v52 = vld [vmem:[%s7291_s1 + $0xf8] sm:$0xff]  }
  0x15   : > { %5464 = vmatprep.subr.bf16.mxu0 %v5988_v6  ;;  %v6216_v17 = vld [vmem:[%s7293_s3] ss:$0 sm:$0xff]  ;;  %v341_v20 = vmul.f32 %v4880_v14, %v6207_v12  ;;  %v342_v21 = vmul.f32 %v4881_v15, %v6207_v12  ;;  %v343_v23 = vmul.f32 %v4884_v18, %v6207_v12  ;;  %v344_v24 = vmul.f32 %v4885_v19, %v6207_v12  ;;  %v5997_v45 = vld [vmem:[%s7291_s1 + $0x130] sm:$0xff]   ;;  %v6250_v57 = vld [vmem:[%s6195_s18 + $0x28] sm:$0xff]  }
  0x16   : > { %v345_v36 = vmul.f32 %v4888_v25, %v6207_v12  ;;  %v346_v37 = vmul.f32 %v4889_v26, %v6207_v12  ;;  %v347_v40 = vmul.f32 %v4892_v31, %v6207_v12  ;;  %v348_v41 = vmul.f32 %v4893_v32, %v6207_v12  ;;  %v5025_v42 = vld [vmem:[%s6195_s18 + $0x20] sm:$0xff]   ;;  %vm6260_vm2 = vmand %vm611_vm0, %vm612_vm1 }
  0x17   : > { %5273 = vmatpush3.bf16.msra.mxu1 %v5983_v3  ;;  %v380_v29 = vadd.f32 %v6216_v17, %v341_v20  ;;  %v381_v30 = vadd.f32 %v6216_v17, %v342_v21  ;;  %v382_v34 = vadd.f32 %v6216_v17, %v343_v23  ;;  %v383_v35 = vadd.f32 %v6216_v17, %v344_v24  ;;  %v5998_v3 = vld [vmem:[%s7291_s1 + $0x138] sm:$0xff]   ;;  %v6267_v11 = vld [vmem:[%s7291_s1] sm:$0xff]   ;;  %vm6842_vm8 = vmor %vm3125_vm6, %vm3126_vm7 }
  0x18   : > { %5274 = vmatprep.subr.bf16.mxu1 %v5985_v5  ;;  %5465 = vmatpush3.bf16.msra.mxu0 %v5988_v6  ;;  %v384_v46 = vadd.f32 %v6216_v17, %v345_v36  ;;  %v385_v47 = vadd.f32 %v6216_v17, %v346_v37  ;;  %v386_v49 = vadd.f32 %v6216_v17, %v347_v40  ;;  %v4896_v51 = vunpack.c.l.bf16 %v5025_v42  ;;  %v6275_v22 = vld [vmem:[%s7291_s1 + $0x1c0] sm:$0xff]   ;;  %v5027_v40 = vld [vmem:[%s6195_s18 + $0x30] sm:$0xff]  }
  0x19   : > { %5466 = vmatprep.subr.bf16.mxu0 %v5990_v8  ;;  %v412_v38 = vmax.f32 %v380_v29, 0.0  ;;  %v413_v39 = vmax.f32 %v381_v30, 0.0  ;;  %v414_v43 = vmax.f32 %v382_v34, 0.0  ;;  %v415_v44 = vmax.f32 %v383_v35, 0.0 }
  0x1a   : > { %v387_v50 = vadd.f32 %v6216_v17, %v348_v41  ;;  %v416_v54 = vmax.f32 %v384_v46, 0.0  ;;  %v417_v55 = vmax.f32 %v385_v47, 0.0  ;;  %v4897_v56 = vunpack.c.h.bf16 %v5025_v42 }
  0x1b   : > { %5275 = vmatpush3.bf16.msra.mxu1 %v5985_v5  ;;  %v444_v48 = vpack.c.bf16 %v413_v39, %v412_v38  ;;  %v445_v53 = vpack.c.bf16 %v415_v44, %v414_v43  ;;  %v418_v60 = vmax.f32 %v386_v49, 0.0  ;;  %v349_v1 = vmul.f32 %v4896_v51, %v6207_v12  ;;  %v5028_v49 = vld [vmem:[%s6195_s18 + $0x38] sm:$0xff]  }
  0x1c   : > { %5276 = vmatprep.subr.bf16.mxu1 %v5987_v9  ;;  %5467 = vmatpush3.bf16.msra.mxu0 %v5990_v8  ;;  %v419_v61 = vmax.f32 %v387_v50, 0.0  ;;  %v446_v0 = vpack.c.bf16 %v417_v55, %v416_v54  ;;  %v350_v5 = vmul.f32 %v4897_v56, %v6207_v12  ;;  %v4900_v6 = vunpack.c.l.bf16 %v6250_v57 }
  0x1d   : > { %5468 = vmatprep.subr.bf16.mxu0 %v5992_v13  ;;  %v468_v58 = vshrl.u32 %v444_v48, 16  ;;  %v471_v59 = vshll.u32 %v444_v48, 16  ;;  %v475_v62 = vshrl.u32 %v445_v53, 16  ;;  %v478_v63 = vshll.u32 %v445_v53, 16 }
  0x1e   : > { %v447_v4 = vpack.c.bf16 %v419_v61, %v418_v60  ;;  %v389_v27 = vadd.f32 %v6216_v17, %v350_v5  ;;  %v4901_v38 = vunpack.c.h.bf16 %v6250_v57  ;;  %v351_v39 = vmul.f32 %v4900_v6, %v6207_v12  ;;  %v6006_v5 = vld [vmem:[%s7291_s1 + $0x8] sm:$0xff]  }
  0x1f   : > { %5277 = vmatpush3.bf16.msra.mxu1 %v5987_v9  ;;  %v470_v2 = vrot.slane %v468_v58, 7  ;;  %v477_v8 = vrot.slane %v475_v62, 7  ;;  %v482_v9 = vshrl.u32 %v446_v0, 16  ;;  %v4904_v53 = vunpack.c.l.bf16 %v5027_v40  ;;  %v6313_v6 = vld [vmem:[%s6195_s18 + $0x48] sm:$0xff]  }
  0x20   : > { %5278 = vmatprep.subr.bf16.mxu1 %v5989_v10  ;;  %5469 = vmatpush3.bf16.msra.mxu0 %v5992_v13  ;;  %v388_v13 = vadd.f32 %v6216_v17, %v349_v1  ;;  %v489_v15 = vshrl.u32 %v447_v4, 16  ;;  %v492_v16 = vshll.u32 %v447_v4, 16  ;;  %v421_v37 = vmax.f32 %v389_v27, 0.0 }
  0x21   : > { %5470 = vmatprep.subr.bf16.mxu0 %v5994_v28  ;;  %v473_v14 = vor.u32 %v471_v59, %v470_v2  ;;  %v630_v18 = vsel %vm6260_vm2, %v470_v2, 0  ;;  %v480_v19 = vor.u32 %v478_v63, %v477_v8  ;;  %v484_v20 = vrot.slane %v482_v9, 7  ;;  %v5029_v63 = vld [vmem:[%s6195_s18 + $0x40] sm:$0xff]  }
  0x22   : > { %v4492_v21 = vcombine.low %v630_v18, %v630_v18  ;;  %v631_v23 = vsel %vm6260_vm2, %v477_v8, 0  ;;  %v491_v25 = vrot.slane %v489_v15, 7  ;;  %v420_v35 = vmax.f32 %v388_v13, 0.0 }
  0x23   : > { %5279 = vmatpush3.bf16.msra.mxu1 %v5989_v10  ;;  %v485_v10 = vshll.u32 %v446_v0, 16  ;;  %v614_v24 = vsel %vm6260_vm2, 0, %v473_v14  ;;  %v4495_v26 = vcombine.low %v631_v23, %v631_v23  ;;  %v615_v30 = vsel %vm6260_vm2, 0, %v480_v19 }
  0x24   : > { %5280 = vmatprep.subr.bf16.mxu1 %v5991_v33  ;;  %5471 = vmatpush3.bf16.msra.mxu0 %v5994_v28  ;;  %v4490_v28 = vcombine.low %v614_v24, %v614_v24  ;;  %v4491_v29 = vcombine.high %v614_v24, %v614_v24  ;;  %825 = vst [vmem:[#allocation2 + $0x14] sm:$0x1] %v4492_v21  ;;  %v632_v44 = vsel %vm6260_vm2, %v484_v20, 0  ;;  %vm1779_vm4 = vsmask.f32 7440 }
  0x25   : > { %5472 = vmatprep.subr.bf16.mxu0 %v5997_v45  ;;  %v487_v31 = vor.u32 %v485_v10, %v484_v20  ;;  %v4493_v32 = vcombine.low %v615_v30, %v615_v30  ;;  %v494_v34 = vor.u32 %v492_v16, %v491_v25  ;;  %828 = vst [vmem:[#allocation2 + $0x20] sm:$0x1] %v4495_v26  ;;  %v4905_v60 = vunpack.c.h.bf16 %v5027_v40  ;;  %v6011_v40 = vld [vmem:[%s7291_s1 + $0x10] sm:$0xff]   ;;  %vm6349_vm5 = vmor %vm1778_vm3, %vm1779_vm4 }
  0x26   : > { %823 = vst [vmem:[#allocation2 + $0xc] sm:$0xf] %v4490_v28  ;;  %824 = vst [vmem:[#allocation2 + $0x10] sm:$0xf] %v4491_v29  ;;  %v448_v47 = vpack.c.bf16 %v421_v37, %v420_v35  ;;  %v352_v48 = vmul.f32 %v4901_v38, %v6207_v12  ;;  %v390_v50 = vadd.f32 %v6216_v17, %v351_v39  ;;  %v4908_v62 = vunpack.c.l.bf16 %v5028_v49 }
  0x27   : > { %5281 = vmatpush3.bf16.msra.mxu1 %v5991_v33  ;;  %v4494_v33 = vcombine.high %v615_v30, %v615_v30  ;;  %v616_v36 = vsel %vm6260_vm2, 0, %v487_v31  ;;  %826 = vst [vmem:[#allocation2 + $0x18] sm:$0xf] %v4493_v32  ;;  %v617_v43 = vsel %vm6260_vm2, 0, %v494_v34  ;;  %v4498_v51 = vcombine.low %v632_v44, %v632_v44 }
  0x28   : > { %5282 = vmatprep.subr.bf16.mxu1 %v5993_v52  ;;  %5473 = vmatpush3.bf16.msra.mxu0 %v5997_v45  ;;  %v4496_v41 = vcombine.low %v616_v36, %v616_v36  ;;  %v4497_v42 = vcombine.high %v616_v36, %v616_v36  ;;  %v4499_v45 = vcombine.low %v617_v43, %v617_v43  ;;  %v496_v54 = vshrl.u32 %v448_v47, 16 }
  0x29   : > { %5474 = vmatprep.subr.bf16.mxu0 %v5998_v3  ;;  %827 = vst [vmem:[#allocation2 + $0x1c] sm:$0xf] %v4494_v33  ;;  %v4500_v46 = vcombine.high %v617_v43, %v617_v43  ;;  %v499_v55 = vshll.u32 %v448_v47, 16  ;;  %v391_v56 = vadd.f32 %v6216_v17, %v352_v48  ;;  %v422_v59 = vmax.f32 %v390_v50, 0.0  ;;  %831 = vst [vmem:[#allocation2 + $0x2c] sm:$0x1] %v4498_v51 }
  0x2a   : > { %829 = vst [vmem:[#allocation2 + $0x24] sm:$0xf] %v4496_v41  ;;  %830 = vst [vmem:[#allocation2 + $0x28] sm:$0xf] %v4497_v42  ;;  %v353_v61 = vmul.f32 %v4904_v53, %v6207_v12  ;;  %v354_v10 = vmul.f32 %v4905_v60, %v6207_v12  ;;  %v4909_v13 = vunpack.c.h.bf16 %v5028_v49  ;;  %v355_v18 = vmul.f32 %v4908_v62, %v6207_v12 }
  0x2b   : > { %5283 = vmatpush3.bf16.msra.mxu1 %v5993_v52  ;;  %v633_v52 = vsel %vm6260_vm2, %v491_v25, 0  ;;  %832 = vst [vmem:[#allocation2 + $0x30] sm:$0xf] %v4499_v45  ;;  %833 = vst [vmem:[#allocation2 + $0x34] sm:$0xf] %v4500_v46  ;;  %v423_v4 = vmax.f32 %v391_v56, 0.0  ;;  %v4912_v26 = vunpack.c.l.bf16 %v5029_v63  ;;  %v4913_v31 = vunpack.c.h.bf16 %v5029_v63 }
  0x2c   : > { %5316 = vmatprep.subr.bf16.mxu1 %v6267_v11  ;;  %5475 = vmatpush3.bf16.msra.mxu0 %v5998_v3  ;;  %v4501_v57 = vcombine.low %v633_v52, %v633_v52  ;;  %v6301_v58 = vld [vmem:[#allocation2 + $0x14] sm:$0x1]  ;;  %v1732_v2 = vld [vmem:[#allocation2 + $0x20] sm:$0x1]  ;;  %v6307_v3 = vrot.slane %v496_v54, 7  ;;  %v6319_v16 = vadd.f32 %v6216_v17, %v353_v61  ;;  %v356_v25 = vmul.f32 %v4909_v13, %v6207_v12  ;;  %v6016_v61 = vld [vmem:[%s7291_s1 + $0x18] sm:$0xff]  }
  0x2d   : > { %5508 = vmatprep.subr.bf16.mxu0 %v6275_v22  ;;  %v1825_v0 = vshll.u32 %v6301_v58, 16  ;;  %v5995_v8 = vld [vmem:[#allocation2 + $0xc] sm:$0xff]   ;;  %v1849_v9 = vshll.u32 %v1732_v2, 16  ;;  %v6323_v24 = vpack.c.bf16 %v423_v4, %v422_v59  ;;  %v6327_v29 = vadd.f32 %v6216_v17, %v354_v10  ;;  %v6059_v54 = vld [vmem:[%s7291_s1 + $0x200] sm:$0xff]  }
  0x2e   : > { %834 = vst [vmem:[#allocation2 + $0x38] sm:$0x1] %v4501_v57  ;;  %5284 = vmatprep.mubr.bf16.mxu1 %v5995_v8  ;;  %v1727_v19 = vld [vmem:[#allocation2 + $0xc] sm:$0xf]  ;;  %v1728_v20 = vld [vmem:[#allocation2 + $0x10] sm:$0xf]  ;;  %v501_v23 = vor.u32 %v499_v55, %v6307_v3  ;;  %v6330_v30 = vadd.f32 %v6216_v17, %v355_v18  ;;  %v6334_v33 = vadd.f32 %v6216_v17, %v356_v25  ;;  %v4916_v34 = vunpack.c.l.bf16 %v6313_v6 }
  0x2f   : > { %v6316_v15 = vrot.slane %v1825_v0, 5  ;;  %v1730_v21 = vld [vmem:[#allocation2 + $0x18] sm:$0xf]  ;;  %v1806_v28 = vshrl.u32 %v1727_v19, 16  ;;  %v1809_v32 = vshll.u32 %v1727_v19, 16  ;;  %v4917_v35 = vunpack.c.h.bf16 %v6313_v6 }
  0x30   : > { %v5996_v14 = vld [vmem:[#allocation2 + $0x18] sm:$0xff]   ;;  %v1815_v37 = vshll.u32 %v1728_v20, 16  ;;  %v1819_v38 = vshrl.u32 %v1728_v20, 16  ;;  %v6342_v41 = vmul.f32 %v4912_v26, %v6207_v12  ;;  %v1830_v42 = vshrl.u32 %v1730_v21, 16  ;;  %v1735_v13 = vld [vmem:[#allocation2 + $0x2c] sm:$0x1] }
  0x31   : > { %5285 = vmatmul.mubr.bf16.vlgmr.msra.gmra.mrb[0].mxu1 %v5996_v14  ;;  %v5999_v27 = vld [vmem:[#allocation2 + $0x24] sm:$0xff]   ;;  %v1808_v36 = vrot.slane %v1806_v28, 4  ;;  %v1731_v39 = vld [vmem:[#allocation2 + $0x1c] sm:$0xf]  ;;  %v1833_v43 = vshll.u32 %v1730_v21, 16  ;;  %v6345_v49 = vmul.f32 %v4913_v31, %v6207_v12  ;;  %v1851_v57 = vrot.slane %v1849_v9, 5 }
  0x32   : > { %5317 = vmatpush3.bf16.msra.mxu1 %v6267_v11  ;;  %5288 = vmatprep.mubr.bf16.mxu1 %v5999_v27  ;;  %v1811_v11 = vrot.slane %v1809_v32, 5  ;;  %v1839_v44 = vshll.u32 %v1731_v39, 16  ;;  %v6000_v45 = vld [vmem:[#allocation2 + $0x30] sm:$0xff]   ;;  %v1817_v46 = vrot.slane %v1815_v37, 5  ;;  %v1821_v47 = vrot.slane %v1819_v38, 4  ;;  %v6021_v28 = vld [vmem:[%s7291_s1 + $0x20] sm:$0xff]  }
  0x33   : > { %5318 = vmatprep.subr.bf16.mxu1 %v6006_v5  ;;  %v1843_v48 = vshrl.u32 %v1731_v39, 16  ;;  %v1832_v51 = vrot.slane %v1830_v42, 4  ;;  %v1835_v52 = vrot.slane %v1833_v43, 5  ;;  %v618_v59 = vsel %vm6260_vm2, 0, %v501_v23  ;;  %v1733_v60 = vld [vmem:[#allocation2 + $0x24] sm:$0xf] }
  0x34   : > { %v1812_v50 = vor.u32 %v1811_v11, %v1808_v36  ;;  %v1841_v53 = vrot.slane %v1839_v44, 5  ;;  %v1822_v55 = vor.u32 %v1821_v47, %v1817_v46  ;;  %v4502_v0 = vcombine.low %v618_v59, %v618_v59  ;;  %v1734_v4 = vld [vmem:[#allocation2 + $0x28] sm:$0xf]  ;;  %v1736_v14 = vld [vmem:[#allocation2 + $0x30] sm:$0xf] }
  0x35   : > { %v1845_v56 = vrot.slane %v1843_v48, 4  ;;  %v1836_v63 = vor.u32 %v1835_v52, %v1832_v51  ;;  %v4503_v2 = vcombine.high %v618_v59, %v618_v59  ;;  %v503_v10 = vshrl.u32 %v6323_v24, 16  ;;  %v1737_v23 = vld [vmem:[#allocation2 + $0x34] sm:$0xf]  ;;  %v6003_v36 = vld [vmem:[%s7291_s1 + $0x1c8] sm:$0xff]  }
  0x36   : > { %5319 = vmatpush3.bf16.msra.mxu1 %v6006_v5  ;;  %v1813_v62 = vrot.slane %v1812_v50, 4  ;;  %v1823_v5 = vrot.slane %v1822_v55, 4  ;;  %v506_v9 = vshll.u32 %v6323_v24, 16  ;;  %835 = vst [vmem:[#allocation2 + $0x3c] sm:$0xf] %v4502_v0  ;;  %v1854_v20 = vshrl.u32 %v1733_v60, 16 }
  0x37   : > { %5320 = vmatprep.subr.bf16.mxu1 %v6011_v40  ;;  %v1846_v8 = vor.u32 %v1845_v56, %v1841_v53  ;;  %v1837_v19 = vrot.slane %v1836_v63, 4  ;;  %836 = vst [vmem:[#allocation2 + $0x40] sm:$0xf] %v4503_v2  ;;  %v1857_v21 = vshll.u32 %v1733_v60, 16  ;;  %v6365_v27 = vrot.slane %v503_v10, 7  ;;  %v6025_v42 = vld [vmem:[%s7291_s1 + $0x28] sm:$0xff]  }
  0x38   : > { %v1818_v18 = vsel %vm6349_vm5, %v1813_v62, %v1817_v46  ;;  %v1828_v25 = vsel %vm6349_vm5, %v1823_v5, %v6316_v15  ;;  %v1863_v24 = vshll.u32 %v1734_v4, 16  ;;  %v1856_v37 = vrot.slane %v1854_v20, 4  ;;  %v1738_v50 = vld [vmem:[#allocation2 + $0x38] sm:$0x1] }
  0x39   : > { %5289 = vmatmul.mubr.bf16.gmra.mrb[4].mxu1 %v6000_v45  ;;  %v1847_v26 = vrot.slane %v1846_v8, 4  ;;  %v6370_v31 = vcombine.low %v1818_v18, %v1828_v25  ;;  %v1842_v32 = vsel %vm6349_vm5, %v1837_v19, %v1841_v53  ;;  %v1859_v15 = vrot.slane %v1857_v21, 5  ;;  %v6008_v19 = vld [vmem:[%s7291_s1 + $0x1d8] sm:$0xff]  }
  0x3a   : > { %5321 = vmatpush3.bf16.msra.mxu1 %v6011_v40  ;;  %v508_v39 = vor.u32 %v506_v9, %v6365_v27  ;;  %v1865_v40 = vrot.slane %v1863_v24, 5  ;;  %v1867_v11 = vshrl.u32 %v1734_v4, 16  ;;  %v1873_v45 = vshll.u32 %v1735_v13, 16 }
  0x3b   : > { %5322 = vmatprep.subr.bf16.mxu1 %v6016_v61  ;;  %7332 = vst [vmem:[#allocation3_spill] sm:$0xff] %v6370_v31  ;;  %v1852_v38 = vsel %vm6349_vm5, %v1847_v26, %v1851_v57  ;;  %5476 = vmatprep.mubr.bf16.mxu0 %v6370_v31  ;;  %v1860_v44 = vor.u32 %v1859_v15, %v1856_v37  ;;  %v1878_v46 = vshrl.u32 %v1736_v14, 16  ;;  %v1881_v51 = vshll.u32 %v1736_v14, 16 }
  0x3c   : > { %v6384_v43 = vcombine.low %v1842_v32, %v1852_v38  ;;  %v619_v47 = vsel %vm6260_vm2, 0, %v508_v39  ;;  %v1869_v48 = vrot.slane %v1867_v11, 4  ;;  %v1887_v52 = vshll.u32 %v1737_v23, 16  ;;  %v6031_v39 = vld [vmem:[%s7291_s1 + $0x38] sm:$0xff]  }
  0x3d   : > { %v4505_v53 = vcombine.low %v619_v47, %v619_v47  ;;  %v4506_v55 = vcombine.high %v619_v47, %v619_v47  ;;  %v1861_v56 = vrot.slane %v1860_v44, 4  ;;  %v1875_v57 = vrot.slane %v1873_v45, 5  ;;  %v1739_v13 = vld [vmem:[#allocation2 + $0x3c] sm:$0xf] }
  0x3e   : > { %7333 = vst [vmem:[#allocation4_spill] sm:$0xff] %v6384_v43  ;;  %5323 = vmatpush3.bf16.msra.mxu1 %v6016_v61  ;;  %5477 = vmatmul.mubr.bf16.vlgmr.msra.gmra.mrb[0].mxu0 %v6384_v43  ;;  %v6004_v59 = vld [vmem:[#allocation2 + $0x3c] sm:$0xff]   ;;  %v1870_v60 = vor.u32 %v1869_v48, %v1865_v40  ;;  %v1880_v62 = vrot.slane %v1878_v46, 4  ;;  %v6392_v61 = vadd.f32 %v6216_v17, %v6342_v41  ;;  %v1883_v2 = vrot.slane %v1881_v51, 5  ;;  %v6029_v41 = vld [vmem:[%s7291_s1 + $0x30] sm:$0xff]  }
  0x3f   : > { %5324 = vmatprep.subr.bf16.mxu1 %v6021_v28  ;;  %5509 = vmatpush3.bf16.msra.mxu0 %v6275_v22  ;;  %v6396_v63 = vadd.f32 %v6216_v17, %v6345_v49  ;;  %838 = vst [vmem:[#allocation2 + $0x48] sm:$0xf] %v4505_v53  ;;  %839 = vst [vmem:[#allocation2 + $0x4c] sm:$0xf] %v4506_v55  ;;  %v1866_v0 = vsel %vm6349_vm5, %v1861_v56, %v1865_v40  ;;  %v6007_v22 = vld [vmem:[%s7291_s1 + $0x1d0] sm:$0xff]   ;;  %v1889_v4 = vrot.slane %v1887_v52, 5 }
  0x40   : > { %5510 = vmatprep.subr.bf16.mxu0 %v6003_v36  ;;  %v1891_v5 = vshrl.u32 %v1737_v23, 16  ;;  %5292 = vmatprep.mubr.bf16.mxu1 %v6004_v59  ;;  %v1871_v49 = vrot.slane %v1870_v60, 4  ;;  %v1897_v8 = vshll.u32 %v1738_v50, 16  ;;  %v424_v10 = vmax.f32 %v6319_v16, 0.0  ;;  %v1740_v37 = vld [vmem:[#allocation2 + $0x40] sm:$0xf] }
  0x41   : > { %v425_v9 = vmax.f32 %v6327_v29, 0.0  ;;  %v1884_v14 = vor.u32 %v1883_v2, %v1880_v62  ;;  %v426_v20 = vmax.f32 %v6330_v30, 0.0  ;;  %v427_v21 = vmax.f32 %v6334_v33, 0.0  ;;  %v6421_v30 = vld [vmem:[%s6195_s18 + $0x50] sm:$0xff]   ;;  %v6012_v46 = vld [vmem:[%s7291_s1 + $0x1e0] sm:$0xff]  }
  0x42   : > { %5325 = vmatpush3.bf16.msra.mxu1 %v6021_v28  ;;  %v1893_v18 = vrot.slane %v1891_v5, 4  ;;  %v1876_v23 = vsel %vm6349_vm5, %v1871_v49, %v1875_v57  ;;  %v1899_v16 = vrot.slane %v1897_v8, 5  ;;  %v634_v29 = vsel %vm6260_vm2, %v6307_v3, 0 }
  0x43   : > { %5326 = vmatprep.subr.bf16.mxu1 %v6025_v42  ;;  %5511 = vmatpush3.bf16.msra.mxu0 %v6003_v36  ;;  %v450_v25 = vpack.c.bf16 %v425_v9, %v424_v10  ;;  %v6418_v26 = vcombine.low %v1866_v0, %v1876_v23  ;;  %v1885_v24 = vrot.slane %v1884_v14, 4  ;;  %v451_v32 = vpack.c.bf16 %v427_v21, %v426_v20  ;;  %v6013_v21 = vld [vmem:[%s7291_s1 + $0x1e8] sm:$0xff]  }
  0x44   : > { %5512 = vmatprep.subr.bf16.mxu0 %v6007_v22  ;;  %v1894_v28 = vor.u32 %v1893_v18, %v1889_v4  ;;  %v4504_v15 = vcombine.low %v634_v29, %v634_v29  ;;  %v1902_v38 = vshrl.u32 %v1739_v13, 16  ;;  %v359_v47 = vmul.f32 %v4916_v34, %v6207_v12  ;;  %v6034_v34 = vld [vmem:[%s7291_s1 + $0x180] sm:$0xff]  }
  0x45   : > { %7334 = vst [vmem:[#allocation5_spill] sm:$0xff] %v6418_v26  ;;  %v510_v33 = vshrl.u32 %v450_v25, 16  ;;  %v513_v36 = vshll.u32 %v450_v25, 16  ;;  %5480 = vmatprep.mubr.bf16.mxu0 %v6418_v26  ;;  %v1890_v3 = vsel %vm6349_vm5, %v1885_v24, %v1889_v4  ;;  %v517_v11 = vshrl.u32 %v451_v32, 16 }
  0x46   : > { %5327 = vmatpush3.bf16.msra.mxu1 %v6025_v42  ;;  %v1895_v40 = vrot.slane %v1894_v28, 4  ;;  %v520_v44 = vshll.u32 %v451_v32, 16  ;;  %v6005_v45 = vld [vmem:[#allocation2 + $0x48] sm:$0xff]   ;;  %837 = vst [vmem:[#allocation2 + $0x44] sm:$0x1] %v4504_v15  ;;  %v360_v48 = vmul.f32 %v4917_v35, %v6207_v12  ;;  %v4920_v50 = vunpack.c.l.bf16 %v6421_v30 }
  0x47   : > { %5328 = vmatprep.subr.bf16.mxu1 %v6029_v41  ;;  %5513 = vmatpush3.bf16.msra.mxu0 %v6007_v22  ;;  %v6429_v42 = vrot.slane %v510_v33, 7  ;;  %v6443_v52 = vrot.slane %v517_v11, 7  ;;  %v1904_v53 = vrot.slane %v1902_v38, 4  ;;  %v1905_v55 = vshll.u32 %v1739_v13, 16  ;;  %v1742_v56 = vld [vmem:[#allocation2 + $0x48] sm:$0xf] }
  0x48   : > { %v1900_v51 = vsel %vm6349_vm5, %v1895_v40, %v1899_v16  ;;  %5514 = vmatprep.subr.bf16.mxu0 %v6008_v19  ;;  %5293 = vmatmul.mubr.bf16.gmra.mrb[8].mxu1 %v6005_v45  ;;  %v1911_v35 = vshll.u32 %v1740_v37, 16  ;;  %v1915_v59 = vshrl.u32 %v1740_v37, 16  ;;  %v1743_v60 = vld [vmem:[#allocation2 + $0x4c] sm:$0xf]  ;;  %v635_v22 = vsel %vm6260_vm2, %v6365_v27, 0 }
  0x49   : > { %v6448_v57 = vcombine.low %v1890_v3, %v1900_v51  ;;  %v515_v6 = vor.u32 %v513_v36, %v6429_v42  ;;  %v522_v62 = vor.u32 %v520_v44, %v6443_v52  ;;  %v1907_v0 = vrot.slane %v1905_v55, 5 }
  0x4a   : > { %5329 = vmatpush3.bf16.msra.mxu1 %v6029_v41  ;;  %v1926_v2 = vshrl.u32 %v1742_v56, 16  ;;  %v1913_v5 = vrot.slane %v1911_v35, 5  ;;  %v1917_v41 = vrot.slane %v1915_v59, 4  ;;  %v4507_v49 = vcombine.low %v635_v22, %v635_v22  ;;  %v6486_v35 = vld [vmem:[%s6195_s18 + $0x58] sm:$0xff]  }
  0x4b   : > { %7335 = vst [vmem:[#allocation6_spill] sm:$0xff] %v6448_v57  ;;  %5330 = vmatprep.subr.bf16.mxu1 %v6031_v39  ;;  %5481 = vmatmul.mubr.bf16.gmra.mrb[4].mxu0 %v6448_v57  ;;  %v620_v4 = vsel %vm6260_vm2, 0, %v515_v6  ;;  %v621_v9 = vsel %vm6260_vm2, 0, %v522_v62  ;;  %v1908_v13 = vor.u32 %v1907_v0, %v1904_v53  ;;  %v1929_v16 = vshll.u32 %v1742_v56, 16  ;;  %v6018_v53 = vld [vmem:[%s7291_s1 + $0x1f8] sm:$0xff]  }
  0x4c   : > { %5515 = vmatpush3.bf16.msra.mxu0 %v6008_v19  ;;  %v4508_v8 = vcombine.low %v620_v4, %v620_v4  ;;  %v4509_v10 = vcombine.high %v620_v4, %v620_v4  ;;  %v4511_v14 = vcombine.low %v621_v9, %v621_v9  ;;  %v4512_v18 = vcombine.high %v621_v9, %v621_v9 }
  0x4d   : > { %v1918_v27 = vor.u32 %v1917_v41, %v1913_v5  ;;  %5516 = vmatprep.subr.bf16.mxu0 %v6012_v46  ;;  %840 = vst [vmem:[#allocation2 + $0x50] sm:$0x1] %v4507_v49  ;;  %v1928_v20 = vrot.slane %v1926_v2, 4  ;;  %v1741_v19 = vld [vmem:[#allocation2 + $0x44] sm:$0x1]  ;;  %v1909_v23 = vrot.slane %v1908_v13, 4  ;;  %v398_v40 = vadd.f32 %v6216_v17, %v359_v47 }
  0x4e   : > { %5331 = vmatpush3.bf16.msra.mxu1 %v6031_v39  ;;  %841 = vst [vmem:[#allocation2 + $0x54] sm:$0xf] %v4508_v8  ;;  %842 = vst [vmem:[#allocation2 + $0x58] sm:$0xf] %v4509_v10  ;;  %v1935_v25 = vshll.u32 %v1743_v60, 16  ;;  %v1939_v29 = vshrl.u32 %v1743_v60, 16  ;;  %v399_v11 = vadd.f32 %v6216_v17, %v360_v48  ;;  %v4921_v0 = vunpack.c.h.bf16 %v6421_v30 }
  0x4f   : > { %5364 = vmatprep.subr.bf16.mxu1 %v6034_v34  ;;  %844 = vst [vmem:[#allocation2 + $0x60] sm:$0xf] %v4511_v14  ;;  %845 = vst [vmem:[#allocation2 + $0x64] sm:$0xf] %v4512_v18  ;;  %v1919_v24 = vrot.slane %v1918_v27, 4  ;;  %v1921_v28 = vshll.u32 %v1741_v19, 16  ;;  %v1914_v33 = vsel %vm6349_vm5, %v1909_v23, %v1913_v5  ;;  %v361_v41 = vmul.f32 %v4920_v50, %v6207_v12 }
  0x50   : > { %v428_v32 = vmax.f32 %v6392_v61, 0.0  ;;  %v429_v37 = vmax.f32 %v6396_v63, 0.0  ;;  %v1931_v36 = vrot.slane %v1929_v16, 5  ;;  %v1937_v15 = vrot.slane %v1935_v25, 5  ;;  %5517 = vmatpush3.bf16.msra.mxu0 %v6012_v46  ;;  %v6017_v61 = vld [vmem:[%s7291_s1 + $0x1f0] sm:$0xff]  }
  0x51   : > { %v1941_v38 = vrot.slane %v1939_v29, 4  ;;  %v1923_v39 = vrot.slane %v1921_v28, 5  ;;  %5518 = vmatprep.subr.bf16.mxu0 %v6013_v21  ;;  %v636_v45 = vsel %vm6260_vm2, %v6429_v42, 0  ;;  %v637_v46 = vsel %vm6260_vm2, %v6443_v52, 0 }
  0x52   : > { %v452_v3 = vpack.c.bf16 %v429_v37, %v428_v32  ;;  %v1932_v63 = vor.u32 %v1931_v36, %v1928_v20  ;;  %v430_v48 = vmax.f32 %v398_v40, 0.0  ;;  %v431_v42 = vmax.f32 %v399_v11, 0.0  ;;  %v6512_v32 = vld [vmem:[%s7291_s1 + $0x80] sm:$0xff]  }
  0x53   : > { %v1942_v44 = vor.u32 %v1941_v38, %v1937_v15  ;;  %v1924_v47 = vsel %vm6349_vm5, %v1919_v24, %v1923_v39  ;;  %v4510_v60 = vcombine.low %v636_v45, %v636_v45  ;;  %v4513_v62 = vcombine.low %v637_v46, %v637_v46 }
  0x54   : > { %v524_v51 = vshrl.u32 %v452_v3, 16  ;;  %v527_v17 = vshll.u32 %v452_v3, 16  ;;  %v6483_v55 = vcombine.low %v1914_v33, %v1924_v47  ;;  %v1744_v56 = vld [vmem:[#allocation2 + $0x50] sm:$0x1]  ;;  %v1933_v34 = vrot.slane %v1932_v63, 4  ;;  %5519 = vmatpush3.bf16.msra.mxu0 %v6013_v21 }
  0x55   : > { %v1943_v6 = vrot.slane %v1942_v44, 4  ;;  %v6009_v52 = vld [vmem:[#allocation2 + $0x54] sm:$0xff]   ;;  %v1945_v59 = vshll.u32 %v1744_v56, 16  ;;  %5520 = vmatprep.subr.bf16.mxu0 %v6017_v61  ;;  %v453_v5 = vpack.c.bf16 %v431_v42, %v430_v48  ;;  %843 = vst [vmem:[#allocation2 + $0x5c] sm:$0x1] %v4510_v60  ;;  %v362_v9 = vmul.f32 %v4921_v0, %v6207_v12  ;;  %v5033_v0 = vld [vmem:[%s6195_s18 + $0x60] sm:$0xff]  }
  0x56   : > { %7336 = vst [vmem:[#allocation7_spill] sm:$0xff] %v6483_v55  ;;  %v6010_v22 = vld [vmem:[#allocation2 + $0x60] sm:$0xff]   ;;  %5484 = vmatprep.mubr.bf16.mxu0 %v6483_v55  ;;  %v1938_v2 = vsel %vm6349_vm5, %v1933_v34, %v1937_v15  ;;  %v6492_v4 = vrot.slane %v524_v51, 7  ;;  %5296 = vmatprep.mubr.bf16.mxu1 %v6009_v52  ;;  %v1745_v8 = vld [vmem:[#allocation2 + $0x54] sm:$0xf]  ;;  %v4924_v13 = vunpack.c.l.bf16 %v6486_v35  ;;  %v4925_v14 = vunpack.c.h.bf16 %v6486_v35 }
  0x57   : > { %v1947_v49 = vrot.slane %v1945_v59, 5  ;;  %v1746_v10 = vld [vmem:[#allocation2 + $0x58] sm:$0xf]  ;;  %846 = vst [vmem:[#allocation2 + $0x68] sm:$0x1] %v4513_v62  ;;  %5297 = vmatmul.mubr.bf16.gmra.mrb[12].mxu1 %v6010_v22  ;;  %v531_v27 = vshrl.u32 %v453_v5, 16 }
  0x58   : > { %v529_v18 = vor.u32 %v527_v17, %v6492_v4  ;;  %v534_v20 = vshll.u32 %v453_v5, 16  ;;  %v1950_v21 = vshrl.u32 %v1745_v8, 16  ;;  %5521 = vmatpush3.bf16.msra.mxu0 %v6017_v61  ;;  %v1953_v50 = vshll.u32 %v1745_v8, 16  ;;  %v1748_v16 = vld [vmem:[#allocation2 + $0x60] sm:$0xf] }
  0x59   : > { %v1948_v30 = vsel %vm6349_vm5, %v1943_v6, %v1947_v49  ;;  %v1959_v19 = vshll.u32 %v1746_v10, 16  ;;  %v1963_v23 = vshrl.u32 %v1746_v10, 16  ;;  %5522 = vmatprep.subr.bf16.mxu0 %v6018_v53  ;;  %v6507_v29 = vrot.slane %v531_v27, 7  ;;  %v1749_v28 = vld [vmem:[#allocation2 + $0x64] sm:$0xf] }
  0x5a   : > { %v6503_v12 = vcombine.low %v1938_v2, %v1948_v30  ;;  %v622_v25 = vsel %vm6260_vm2, 0, %v529_v18  ;;  %v1952_v24 = vrot.slane %v1950_v21, 4  ;;  %v1955_v36 = vrot.slane %v1953_v50, 5  ;;  %v6519_v44 = vld [vmem:[%s7293_s3] ss:$0 sm:$0xff] }
  0x5b   : > { %v4514_v37 = vcombine.low %v622_v25, %v622_v25  ;;  %v4515_v33 = vcombine.high %v622_v25, %v622_v25  ;;  %v1961_v15 = vrot.slane %v1959_v19, 5  ;;  %v536_v38 = vor.u32 %v534_v20, %v6507_v29 }
  0x5c   : > { %7337 = vst [vmem:[#allocation8_spill] sm:$0xff] %v6503_v12  ;;  %5485 = vmatmul.mubr.bf16.gmra.mrb[8].mxu0 %v6503_v12  ;;  %v1965_v39 = vrot.slane %v1963_v23, 4  ;;  %v1974_v3 = vshrl.u32 %v1748_v16, 16  ;;  %v1977_v40 = vshll.u32 %v1748_v16, 16  ;;  %v1956_v11 = vor.u32 %v1955_v36, %v1952_v24  ;;  %v1747_v47 = vld [vmem:[#allocation2 + $0x5c] sm:$0x1] }
  0x5d   : > { %847 = vst [vmem:[#allocation2 + $0x6c] sm:$0xf] %v4514_v37  ;;  %848 = vst [vmem:[#allocation2 + $0x70] sm:$0xf] %v4515_v33  ;;  %v1983_v61 = vshll.u32 %v1749_v28, 16  ;;  %v1987_v63 = vshrl.u32 %v1749_v28, 16  ;;  %5523 = vmatpush3.bf16.msra.mxu0 %v6018_v53  ;;  %v400_v45 = vadd.f32 %v6519_v44, %v361_v41  ;;  %v401_v56 = vadd.f32 %v6519_v44, %v362_v9 }
  0x5e   : > { %v623_v46 = vsel %vm6260_vm2, 0, %v536_v38  ;;  %v1966_v51 = vor.u32 %v1965_v39, %v1961_v15  ;;  %v1750_v17 = vld [vmem:[#allocation2 + $0x68] sm:$0x1]  ;;  %v1976_v48 = vrot.slane %v1974_v3, 4  ;;  %5556 = vmatprep.subr.bf16.mxu0 %v6512_v32  ;;  %v1957_v6 = vrot.slane %v1956_v11, 4  ;;  %v5035_v38 = vld [vmem:[%s6195_s18 + $0x70] sm:$0xff]  }
  0x5f   : > { %v4517_v53 = vcombine.low %v623_v46, %v623_v46  ;;  %v4518_v34 = vcombine.high %v623_v46, %v623_v46  ;;  %v1969_v42 = vshll.u32 %v1747_v47, 16  ;;  %v1979_v59 = vrot.slane %v1977_v40, 5  ;;  %v6532_v9 = vld [vmem:[%s7292_s2] ss:$0 sm:$0xff]  ;;  %v5034_v33 = vld [vmem:[%s6195_s18 + $0x68] sm:$0xff]  }
  0x60   : > { %v1967_v52 = vrot.slane %v1966_v51, 4  ;;  %v1985_v60 = vrot.slane %v1983_v61, 5  ;;  %v1989_v62 = vrot.slane %v1987_v63, 4  ;;  %v1962_v22 = vsel %vm6349_vm5, %v1957_v6, %v1961_v15 }
  0x61   : > { %850 = vst [vmem:[#allocation2 + $0x78] sm:$0xf] %v4517_v53  ;;  %851 = vst [vmem:[#allocation2 + $0x7c] sm:$0xf] %v4518_v34  ;;  %v1971_v2 = vrot.slane %v1969_v42, 5  ;;  %v1993_v5 = vshll.u32 %v1750_v17, 16  ;;  %v1980_v49 = vor.u32 %v1979_v59, %v1976_v48  ;;  %v363_v18 = vmul.f32 %v6532_v9, %v4924_v13 }
  0x62   : > { %v432_v41 = vmax.f32 %v400_v45, 0.0  ;;  %v1990_v8 = vor.u32 %v1989_v62, %v1985_v60  ;;  %v433_v10 = vmax.f32 %v401_v56, 0.0  ;;  %v364_v21 = vmul.f32 %v6532_v9, %v4925_v14 }
  0x63   : > { %v1972_v27 = vsel %vm6349_vm5, %v1967_v52, %v1971_v2  ;;  %v1995_v20 = vrot.slane %v1993_v5, 5  ;;  %v4928_v30 = vunpack.c.l.bf16 %v5033_v0  ;;  %v1981_v23 = vrot.slane %v1980_v49, 4 }
  0x64   : > { %v6014_v50 = vld [vmem:[#allocation2 + $0x6c] sm:$0xff]   ;;  %v6542_v19 = vcombine.low %v1962_v22, %v1972_v27  ;;  %v454_v16 = vpack.c.bf16 %v433_v10, %v432_v41  ;;  %v402_v25 = vadd.f32 %v6519_v44, %v363_v18  ;;  %v1991_v24 = vrot.slane %v1990_v8, 4  ;;  %v5036_v41 = vld [vmem:[%s6195_s18 + $0x78] sm:$0xff]  }
  0x65   : > { %v403_v13 = vadd.f32 %v6519_v44, %v364_v21  ;;  %v4929_v28 = vunpack.c.h.bf16 %v5033_v0  ;;  %v365_v37 = vmul.f32 %v6532_v9, %v4928_v30  ;;  %5300 = vmatprep.mubr.bf16.mxu1 %v6014_v50  ;;  %v1986_v35 = vsel %vm6349_vm5, %v1981_v23, %v1985_v60  ;;  %v6026_v21 = vld [vmem:[%s7291_s1 + $0x88] sm:$0xff]  }
  0x66   : > { %7338 = vst [vmem:[#allocation9_spill] sm:$0xff] %v6542_v19  ;;  %5488 = vmatprep.mubr.bf16.mxu0 %v6542_v19  ;;  %v538_v14 = vshrl.u32 %v454_v16, 16  ;;  %v541_v36 = vshll.u32 %v454_v16, 16  ;;  %v434_v15 = vmax.f32 %v402_v25, 0.0  ;;  %v1996_v39 = vsel %vm6349_vm5, %v1991_v24, %v1995_v20 }
  0x67   : > { %v435_v3 = vmax.f32 %v403_v13, 0.0  ;;  %v366_v40 = vmul.f32 %v6532_v9, %v4929_v28  ;;  %v404_v11 = vadd.f32 %v6519_v44, %v365_v37  ;;  %v6556_v63 = vcombine.low %v1986_v35, %v1996_v39  ;;  %v1751_v35 = vld [vmem:[#allocation2 + $0x6c] sm:$0xf] }
  0x68   : > { %v6015_v61 = vld [vmem:[#allocation2 + $0x78] sm:$0xff]   ;;  %v6558_v45 = vrot.slane %v538_v14, 7  ;;  %v4932_v46 = vunpack.c.l.bf16 %v5034_v33  ;;  %v4933_v47 = vunpack.c.h.bf16 %v5034_v33  ;;  %v4936_v56 = vunpack.c.l.bf16 %v5035_v38 }
  0x69   : > { %7339 = vst [vmem:[#allocation10_spill] sm:$0xff] %v6556_v63  ;;  %v455_v51 = vpack.c.bf16 %v435_v3, %v434_v15  ;;  %v405_v17 = vadd.f32 %v6519_v44, %v366_v40  ;;  %v436_v48 = vmax.f32 %v404_v11, 0.0  ;;  %5301 = vmatmul.mubr.bf16.gmra.mrb[16].mxu1 %v6015_v61  ;;  %5489 = vmatmul.mubr.bf16.gmra.mrb[12].mxu0 %v6556_v63  ;;  %v4937_v42 = vunpack.c.h.bf16 %v5035_v38 }
  0x6a   : > { %v543_v53 = vor.u32 %v541_v36, %v6558_v45  ;;  %v367_v34 = vmul.f32 %v6532_v9, %v4932_v46  ;;  %v368_v6 = vmul.f32 %v6532_v9, %v4933_v47  ;;  %5524 = vmatprep.mubr.bf16.mxu0 %v6384_v43  ;;  %v369_v62 = vmul.f32 %v6532_v9, %v4936_v56 }
  0x6b   : > { %v545_v52 = vshrl.u32 %v455_v51, 16  ;;  %v548_v59 = vshll.u32 %v455_v51, 16  ;;  %v437_v60 = vmax.f32 %v405_v17, 0.0  ;;  %v370_v5 = vmul.f32 %v6532_v9, %v4937_v42  ;;  %v6030_v51 = vld [vmem:[%s7291_s1 + $0x90] sm:$0xff]  }
  0x6c   : > { %v624_v0 = vsel %vm6260_vm2, 0, %v543_v53  ;;  %v406_v22 = vadd.f32 %v6519_v44, %v367_v34  ;;  %v407_v2 = vadd.f32 %v6519_v44, %v368_v6  ;;  %v408_v30 = vadd.f32 %v6519_v44, %v369_v62 }
  0x6d   : > { %v4520_v49 = vcombine.low %v624_v0, %v624_v0  ;;  %v4521_v8 = vcombine.high %v624_v0, %v624_v0  ;;  %v6573_v10 = vrot.slane %v545_v52, 7  ;;  %v456_v18 = vpack.c.bf16 %v437_v60, %v436_v48 }
  0x6e   : > { %v438_v27 = vmax.f32 %v406_v22, 0.0  ;;  %v439_v20 = vmax.f32 %v407_v2, 0.0  ;;  %v409_v50 = vadd.f32 %v6519_v44, %v370_v5  ;;  %v4940_v24 = vunpack.c.l.bf16 %v5036_v41 }
  0x6f   : > { %853 = vst [vmem:[#allocation2 + $0x84] sm:$0xf] %v4520_v49  ;;  %854 = vst [vmem:[#allocation2 + $0x88] sm:$0xf] %v4521_v8  ;;  %v550_v23 = vor.u32 %v548_v59, %v6573_v10  ;;  %v552_v16 = vshrl.u32 %v456_v18, 16  ;;  %v555_v25 = vshll.u32 %v456_v18, 16  ;;  %v4941_v33 = vunpack.c.h.bf16 %v5036_v41 }
  0x70   : > { %v457_v13 = vpack.c.bf16 %v439_v20, %v438_v27  ;;  %v440_v28 = vmax.f32 %v408_v30, 0.0  ;;  %v441_v37 = vmax.f32 %v409_v50, 0.0  ;;  %v371_v15 = vmul.f32 %v6532_v9, %v4940_v24  ;;  %v6033_v49 = vld [vmem:[%s7291_s1 + $0x98] sm:$0xff]  }
  0x71   : > { %v625_v14 = vsel %vm6260_vm2, 0, %v550_v23  ;;  %v6583_v36 = vrot.slane %v552_v16, 7  ;;  %v638_v38 = vsel %vm6260_vm2, %v6492_v4, 0  ;;  %5525 = vmatmul.mubr.bf16.vlgmr.msra.gmra.mrb[0].mxu0 %v6418_v26  ;;  %v372_v47 = vmul.f32 %v6532_v9, %v4941_v33  ;;  %v6597_v4 = vld [vmem:[#allocation2 + $0x70] sm:$0xf] }
  0x72   : > { %v4523_v39 = vcombine.low %v625_v14, %v625_v14  ;;  %v4524_v3 = vcombine.high %v625_v14, %v625_v14  ;;  %v559_v40 = vshrl.u32 %v457_v13, 16  ;;  %v562_v11 = vshll.u32 %v457_v13, 16  ;;  %5557 = vmatpush3.bf16.msra.mxu0 %v6512_v32  ;;  %5528 = vmatprep.mubr.bf16.mxu0 %v6448_v57  ;;  %v1754_v23 = vld [vmem:[#allocation2 + $0x78] sm:$0xf]  ;;  %v3064_v57 = vld [vmem:[#allocation2 + $0x3c] sm:$0xe] }
  0x73   : > { %v557_v61 = vor.u32 %v555_v25, %v6583_v36  ;;  %v458_v46 = vpack.c.bf16 %v441_v37, %v440_v28  ;;  %v1998_v17 = vshrl.u32 %v1751_v35, 16  ;;  %5558 = vmatprep.subr.bf16.mxu0 %v6026_v21  ;;  %v410_v32 = vadd.f32 %v6519_v44, %v371_v15  ;;  %v6625_v28 = vld [vmem:[#allocation2 + $0x7c] sm:$0xf]  ;;  %v6091_v26 = vld [vmem:[#allocation2 + $0x4c] sm:$0xf] }
  0x74   : > { %856 = vst [vmem:[#allocation2 + $0x90] sm:$0xf] %v4523_v39  ;;  %857 = vst [vmem:[#allocation2 + $0x94] sm:$0xf] %v4524_v3  ;;  %v6599_v48 = vrot.slane %v559_v40, 7  ;;  %v4516_v56 = vcombine.low %v638_v38, %v638_v38  ;;  %v2001_v53 = vshll.u32 %v1751_v35, 16  ;;  %v411_v42 = vadd.f32 %v6519_v44, %v372_v47 }
  0x75   : > { %v626_v34 = vsel %vm6260_vm2, 0, %v557_v61  ;;  %v566_v9 = vshrl.u32 %v458_v46, 16  ;;  %v569_v6 = vshll.u32 %v458_v46, 16  ;;  %v442_v0 = vmax.f32 %v410_v32, 0.0  ;;  %v6035_v38 = vld [vmem:[%s7291_s1 + $0xa0] sm:$0xff]  }
  0x76   : > { %v6605_v52 = vld [vmem:[#allocation2 + $0x84] sm:$0xff]   ;;  %v4526_v59 = vcombine.low %v626_v34, %v626_v34  ;;  %v4527_v60 = vcombine.high %v626_v34, %v626_v34  ;;  %v564_v62 = vor.u32 %v562_v11, %v6599_v48  ;;  %849 = vst [vmem:[#allocation2 + $0x74] sm:$0x1] %v4516_v56  ;;  %5559 = vmatpush3.bf16.msra.mxu0 %v6026_v21  ;;  %v443_v2 = vmax.f32 %v411_v42, 0.0 }
  0x77   : > { %v6608_v22 = vrot.slane %v566_v9, 7  ;;  %v2000_v5 = vrot.slane %v1998_v17, 4  ;;  %v2003_v41 = vrot.slane %v2001_v53, 5  ;;  %5304 = vmatprep.mubr.bf16.mxu1 %v6605_v52  ;;  %5560 = vmatprep.subr.bf16.mxu0 %v6030_v51  ;;  %v2007_v8 = vshll.u32 %v6597_v4, 16  ;;  %v1757_v32 = vld [vmem:[#allocation2 + $0x84] sm:$0xf] }
  0x78   : > { %859 = vst [vmem:[#allocation2 + $0x9c] sm:$0xf] %v4526_v59  ;;  %860 = vst [vmem:[#allocation2 + $0xa0] sm:$0xf] %v4527_v60  ;;  %v627_v44 = vsel %vm6260_vm2, 0, %v564_v62  ;;  %v2011_v18 = vshrl.u32 %v6597_v4, 16  ;;  %v459_v50 = vpack.c.bf16 %v443_v2, %v442_v0 }
  0x79   : > { %v639_v27 = vsel %vm6260_vm2, %v6507_v29, 0  ;;  %v4529_v20 = vcombine.low %v627_v44, %v627_v44  ;;  %v4530_v21 = vcombine.high %v627_v44, %v627_v44  ;;  %v571_v30 = vor.u32 %v569_v6, %v6608_v22  ;;  %5529 = vmatmul.mubr.bf16.gmra.mrb[4].mxu0 %v6483_v55 }
  0x7a   : > { %v2004_v16 = vor.u32 %v2003_v41, %v2000_v5  ;;  %v6623_v25 = vrot.slane %v2007_v8, 5  ;;  %v2013_v24 = vrot.slane %v2011_v18, 4  ;;  %v4519_v13 = vcombine.low %v639_v27, %v639_v27  ;;  %5532 = vmatprep.mubr.bf16.mxu0 %v6503_v12  ;;  %5561 = vmatpush3.bf16.msra.mxu0 %v6030_v51  ;;  %v6037_v5 = vld [vmem:[%s7291_s1 + $0xa8] sm:$0xff]   ;;  %v6664_v27 = vld [vmem:[#allocation2 + $0x10] sm:$0xf] }
  0x7b   : > { %v6627_v37 = vld [vmem:[#allocation2 + $0x90] sm:$0xff]   ;;  %862 = vst [vmem:[#allocation2 + $0xa8] sm:$0xf] %v4529_v20  ;;  %863 = vst [vmem:[#allocation2 + $0xac] sm:$0xf] %v4530_v21  ;;  %v628_v29 = vsel %vm6260_vm2, 0, %v571_v30  ;;  %5562 = vmatprep.subr.bf16.mxu0 %v6033_v49 }
  0x7c   : > { %v4532_v33 = vcombine.low %v628_v29, %v628_v29  ;;  %v4533_v35 = vcombine.high %v628_v29, %v628_v29  ;;  %v573_v14 = vshrl.u32 %v459_v50, 16  ;;  %v576_v15 = vshll.u32 %v459_v50, 16  ;;  %852 = vst [vmem:[#allocation2 + $0x80] sm:$0x1] %v4519_v13  ;;  %5305 = vmatmul.mubr.bf16.gmra.mrb[20].mxu1 %v6627_v37 }
  0x7d   : > { %v6636_v39 = vld [vmem:[#allocation2 + $0x74] sm:$0x1]  ;;  %v2005_v3 = vrot.slane %v2004_v16, 4  ;;  %v2014_v40 = vor.u32 %v2013_v24, %v6623_v25  ;;  %v2022_v11 = vshrl.u32 %v1754_v23, 16  ;;  %v2025_v61 = vshll.u32 %v1754_v23, 16 }
  0x7e   : > { %865 = vst [vmem:[#allocation2 + $0xb4] sm:$0xf] %v4532_v33  ;;  %866 = vst [vmem:[#allocation2 + $0xb8] sm:$0xf] %v4533_v35  ;;  %v6639_v46 = vrot.slane %v573_v14, 7  ;;  %v2017_v47 = vshll.u32 %v6636_v39, 16  ;;  %5563 = vmatpush3.bf16.msra.mxu0 %v6033_v49 }
  0x7f   : > { %v2031_v51 = vshll.u32 %v6625_v28, 16  ;;  %v2035_v17 = vshrl.u32 %v6625_v28, 16  ;;  %v6644_v56 = vld [vmem:[#allocation2 + $0x9c] sm:$0xff]   ;;  %v2010_v53 = vsel %vm6349_vm5, %v2005_v3, %v6623_v25  ;;  %v2015_v34 = vrot.slane %v2014_v40, 4  ;;  %5564 = vmatprep.subr.bf16.mxu0 %v6035_v38  ;;  %v6670_v23 = vld [vmem:[#allocation2 + $0x88] sm:$0xf] }
  0x80   : > { %v578_v9 = vor.u32 %v576_v15, %v6639_v46  ;;  %v2019_v6 = vrot.slane %v2017_v47, 5  ;;  %v2024_v42 = vrot.slane %v2022_v11, 4  ;;  %v2027_v59 = vrot.slane %v2025_v61, 5  ;;  %5308 = vmatprep.mubr.bf16.mxu1 %v6644_v56  ;;  %v6039_v16 = vld [vmem:[%s7291_s1 + $0xb0] sm:$0xff]  }
  0x81   : > { %v2033_v60 = vrot.slane %v2031_v51, 5  ;;  %v2037_v62 = vrot.slane %v2035_v17, 4  ;;  %v640_v0 = vsel %vm6260_vm2, %v6558_v45, 0  ;;  %v2046_v2 = vshrl.u32 %v1757_v32, 16  ;;  %5533 = vmatmul.mubr.bf16.gmra.mrb[8].mxu0 %v6542_v19  ;;  %v1760_v33 = vld [vmem:[#allocation2 + $0x90] sm:$0xf] }
  0x82   : > { %v6657_v41 = vld [vmem:[#allocation2 + $0xa8] sm:$0xff]   ;;  %v629_v44 = vsel %vm6260_vm2, 0, %v578_v9  ;;  %v2020_v49 = vsel %vm6349_vm5, %v2015_v34, %v2019_v6  ;;  %v2028_v8 = vor.u32 %v2027_v59, %v2024_v42  ;;  %v4522_v18 = vcombine.low %v640_v0, %v640_v0  ;;  %5536 = vmatprep.mubr.bf16.mxu0 %v6556_v63  ;;  %5565 = vmatpush3.bf16.msra.mxu0 %v6035_v38  ;;  %v6689_v51 = vld [vmem:[#allocation2 + $0x94] sm:$0xf]  ;;  %v1763_v42 = vld [vmem:[#allocation2 + $0x9c] sm:$0xf] }
  0x83   : > { %v4535_v20 = vcombine.low %v629_v44, %v629_v44  ;;  %v4536_v21 = vcombine.high %v629_v44, %v629_v44  ;;  %v6668_v30 = vld [vmem:[#allocation2 + $0x80] sm:$0x1]  ;;  %v2038_v50 = vor.u32 %v2037_v62, %v2033_v60  ;;  %v2048_v13 = vrot.slane %v2046_v2, 4  ;;  %5566 = vmatprep.subr.bf16.mxu0 %v6037_v5  ;;  %v6081_v19 = vld [vmem:[#allocation2 + $0x1c] sm:$0xf] }
  0x84   : > { %v2029_v25 = vrot.slane %v2028_v8, 4  ;;  %v2041_v24 = vshll.u32 %v6668_v30, 16  ;;  %855 = vst [vmem:[#allocation2 + $0x8c] sm:$0x1] %v4522_v18  ;;  %v2049_v29 = vshll.u32 %v1757_v32, 16  ;;  %5309 = vmatmul.mubr.bf16.gmra.mrb[24].mxu1 %v6657_v41  ;;  %v6679_v14 = vcombine.low %v2010_v53, %v2020_v49  ;;  %v6032_v59 = vld [vmem:[#allocation2] sm:$0xff]  }
  0x85   : > { %v6677_v35 = vld [vmem:[#allocation2 + $0xb4] sm:$0xff]   ;;  %868 = vst [vmem:[#allocation2 + $0xc0] sm:$0xf] %v4535_v20  ;;  %869 = vst [vmem:[#allocation2 + $0xc4] sm:$0xf] %v4536_v21  ;;  %v2039_v15 = vrot.slane %v2038_v50, 4 }
  0x86   : > { %7340 = vst [vmem:[#allocation11_spill] sm:$0xff] %v6679_v14  ;;  %v2034_v3 = vsel %vm6349_vm5, %v2029_v25, %v2033_v60  ;;  %v2043_v40 = vrot.slane %v2041_v24, 5  ;;  %v2051_v11 = vrot.slane %v2049_v29, 5  ;;  %v2055_v61 = vshll.u32 %v6670_v23, 16  ;;  %5312 = vmatprep.mubr.bf16.mxu1 %v6677_v35  ;;  %5567 = vmatpush3.bf16.msra.mxu0 %v6037_v5  ;;  %v6695_v44 = vld [vmem:[#allocation2 + $0xa0] sm:$0xf] }
  0x87   : > { %v2059_v38 = vshrl.u32 %v6670_v23, 16  ;;  %v641_v47 = vsel %vm6260_vm2, %v6573_v10, 0  ;;  %v2070_v17 = vshrl.u32 %v1760_v33, 16  ;;  %v2073_v32 = vshll.u32 %v1760_v33, 16  ;;  %5568 = vmatprep.subr.bf16.mxu0 %v6039_v16  ;;  %v6041_v10 = vld [vmem:[%s7291_s1 + $0xb8] sm:$0xff]  }
  0x88   : > { %v2044_v53 = vsel %vm6349_vm5, %v2039_v15, %v2043_v40  ;;  %v2052_v34 = vor.u32 %v2051_v11, %v2048_v13  ;;  %v2057_v9 = vrot.slane %v2055_v61, 5  ;;  %v4525_v6 = vcombine.low %v641_v47, %v641_v47  ;;  %v6712_v13 = vld [vmem:[%s7291_s1 + $0x140] sm:$0xff]   ;;  %v1766_v61 = vld [vmem:[#allocation2 + $0xa8] sm:$0xf] }
  0x89   : > { %v6693_v60 = vcombine.low %v2034_v3, %v2044_v53  ;;  %v2061_v62 = vrot.slane %v2059_v38, 4  ;;  %v2072_v0 = vrot.slane %v2070_v17, 4  ;;  %v2075_v2 = vrot.slane %v2073_v32, 5  ;;  %5537 = vmatmul.mubr.bf16.gmra.mrb[12].mxu0 %v6679_v14  ;;  %v6723_v53 = vld [vmem:[#allocation2 + $0xac] sm:$0xf] }
  0x8a   : > { %v2053_v49 = vrot.slane %v2052_v34, 4  ;;  %858 = vst [vmem:[#allocation2 + $0x98] sm:$0x1] %v4525_v6  ;;  %v2079_v8 = vshll.u32 %v6689_v51, 16  ;;  %v2083_v5 = vshrl.u32 %v6689_v51, 16  ;;  %v642_v18 = vsel %vm6260_vm2, %v6583_v36, 0  ;;  %5569 = vmatpush3.bf16.msra.mxu0 %v6039_v16 }
  0x8b   : > { %7341 = vst [vmem:[#allocation12_spill] sm:$0xff] %v6693_v60  ;;  %5540 = vmatprep.mubr.bf16.mxu0 %v6693_v60  ;;  %v6707_v20 = vld [vmem:[#allocation2 + $0x8c] sm:$0x1]  ;;  %v2062_v21 = vor.u32 %v2061_v62, %v2057_v9  ;;  %v2076_v50 = vor.u32 %v2075_v2, %v2072_v0  ;;  %v4528_v25 = vcombine.low %v642_v18, %v642_v18  ;;  %v2094_v24 = vshrl.u32 %v1763_v42, 16 }
  0x8c   : > { %v6714_v29 = vld [vmem:[#allocation2 + $0xc0] sm:$0xff]   ;;  %v2058_v33 = vsel %vm6349_vm5, %v2053_v49, %v2057_v9  ;;  %v2065_v36 = vshll.u32 %v6707_v20, 16  ;;  %v2081_v40 = vrot.slane %v2079_v8, 5  ;;  %v2085_v11 = vrot.slane %v2083_v5, 4  ;;  %5570 = vmatprep.subr.bf16.mxu0 %v6041_v10 }
  0x8d   : > { %7342 = vst [vmem:[#allocation13_spill] sm:$0xff] %v6714_v29  ;;  %v2063_v15 = vrot.slane %v2062_v21, 4  ;;  %v6719_v3 = vrot.slane %v2076_v50, 4  ;;  %861 = vst [vmem:[#allocation2 + $0xa4] sm:$0x1] %v4528_v25  ;;  %5313 = vmatmul.mubr.bf16.gmra.mrb[28].mxu1 %v6714_v29  ;;  %v2096_v47 = vrot.slane %v2094_v24, 4 }
  0x8e   : > { %v2067_v38 = vrot.slane %v2065_v36, 5  ;;  %v2097_v17 = vshll.u32 %v1763_v42, 16  ;;  %v2103_v32 = vshll.u32 %v6695_v44, 16  ;;  %5332 = vmatprep.mubr.bf16.mxu1 %v6032_v59  ;;  %v2086_v34 = vor.u32 %v2085_v11, %v2081_v40  ;;  %5571 = vmatpush3.bf16.msra.mxu0 %v6041_v10  ;;  %v1769_v21 = vld [vmem:[#allocation2 + $0xb4] sm:$0xf]  ;;  %v6036_v10 = vld [vmem:[%s7291_s1 + $0x188] sm:$0xff]  }
  0x8f   : > { %v2082_v16 = vsel %vm6349_vm5, %v6719_v3, %v2081_v40  ;;  %v2107_v9 = vshrl.u32 %v6695_v44, 16  ;;  %v643_v6 = vsel %vm6260_vm2, %v6599_v48, 0  ;;  %v2118_v18 = vshrl.u32 %v1766_v61, 16  ;;  %5604 = vmatprep.subr.bf16.mxu0 %v6712_v13  ;;  %v6749_v40 = vld [vmem:[#allocation2 + $0xb8] sm:$0xf] }
  0x90   : > { %v2068_v62 = vsel %vm6349_vm5, %v2063_v15, %v2067_v38  ;;  %v2099_v42 = vrot.slane %v2097_v17, 5  ;;  %v2105_v0 = vrot.slane %v2103_v32, 5  ;;  %v4531_v2 = vcombine.low %v643_v6, %v643_v6  ;;  %v3072_v29 = vld [vmem:[#allocation2 + $0x9c] sm:$0xe] }
  0x91   : > { %v6734_v49 = vcombine.low %v2058_v33, %v2068_v62  ;;  %v6736_v59 = vld [vmem:[#allocation2 + $0x98] sm:$0x1]  ;;  %v2087_v8 = vrot.slane %v2086_v34, 4  ;;  %v2109_v5 = vrot.slane %v2107_v9, 4  ;;  %v2121_v25 = vshll.u32 %v1766_v61, 16  ;;  %v6074_v62 = vld [vmem:[#allocation2 + $0xc] sm:$0xff]  }
  0x92   : > { %v2089_v50 = vshll.u32 %v6736_v59, 16  ;;  %v2100_v48 = vor.u32 %v2099_v42, %v2096_v47  ;;  %864 = vst [vmem:[#allocation2 + $0xb0] sm:$0x1] %v4531_v2  ;;  %v2127_v24 = vshll.u32 %v6723_v53, 16  ;;  %v2120_v36 = vrot.slane %v2118_v18, 4  ;;  %v6038_v2 = vld [vmem:[%s7291_s1 + $0x190] sm:$0xff]  }
  0x93   : > { %7343 = vst [vmem:[#allocation14_spill] sm:$0xff] %v6734_v49  ;;  %5541 = vmatmul.mubr.bf16.gmra.mrb[16].mxu0 %v6734_v49  ;;  %v2110_v33 = vor.u32 %v2109_v5, %v2105_v0  ;;  %v2131_v15 = vshrl.u32 %v6723_v53, 16  ;;  %v644_v3 = vsel %vm6260_vm2, %v6608_v22, 0  ;;  %v2123_v47 = vrot.slane %v2121_v25, 5  ;;  %v6076_v25 = vld [vmem:[%s7291_s1 + $0x180] sm:$0xff]  }
  0x94   : > { %v2091_v11 = vrot.slane %v2089_v50, 5  ;;  %v6751_v61 = vld [vmem:[#allocation2 + $0xa4] sm:$0x1]  ;;  %v2101_v38 = vrot.slane %v2100_v48, 4  ;;  %v6753_v17 = vrot.slane %v2127_v24, 5  ;;  %v4534_v6 = vcombine.low %v644_v3, %v644_v3  ;;  %v6763_v48 = vld [vmem:[#allocation2 + $0x18] sm:$0xff]  }
  0x95   : > { %v2111_v32 = vrot.slane %v2110_v33, 4  ;;  %v2113_v34 = vshll.u32 %v6751_v61, 16  ;;  %v2133_v9 = vrot.slane %v2131_v15, 4  ;;  %5333 = vmatmul.mubr.bf16.vlgmr.msra.gmra.mrb[0].mxu1 %v6074_v62  ;;  %v2124_v5 = vor.u32 %v2123_v47, %v2120_v36  ;;  %v1772_v50 = vld [vmem:[#allocation2 + $0xc0] sm:$0xf] }
  0x96   : > { %v2092_v42 = vsel %vm6349_vm5, %v2087_v8, %v2091_v11  ;;  %v2106_v22 = vsel %vm6349_vm5, %v2101_v38, %v2105_v0  ;;  %v2142_v18 = vshrl.u32 %v1769_v21, 16  ;;  %5336 = vmatprep.mubr.bf16.mxu1 %v6763_v48  ;;  %5365 = vmatpush3.bf16.msra.mxu1 %v6076_v25  ;;  %867 = vst [vmem:[#allocation2 + $0xbc] sm:$0x1] %v4534_v6  ;;  %v2145_v33 = vshll.u32 %v1769_v21, 16  ;;  %v6772_v15 = vld [vmem:[#allocation2 + $0xc4] sm:$0xf] }
  0x97   : > { %v6769_v8 = vcombine.low %v2082_v16, %v2092_v42  ;;  %v2115_v24 = vrot.slane %v2113_v34, 5  ;;  %v2134_v0 = vor.u32 %v2133_v9, %v6753_v17  ;;  %5366 = vmatprep.subr.bf16.mxu1 %v6036_v10  ;;  %v2125_v36 = vrot.slane %v2124_v5, 4  ;;  %v1775_v47 = vld [vmem:[#allocation2 + $0xcc] sm:$0xf]  ;;  %v3059_v49 = vld [vmem:[#allocation2] sm:$0xe] }
  0x98   : > { %v2144_v3 = vrot.slane %v2142_v18, 4  ;;  %v2151_v11 = vshll.u32 %v6749_v40, 16  ;;  %v2155_v38 = vshrl.u32 %v6749_v40, 16  ;;  %v2147_v6 = vrot.slane %v2145_v33, 5 }
  0x99   : > { %7344 = vst [vmem:[#allocation15_spill] sm:$0xff] %v6769_v8  ;;  %5544 = vmatprep.mubr.bf16.mxu0 %v6769_v8  ;;  %v2116_v16 = vsel %vm6349_vm5, %v2111_v32, %v2115_v24  ;;  %v6779_v34 = vld [vmem:[#allocation2 + $0xb0] sm:$0x1]  ;;  %v2135_v9 = vrot.slane %v2134_v0, 4  ;;  %v645_v21 = vsel %vm6260_vm2, %v6639_v46, 0  ;;  %v2130_v42 = vsel %vm6349_vm5, %v2125_v36, %v6753_v17  ;;  %v6040_v24 = vld [vmem:[%s7291_s1 + $0x198] sm:$0xff]  }
  0x9a   : > { %v6784_v62 = vcombine.low %v2106_v22, %v2116_v16  ;;  %v2137_v5 = vshll.u32 %v6779_v34, 16  ;;  %v2153_v18 = vrot.slane %v2151_v11, 5  ;;  %5367 = vmatpush3.bf16.msra.mxu1 %v6036_v10  ;;  %v2148_v25 = vor.u32 %v2147_v6, %v2144_v3  ;;  %v6796_v36 = vld [vmem:[#allocation2 + $0xd0] sm:$0xf]  ;;  %v6798_v10 = vld [vmem:[#allocation2 + $0xd4] sm:$0x1] }
  0x9b   : > { %v2157_v32 = vrot.slane %v2155_v38, 4  ;;  %v4537_v0 = vcombine.low %v645_v21, %v645_v21  ;;  %v2488_v33 = vshrl.u32 %v1772_v50, 16  ;;  %5368 = vmatprep.subr.bf16.mxu1 %v6038_v2  ;;  %v2491_v46 = vshll.u32 %v1772_v50, 16  ;;  %7346 = vst [vmem:[#allocation17_spill] sm:$0xff] %v6796_v36  ;;  %7347 = vst [vmem:[#allocation18_spill] sm:$0xff] %v6798_v10  ;;  %v6800_v6 = vld [vmem:[#allocation2 + $0x24] sm:$0xff]  }
  0x9c   : > { %7345 = vst [vmem:[#allocation16_spill] sm:$0xff] %v6784_v62  ;;  %5545 = vmatmul.mubr.bf16.gmra.mrb[20].mxu0 %v6784_v62  ;;  %v2139_v7 = vrot.slane %v2137_v5, 5  ;;  %v2497_v22 = vshll.u32 %v6772_v15, 16  ;;  %v2501_v17 = vshrl.u32 %v6772_v15, 16  ;;  %v2149_v3 = vrot.slane %v2148_v25, 4  ;;  %v6042_v25 = vld [vmem:[%s7291_s1 + $0x1a0] sm:$0xff]  }
  0x9d   : > { %v2158_v11 = vor.u32 %v2157_v32, %v2153_v18  ;;  %870 = vst [vmem:[#allocation2 + $0xc8] sm:$0x1] %v4537_v0  ;;  %v2490_v38 = vrot.slane %v2488_v33, 4  ;;  %v2774_v16 = vshrl.u32 %v1775_v47, 16  ;;  %5337 = vmatmul.mubr.bf16.gmra.mrb[4].mxu1 %v6800_v6  ;;  %v6805_v21 = vld [vmem:[#allocation2 + $0xbc] sm:$0x1] }
  0x9e   : > { %v2140_v50 = vsel %vm6349_vm5, %v2135_v9, %v2139_v7  ;;  %v2493_v5 = vrot.slane %v2491_v46, 5  ;;  %v6807_v1 = vrot.slane %v2497_v22, 5  ;;  %v2503_v45 = vrot.slane %v2501_v17, 4  ;;  %v6812_v32 = vld [vmem:[#allocation2 + $0x30] sm:$0xff]   ;;  %5369 = vmatpush3.bf16.msra.mxu1 %v6038_v2  ;;  %v6821_v8 = vld [vmem:[#allocation2 + $0x4] sm:$0xf] }
  0x9f   : > { %5340 = vmatprep.mubr.bf16.mxu1 %v6812_v32  ;;  %v6815_v0 = vcombine.low %v2130_v42, %v2140_v50  ;;  %v2154_v9 = vsel %vm6349_vm5, %v2149_v3, %v2153_v18  ;;  %v2159_v33 = vrot.slane %v2158_v11, 4  ;;  %v2161_v7 = vshll.u32 %v6805_v21, 16  ;;  %5370 = vmatprep.subr.bf16.mxu1 %v6040_v24  ;;  %v6827_v3 = vld [vmem:[#allocation2 + $0x8] sm:$0x1]  ;;  %v3060_v11 = vld [vmem:[#allocation2 + $0xc] sm:$0xe] }
  0xa0   : > { %v2494_v46 = vor.u32 %v2493_v5, %v2490_v38  ;;  %v2504_v22 = vor.u32 %v2503_v45, %v6807_v1  ;;  %v2776_v17 = vrot.slane %v2774_v16, 4  ;;  %v2777_v62 = vshll.u32 %v1775_v47, 16 }
  0xa1   : > { %7348 = vst [vmem:[#allocation19_spill] sm:$0xff] %v6815_v0  ;;  %5548 = vmatprep.mubr.bf16.mxu0 %v6815_v0  ;;  %v2163_v42 = vrot.slane %v2161_v7, 5  ;;  %v2783_v2 = vshll.u32 %v6796_v36, 16  ;;  %v2787_v50 = vshrl.u32 %v6796_v36, 16  ;;  %v2793_v18 = vshll.u32 %v6798_v10, 16 }
  0xa2   : > { %v7349_v38 = vrot.slane %v6664_v27, 5  ;;  %v2495_v16 = vrot.slane %v2494_v46, 4  ;;  %v2779_v47 = vrot.slane %v2777_v62, 5  ;;  %v2505_v0 = vrot.slane %v2504_v22, 4  ;;  %5371 = vmatpush3.bf16.msra.mxu1 %v6040_v24  ;;  %v6044_v62 = vld [vmem:[%s7291_s1 + $0x1a8] sm:$0xff]   ;;  %v6847_v22 = vld [vmem:[#allocation2 + $0x3c] sm:$0xff]  }
  0xa3   : > { %v2164_v5 = vsel %vm6349_vm5, %v2159_v33, %v2163_v42  ;;  %v2785_v7 = vrot.slane %v2783_v2, 5  ;;  %v2789_v60 = vrot.slane %v2787_v50, 4  ;;  %v2795_v63 = vrot.slane %v2793_v18, 5  ;;  %5372 = vmatprep.subr.bf16.mxu1 %v6042_v25  ;;  %v6856_v18 = vld [vmem:[#allocation2 + $0x48] sm:$0xff]  }
  0xa4   : > { %v3139_v45 = vrot.slane %v7349_v38, 4  ;;  %v6833_v14 = vcombine.low %v2154_v9, %v2164_v5  ;;  %v6835_v36 = vld [vmem:[#allocation2 + $0xc8] sm:$0x1]  ;;  %v2780_v10 = vor.u32 %v2779_v47, %v2776_v17  ;;  %v4702_v9 = vrot.slane %v3059_v49, 9 }
  0xa5   : > { %v2507_v46 = vshll.u32 %v6835_v36, 16  ;;  %v2790_v38 = vor.u32 %v2789_v60, %v2785_v7  ;;  %v3130_v33 = vrot.slane %v6821_v8, 5  ;;  %5341 = vmatmul.mubr.bf16.gmra.mrb[8].mxu1 %v6847_v22  ;;  %v3133_v42 = vrot.slane %v6827_v3, 5 }
  0xa6   : > { %7350 = vst [vmem:[#allocation20_spill] sm:$0xff] %v6833_v14  ;;  %5549 = vmatmul.mubr.bf16.gmra.mrb[24].mxu0 %v6833_v14  ;;  %v2781_v17 = vrot.slane %v2780_v10, 4  ;;  %v4703_v2 = vrot.slane %v3060_v11, 9  ;;  %v7353_v60 = vrot.slane %v6301_v58, 5  ;;  %5344 = vmatprep.mubr.bf16.mxu1 %v6856_v18  ;;  %v2500_v49 = vsel %vm6349_vm5, %v2495_v16, %v6807_v1  ;;  %v3061_v10 = vld [vmem:[#allocation2 + $0x18] sm:$0xe] }
  0xa7   : > { %v2509_v47 = vrot.slane %v2507_v46, 5  ;;  %v2791_v5 = vrot.slane %v2790_v38, 4  ;;  %v3132_v14 = vrot.slane %v3130_v33, 4  ;;  %5373 = vmatpush3.bf16.msra.mxu1 %v6042_v25  ;;  %v3131_v58 = vsel %vm6842_vm8, %v4702_v9, %v3130_v33  ;;  %v6046_v1 = vld [vmem:[%s7291_s1 + $0x1b0] sm:$0xff]   ;;  %v3062_v46 = vld [vmem:[#allocation2 + $0x24] sm:$0xe] }
  0xa8   : > { %v3141_v50 = vsel %vm6842_vm8, %v3139_v45, %v7353_v60  ;;  %v2786_v11 = vsel %vm6349_vm5, %v2781_v17, %v2785_v7  ;;  %v7354_v45 = vrot.slane %v6664_v27, 5  ;;  %5374 = vmatprep.subr.bf16.mxu1 %v6044_v62  ;;  %v3144_v12 = vrot.slane %v6081_v19, 5  ;;  %v3063_v33 = vld [vmem:[#allocation2 + $0x30] sm:$0xe] }
  0xa9   : > { %v2510_v25 = vsel %vm6349_vm5, %v2505_v0, %v2509_v47  ;;  %v2796_v16 = vsel %vm6349_vm5, %v2791_v5, %v2795_v63  ;;  %v3134_v7 = vsel %vm6842_vm8, %v3132_v14, %v3133_v42  ;;  %v4704_v19 = vrot.slane %v3061_v10, 9  ;;  %v6083_v0 = vld [vmem:[#allocation2 + $0x28] sm:$0xf]  ;;  %v6084_v14 = vld [vmem:[#allocation2 + $0x2c] sm:$0x1] }
  0xaa   : > { %v3138_v60 = vsel %vm6842_vm8, %v4703_v2, %v7354_v45  ;;  %v6881_v38 = vcombine.low %v2500_v49, %v2510_v25  ;;  %v4693_v9 = vcombine.low %v2786_v11, %v2796_v16  ;;  %v4734_v17 = vcombine.low %v3131_v58, %v3134_v7  ;;  %v6082_v45 = vld [vmem:[#allocation2 + $0x20] sm:$0x1]  ;;  %v3065_v5 = vld [vmem:[#allocation2 + $0x48] sm:$0xe]  ;;  %v6887_v25 = vld [vmem:[#allocation2 + $0x54] sm:$0xff]  }
  0xab   : > { %v6879_v27 = vcombine.low %v3138_v60, %v3141_v50  ;;  %v3146_v2 = vrot.slane %v3144_v12, 4  ;;  %v3147_v55 = vrot.slane %v6082_v45, 5  ;;  %5375 = vmatpush3.bf16.msra.mxu1 %v6044_v62  ;;  %v3151_v47 = vrot.slane %v6083_v0, 5  ;;  %v6085_v50 = vld [vmem:[#allocation2 + $0x34] sm:$0xf]  ;;  %v6048_v62 = vld [vmem:[%s7291_s1 + $0x1b8] sm:$0xff]  }
  0xac   : > { %7356 = vst [vmem:[#allocation22_spill] sm:$0xff] %v6881_v38  ;;  %5552 = vmatprep.mubr.bf16.mxu0 %v6881_v38  ;;  %v4705_v63 = vrot.slane %v3062_v46, 9  ;;  %v3154_v42 = vrot.slane %v6084_v14, 5  ;;  %5376 = vmatprep.subr.bf16.mxu1 %v6046_v1  ;;  %v3158_v49 = vrot.slane %v6085_v50, 5  ;;  %v4706_v10 = vrot.slane %v3063_v33, 9  ;;  %v6892_v14 = vld [vmem:[#allocation2 + $0x60] sm:$0xff]  }
  0xad   : > { %7355 = vst [vmem:[#allocation21_spill] sm:$0xff] %v6879_v27  ;;  %v3153_v11 = vrot.slane %v3151_v47, 4  ;;  %v6086_v60 = vld [vmem:[#allocation2 + $0x38] sm:$0x1]  ;;  %5345 = vmatmul.mubr.bf16.gmra.mrb[12].mxu1 %v6887_v25  ;;  %v3145_v16 = vsel %vm6842_vm8, %v4704_v19, %v3144_v12  ;;  %v4707_v46 = vrot.slane %v3064_v57, 9  ;;  %v3148_v33 = vsel %vm6842_vm8, %v3146_v2, %v3147_v55 }
  0xae   : > { %v3161_v58 = vrot.slane %v6086_v60, 5  ;;  %5553 = vmatmul.mubr.bf16.gmra.mrb[28].mxu0 %v4693_v9  ;;  %v3160_v7 = vrot.slane %v3158_v49, 4  ;;  %v6088_v45 = vld [vmem:[#allocation2 + $0x40] sm:$0xf]  ;;  %5348 = vmatprep.mubr.bf16.mxu1 %v6892_v14  ;;  %v6090_v50 = vld [vmem:[#allocation2 + $0x44] sm:$0x1]  ;;  %v3152_v12 = vsel %vm6842_vm8, %v4705_v63, %v3151_v47  ;;  %v6912_v47 = vcombine.low %v3145_v16, %v3148_v33 }
  0xaf   : > { %v3165_v0 = vrot.slane %v6088_v45, 5  ;;  %5572 = vmatprep.mubr.bf16.mxu0 %v4734_v17  ;;  %v3168_v60 = vrot.slane %v6090_v50, 5  ;;  %v4708_v38 = vrot.slane %v3065_v5, 9  ;;  %v3172_v9 = vrot.slane %v6091_v26, 5  ;;  %5377 = vmatpush3.bf16.msra.mxu1 %v6046_v1  ;;  %v6092_v2 = vld [vmem:[#allocation2 + $0x50] sm:$0x1] }
  0xb0   : > { %v3155_v57 = vsel %vm6842_vm8, %v3153_v11, %v3154_v42  ;;  %v3159_v45 = vsel %vm6842_vm8, %v4706_v10, %v3158_v49  ;;  %v3162_v17 = vsel %vm6842_vm8, %v3160_v7, %v3161_v58  ;;  %5378 = vmatprep.subr.bf16.mxu1 %v6048_v62  ;;  %v3175_v5 = vrot.slane %v6092_v2, 5  ;;  %v6905_v50 = vld [vmem:[#allocation2 + $0x54] sm:$0xe]  ;;  %v6910_v26 = vld [vmem:[%s7291_s1 + $0x40] sm:$0xff]   ;;  %7357 = vst [vmem:[#allocation23_spill] sm:$0xff] %v6912_v47 }
  0xb1   : > { %v3167_v19 = vrot.slane %v3165_v0, 4  ;;  %v3174_v55 = vrot.slane %v3172_v9, 4  ;;  %v3166_v1 = vsel %vm6842_vm8, %v4707_v46, %v3165_v0  ;;  %v6918_v42 = vld [vmem:[#allocation2 + $0x60] sm:$0xe]  ;;  %v3068_v49 = vld [vmem:[#allocation2 + $0x6c] sm:$0xe]  ;;  %v6920_v11 = vcombine.low %v3152_v12, %v3155_v57 }
  0xb2   : > { %v3173_v10 = vsel %vm6842_vm8, %v4708_v38, %v3172_v9  ;;  %v6926_v7 = vld [vmem:[#allocation2 + $0x58] sm:$0xf]  ;;  %v6045_v46 = vld [vmem:[%s7291_s1 + $0x148] sm:$0xff]   ;;  %v6932_v0 = vcombine.low %v3159_v45, %v3162_v17  ;;  %v6935_v12 = vld [vmem:[#allocation2 + $0x5c] sm:$0x1]  ;;  %v4711_v2 = vrot.slane %v3068_v49, 9 }
  0xb3   : > { %v3169_v63 = vsel %vm6842_vm8, %v3167_v19, %v3168_v60  ;;  %v3176_v58 = vsel %vm6842_vm8, %v3174_v55, %v3175_v5  ;;  %v7320_v16 = vrot.slane %v6926_v7, 5  ;;  %v3069_v33 = vld [vmem:[#allocation2 + $0x78] sm:$0xe]  ;;  %5379 = vmatpush3.bf16.msra.mxu1 %v6048_v62  ;;  %v6938_v9 = vld [vmem:[#allocation2 + $0x64] sm:$0xf]  ;;  %v3193_v45 = vrot.slane %v6597_v4, 5 }
  0xb4   : > { %v7326_v57 = vrot.slane %v6938_v9, 5  ;;  %v6941_v19 = vcombine.low %v3166_v1, %v3169_v63  ;;  %5412 = vmatprep.subr.bf16.mxu1 %v6910_v26  ;;  %v6946_v62 = vld [vmem:[#allocation2 + $0x6c] sm:$0xff]   ;;  %v6950_v17 = vcombine.low %v3173_v10, %v3176_v58  ;;  %v3196_v5 = vrot.slane %v6636_v39, 5  ;;  %v3070_v63 = vld [vmem:[#allocation2 + $0x84] sm:$0xe]  ;;  %v6954_v60 = vld [vmem:[#allocation2 + $0x78] sm:$0xff]  }
  0xb5   : > { %5349 = vmatmul.mubr.bf16.gmra.mrb[16].mxu1 %v6946_v62  ;;  %v4712_v38 = vrot.slane %v3069_v33, 9  ;;  %v3200_v1 = vrot.slane %v6625_v28, 5  ;;  %v6960_v4 = vrot.slane %v7320_v16, 4  ;;  %v6962_v49 = vld [vmem:[#allocation2 + $0x68] sm:$0x1]  ;;  %v3194_v39 = vsel %vm6842_vm8, %v4711_v2, %v3193_v45 }
  0xb6   : > { %5573 = vmatmul.mubr.bf16.vlgmr.msra.gmra.mrb[0].mxu0 %v6879_v27  ;;  %5352 = vmatprep.mubr.bf16.mxu1 %v6954_v60  ;;  %v3195_v58 = vrot.slane %v3193_v45, 4  ;;  %v3071_v28 = vld [vmem:[#allocation2 + $0x90] sm:$0xe]  ;;  %v6973_v33 = vrot.slane %v7326_v57, 4  ;;  %v3203_v16 = vrot.slane %v6668_v30, 5  ;;  %v4713_v45 = vrot.slane %v3070_v63, 9 }
  0xb7   : > { %5605 = vmatpush3.bf16.msra.mxu0 %v6712_v13  ;;  %5576 = vmatprep.mubr.bf16.mxu0 %v6912_v47  ;;  %v6047_v13 = vld [vmem:[%s7291_s1 + $0x150] sm:$0xff]   ;;  %v3201_v55 = vsel %vm6842_vm8, %v4712_v38, %v3200_v1  ;;  %v3202_v10 = vrot.slane %v3200_v1, 4  ;;  %v3207_v43 = vrot.slane %v6670_v23, 5  ;;  %v3210_v31 = vrot.slane %v6707_v20, 5  ;;  %v3073_v1 = vld [vmem:[#allocation2 + $0xa8] sm:$0xe] }
  0xb8   : > { %5606 = vmatprep.subr.bf16.mxu0 %v6045_v46  ;;  %v3197_v2 = vsel %vm6842_vm8, %v3195_v58, %v3196_v5  ;;  %v4714_v27 = vrot.slane %v3071_v28, 9  ;;  %v3214_v38 = vrot.slane %v6689_v51, 5  ;;  %v3217_v23 = vrot.slane %v6736_v59, 5  ;;  %v6049_v51 = vld [vmem:[%s7291_s1 + $0x158] sm:$0xff]  }
  0xb9   : > { %v6982_v47 = vcombine.low %v3194_v39, %v3197_v2  ;;  %v3204_v57 = vsel %vm6842_vm8, %v3202_v10, %v3203_v16  ;;  %v3208_v5 = vsel %vm6842_vm8, %v4713_v45, %v3207_v43  ;;  %v3209_v63 = vrot.slane %v3207_v43, 4 }
  0xba   : > { %v6987_v30 = vcombine.low %v3201_v55, %v3204_v57  ;;  %v3215_v20 = vsel %vm6842_vm8, %v4714_v27, %v3214_v38  ;;  %v3216_v39 = vrot.slane %v3214_v38, 4  ;;  %v4715_v58 = vrot.slane %v3072_v29, 9  ;;  %v3074_v55 = vld [vmem:[#allocation2 + $0xb4] sm:$0xe] }
  0xbb   : > { %5607 = vmatpush3.bf16.msra.mxu0 %v6045_v46  ;;  %v3221_v16 = vrot.slane %v6695_v44, 5  ;;  %v3211_v46 = vsel %vm6842_vm8, %v3209_v63, %v3210_v31  ;;  %v3224_v57 = vrot.slane %v6751_v61, 5  ;;  %v4716_v43 = vrot.slane %v3073_v1, 9  ;;  %v1724_v31 = vld [vmem:[#allocation2] sm:$0xf] }
  0xbc   : > { %5608 = vmatprep.subr.bf16.mxu0 %v6047_v13  ;;  %v3228_v59 = vrot.slane %v6723_v53, 5  ;;  %v7004_v29 = vcombine.low %v3208_v5, %v3211_v46  ;;  %v3218_v44 = vsel %vm6842_vm8, %v3216_v39, %v3217_v23  ;;  %v3231_v28 = vrot.slane %v6779_v34, 5  ;;  %v3075_v23 = vld [vmem:[#allocation2 + $0xc0] sm:$0xe] }
  0xbd   : > { %5353 = vmatmul.mubr.bf16.gmra.mrb[20].mxu1 %v6605_v52  ;;  %v3222_v27 = vsel %vm6842_vm8, %v4715_v58, %v3221_v16  ;;  %v3223_v10 = vrot.slane %v3221_v16, 4  ;;  %v7012_v53 = vcombine.low %v3215_v20, %v3218_v44  ;;  %v4717_v45 = vrot.slane %v3074_v55, 9 }
  0xbe   : > { %5577 = vmatmul.mubr.bf16.gmra.mrb[4].mxu0 %v6920_v11  ;;  %5356 = vmatprep.mubr.bf16.mxu1 %v6627_v37  ;;  %v3229_v52 = vsel %vm6842_vm8, %v4716_v43, %v3228_v59  ;;  %v3230_v61 = vrot.slane %v3228_v59, 4  ;;  %v3235_v38 = vrot.slane %v6749_v40, 5  ;;  %v3238_v1 = vrot.slane %v6805_v21, 5  ;;  %v6051_v37 = vld [vmem:[%s7291_s1 + $0x160] sm:$0xff]  }
  0xbf   : > { %5580 = vmatprep.mubr.bf16.mxu0 %v6932_v0  ;;  %5609 = vmatpush3.bf16.msra.mxu0 %v6047_v13  ;;  %v3225_v2 = vsel %vm6842_vm8, %v3223_v10, %v3224_v57  ;;  %v1782_v34 = vshrl.u32 %v1724_v31, 16  ;;  %v1785_v13 = vshll.u32 %v1724_v31, 16  ;;  %v1791_v21 = vshll.u32 %v6821_v8, 16 }
  0xc0   : > { %5610 = vmatprep.subr.bf16.mxu0 %v6049_v51  ;;  %v7024_v5 = vcombine.low %v3222_v27, %v3225_v2  ;;  %v3232_v63 = vsel %vm6842_vm8, %v3230_v61, %v3231_v28  ;;  %v3236_v40 = vsel %vm6842_vm8, %v4717_v45, %v3235_v38  ;;  %v3237_v39 = vrot.slane %v3235_v38, 4  ;;  %v6053_v27 = vld [vmem:[%s7291_s1 + $0x168] sm:$0xff]  }
  0xc1   : > { %v7028_v20 = vcombine.low %v3229_v52, %v3232_v63  ;;  %v1784_v58 = vrot.slane %v1782_v34, 4  ;;  %v1787_v16 = vrot.slane %v1785_v13, 5  ;;  %v1795_v46 = vshrl.u32 %v6821_v8, 16 }
  0xc2   : > { %v1801_v57 = vshll.u32 %v6827_v3, 16  ;;  %v3239_v43 = vsel %vm6842_vm8, %v3237_v39, %v3238_v1  ;;  %v1793_v59 = vrot.slane %v1791_v21, 5  ;;  %v4758_v55 = vrot.slane %v3075_v23, 9  ;;  %v6057_v23 = vld [vmem:[%s7291_s1 + $0x178] sm:$0xff]   ;;  %v6100_v21 = vld [vmem:[#allocation2 + $0x84] sm:$0xff]  }
  0xc3   : > { %5611 = vmatpush3.bf16.msra.mxu0 %v6049_v51  ;;  %v3567_v44 = vrot.slane %v6772_v15, 5  ;;  %v7041_v10 = vcombine.low %v3236_v40, %v3239_v43  ;;  %v1788_v31 = vor.u32 %v1787_v16, %v1784_v58  ;;  %v1797_v52 = vrot.slane %v1795_v46, 4  ;;  %v6052_v40 = vld [vmem:[%s7291_s1 + $0x48] sm:$0xff]   ;;  %v6056_v39 = vld [vmem:[%s7291_s1 + $0x58] sm:$0xff]   ;;  %v6101_v58 = vld [vmem:[#allocation2 + $0x90] sm:$0xff]  }
  0xc4   : > { %5612 = vmatprep.subr.bf16.mxu0 %v6051_v37  ;;  %v7358_v8 = vrot.slane %v6926_v7, 5  ;;  %v7359_v3 = vrot.slane %v6905_v50, 9  ;;  %v3570_v28 = vrot.slane %v6835_v36, 5  ;;  %v1803_v45 = vrot.slane %v1801_v57, 5  ;;  %v6066_v16 = vld [vmem:[%s7291_s1 + $0x218] sm:$0xff]   ;;  %v6103_v57 = vld [vmem:[#allocation2 + $0xa8] sm:$0xff]  }
  0xc5   : > { %5357 = vmatmul.mubr.bf16.gmra.mrb[24].mxu1 %v6644_v56  ;;  %v3568_v51 = vsel %vm6842_vm8, %v4758_v55, %v3567_v44  ;;  %v3569_v61 = vrot.slane %v3567_v44, 4  ;;  %v7360_v56 = vrot.slane %v6935_v12, 5  ;;  %v1789_v50 = vrot.slane %v1788_v31, 4  ;;  %v6102_v46 = vld [vmem:[#allocation2 + $0x9c] sm:$0xff]   ;;  %v7366_v55 = vld [vmem:[#allocation13_spill] sm:$0xff]  ;;  %v6069_v44 = vld [vmem:[%s7291_s1 + $0x230] sm:$0xff]  }
  0xc6   : > { %5581 = vmatmul.mubr.bf16.gmra.mrb[8].mxu0 %v6941_v19  ;;  %v3180_v15 = vsel %vm6842_vm8, %v7359_v3, %v7358_v8  ;;  %5360 = vmatprep.mubr.bf16.mxu1 %v6657_v41  ;;  %v1798_v2 = vor.u32 %v1797_v52, %v1793_v59  ;;  %v7361_v38 = vrot.slane %v6938_v9, 5  ;;  %v7362_v1 = vrot.slane %v6918_v42, 9  ;;  %v6055_v9 = vld [vmem:[%s7291_s1 + $0x170] sm:$0xff]   ;;  %v6067_v43 = vld [vmem:[%s7291_s1 + $0x220] sm:$0xff]   ;;  %v6070_v31 = vld [vmem:[%s7291_s1 + $0x238] sm:$0xff]  }
  0xc7   : > { %5584 = vmatprep.mubr.bf16.mxu0 %v6950_v17  ;;  %v3183_v7 = vsel %vm6842_vm8, %v6960_v4, %v7360_v56  ;;  %v7363_v41 = vrot.slane %v6962_v49, 5  ;;  %5613 = vmatpush3.bf16.msra.mxu0 %v6051_v37  ;;  %v3571_v4 = vsel %vm6842_vm8, %v3569_v61, %v3570_v28  ;;  %v1794_v42 = vsel %vm6349_vm5, %v1789_v50, %v1793_v59  ;;  %v6068_v59 = vld [vmem:[%s7291_s1 + $0x228] sm:$0xff]   ;;  %v7368_v52 = vld [vmem:[#allocation4_spill] sm:$0xff]  ;;  %v6105_v3 = vld [vmem:[%s7291_s1 + $0x110] sm:$0xff]  }
  0xc8   : > { %v3187_v36 = vsel %vm6842_vm8, %v7362_v1, %v7361_v38  ;;  %5614 = vmatprep.subr.bf16.mxu0 %v6053_v27  ;;  %v1799_v63 = vrot.slane %v1798_v2, 4  ;;  %v7079_v34 = vcombine.low %v3568_v51, %v3571_v4  ;;  %v7081_v49 = vcombine.low %v3180_v15, %v3183_v7  ;;  %v6104_v8 = vld [vmem:[%s7291_s1 + $0x108] sm:$0xff]   ;;  %v7370_v51 = vld [vmem:[#allocation6_spill] sm:$0xff]  ;;  %v6106_v61 = vld [vmem:[%s7291_s1 + $0x118] sm:$0xff]  }
  0xc9   : > { %v3190_v12 = vsel %vm6842_vm8, %v6973_v33, %v7363_v41  ;;  %v7369_v15 = vld [vmem:[#allocation5_spill] sm:$0xff]  ;;  %v6107_v28 = vld [vmem:[%s7291_s1 + $0x120] sm:$0xff]   ;;  %v7371_v56 = vld [vmem:[#allocation7_spill] sm:$0xff] }
  0xca   : > { %v7083_v13 = vcombine.low %v3187_v36, %v3190_v12  ;;  %v1804_v33 = vsel %vm6349_vm5, %v1799_v63, %v1803_v45  ;;  %v7372_v7 = vld [vmem:[#allocation8_spill] sm:$0xff]  ;;  %v6108_v50 = vld [vmem:[%s7291_s1 + $0x128] sm:$0xff]   ;;  %v6109_v2 = vld [vmem:[%s7291_s1 + $0x130] sm:$0xff]  }
  0xcb   : > { %5615 = vmatpush3.bf16.msra.mxu0 %v6053_v27  ;;  %v7087_v37 = vcombine.low %v1794_v42, %v1804_v33  ;;  %v6062_v27 = vld [vmem:[#allocation2 + $0xcc] sm:$0xff]   ;;  %v6110_v1 = vld [vmem:[%s7291_s1 + $0x138] sm:$0xff]   ;;  %v7376_v41 = vld [vmem:[#allocation12_spill] sm:$0xff] }
  0xcc   : > { %5616 = vmatprep.subr.bf16.mxu0 %v6055_v9  ;;  %v7373_v45 = vld [vmem:[#allocation9_spill] sm:$0xff]  ;;  %v7374_v38 = vld [vmem:[#allocation10_spill] sm:$0xff]  ;;  %v7375_v36 = vld [vmem:[#allocation11_spill] sm:$0xff] }
  0xcd   : > { %5361 = vmatmul.mubr.bf16.gmra.mrb[28].mxu1 %v6677_v35  ;;  %v7377_v12 = vld [vmem:[#allocation14_spill] sm:$0xff]  ;;  %v7378_v4 = vld [vmem:[#allocation15_spill] sm:$0xff] }
  0xce   : > { %5585 = vmatmul.mubr.bf16.gmra.mrb[12].mxu0 %v7081_v49  ;;  %5380 = vmatprep.mubr.bf16.mxu1 %v6763_v48  ;;  %v6054_v48 = vld [vmem:[%s7291_s1 + $0x50] sm:$0xff]   ;;  %v7380_v42 = vld [vmem:[#allocation19_spill] sm:$0xff] }
  0xcf   : > { %5588 = vmatprep.mubr.bf16.mxu0 %v7083_v13  ;;  %5617 = vmatpush3.bf16.msra.mxu0 %v6055_v9  ;;  %v7379_v9 = vld [vmem:[#allocation16_spill] sm:$0xff]  ;;  %v7383_v63 = vld [vmem:[#allocation18_spill] sm:$0xff] }
  0xd0   : > { %5618 = vmatprep.subr.bf16.mxu0 %v6057_v23 }
  0xd3   : > { %5619 = vmatpush3.bf16.msra.mxu0 %v6057_v23 }
  0xd4   : > { %5652 = vmatprep.subr.bf16.mxu0 %v6059_v54 }
  0xd5   : > { %5381 = vmatmul.mubr.bf16.vlgmr.msra.gmra.mrb[0].mxu1 %v6800_v6  ;;  %v6058_v6 = vld [vmem:[%s7291_s1 + $0x60] sm:$0xff]  }
  0xd6   : > { %5589 = vmatmul.mubr.bf16.gmra.mrb[16].mxu0 %v6982_v47  ;;  %5384 = vmatprep.mubr.bf16.mxu1 %v6812_v32  ;;  %v6060_v32 = vld [vmem:[%s7291_s1 + $0x68] sm:$0xff]  }
  0xd7   : > { %5413 = vmatpush3.bf16.msra.mxu1 %v6910_v26  ;;  %5592 = vmatprep.mubr.bf16.mxu0 %v6987_v30  ;;  %v6099_v26 = vld [vmem:[%s7291_s1 + $0x100] sm:$0xff]  }
  0xd8   : > { %5414 = vmatprep.subr.bf16.mxu1 %v6052_v40 }
  0xdb   : > { %5415 = vmatpush3.bf16.msra.mxu1 %v6052_v40 }
  0xdc   : > { %5416 = vmatprep.subr.bf16.mxu1 %v6054_v48 }
  0xdd   : > { %5385 = vmatmul.mubr.bf16.gmra.mrb[4].mxu1 %v6847_v22  ;;  %v6063_v22 = vld [vmem:[%s7291_s1 + $0x70] sm:$0xff]  }
  0xde   : > { %5593 = vmatmul.mubr.bf16.gmra.mrb[20].mxu0 %v7004_v29  ;;  %5388 = vmatprep.mubr.bf16.mxu1 %v6856_v18  ;;  %v6065_v18 = vld [vmem:[%s7291_s1 + $0x78] sm:$0xff]  }
  0xdf   : > { %5596 = vmatprep.mubr.bf16.mxu0 %v7012_v53  ;;  %5417 = vmatpush3.bf16.msra.mxu1 %v6054_v48 }
  0xe0   : > { %5418 = vmatprep.subr.bf16.mxu1 %v6056_v39 }
  0xe3   : > { %5419 = vmatpush3.bf16.msra.mxu1 %v6056_v39 }
  0xe4   : > { %5420 = vmatprep.subr.bf16.mxu1 %v6058_v6 }
  0xe5   : > { %5389 = vmatmul.mubr.bf16.gmra.mrb[8].mxu1 %v6887_v25  ;;  %v7364_v25 = vld [vmem:[#allocation21_spill] sm:$0xff] }
  0xe6   : > { %5597 = vmatmul.mubr.bf16.gmra.mrb[24].mxu0 %v7024_v5  ;;  %5392 = vmatprep.mubr.bf16.mxu1 %v6892_v14  ;;  %v6061_v14 = vld [vmem:[%s7291_s1 + $0x208] sm:$0xff]  }
  0xe7   : > { %5600 = vmatprep.mubr.bf16.mxu0 %v7028_v20  ;;  %5421 = vmatpush3.bf16.msra.mxu1 %v6058_v6 }
  0xe8   : > { %5422 = vmatprep.subr.bf16.mxu1 %v6060_v32 }
  0xeb   : > { %5423 = vmatpush3.bf16.msra.mxu1 %v6060_v32 }
  0xec   : > { %5424 = vmatprep.subr.bf16.mxu1 %v6063_v22 }
  0xed   : > { %5393 = vmatmul.mubr.bf16.gmra.mrb[12].mxu1 %v6946_v62  ;;  %v7365_v62 = vld [vmem:[#allocation23_spill] sm:$0xff] }
  0xee   : > { %5601 = vmatmul.mubr.bf16.gmra.mrb[28].mxu0 %v7041_v10  ;;  %5396 = vmatprep.mubr.bf16.mxu1 %v6954_v60  ;;  %v6064_v60 = vld [vmem:[%s7291_s1 + $0x210] sm:$0xff]  }
  0xef   : > { %5620 = vmatprep.mubr.bf16.mxu0 %v7364_v25  ;;  %5425 = vmatpush3.bf16.msra.mxu1 %v6063_v22 }
  0xf0   : > { %5426 = vmatprep.subr.bf16.mxu1 %v6065_v18 }
  0xf3   : > { %5427 = vmatpush3.bf16.msra.mxu1 %v6065_v18 }
  0xf4   : > { %5700 = vmatprep.subr.bf16.mxu1 %v6099_v26 }
  0xf5   : > { %5397 = vmatmul.mubr.bf16.gmra.mrb[16].mxu1 %v6100_v21 }
  0xf6   : > { %5621 = vmatmul.mubr.bf16.vlgmr.msra.gmra.mrb[0].mxu0 %v7365_v62  ;;  %5400 = vmatprep.mubr.bf16.mxu1 %v6101_v58 }
  0xf7   : > { %5653 = vmatpush3.bf16.msra.mxu0 %v6059_v54  ;;  %5624 = vmatprep.mubr.bf16.mxu0 %v6920_v11 }
  0xf8   : > { %5654 = vmatprep.subr.bf16.mxu0 %v6061_v14 }
  0xfb   : > { %5655 = vmatpush3.bf16.msra.mxu0 %v6061_v14 }
  0xfc   : > { %5656 = vmatprep.subr.bf16.mxu0 %v6064_v60 }
  0xfd   : > { %5401 = vmatmul.mubr.bf16.gmra.mrb[20].mxu1 %v6102_v46 }
  0xfe   : > { %5625 = vmatmul.mubr.bf16.gmra.mrb[4].mxu0 %v6932_v0  ;;  %5404 = vmatprep.mubr.bf16.mxu1 %v6103_v57 }
  0xff   : > { %5628 = vmatprep.mubr.bf16.mxu0 %v6941_v19  ;;  %5657 = vmatpush3.bf16.msra.mxu0 %v6064_v60 }
 0x100   : > { %5658 = vmatprep.subr.bf16.mxu0 %v6066_v16 }
 0x103   : > { %5659 = vmatpush3.bf16.msra.mxu0 %v6066_v16 }
 0x104   : > { %5660 = vmatprep.subr.bf16.mxu0 %v6067_v43 }
 0x105   : > { %5405 = vmatmul.mubr.bf16.gmra.mrb[24].mxu1 %v6677_v35  ;;  %v7367_v35 = vld [vmem:[#allocation3_spill] sm:$0xff] }
 0x106   : > { %5629 = vmatmul.mubr.bf16.gmra.mrb[8].mxu0 %v6950_v17  ;;  %5408 = vmatprep.mubr.bf16.mxu1 %v7366_v55 }
 0x107   : > { %5632 = vmatprep.mubr.bf16.mxu0 %v7081_v49  ;;  %5661 = vmatpush3.bf16.msra.mxu0 %v6067_v43 }
 0x108   : > { %5662 = vmatprep.subr.bf16.mxu0 %v6068_v59 }
 0x10b   : > { %5663 = vmatpush3.bf16.msra.mxu0 %v6068_v59 }
 0x10c   : > { %5664 = vmatprep.subr.bf16.mxu0 %v6069_v44 }
 0x10d   : > { %5409 = vmatmul.mubr.bf16.gmra.mrb[28].mxu1 %v6062_v27 }
 0x10e   : > { %5633 = vmatmul.mubr.bf16.gmra.mrb[12].mxu0 %v7083_v13  ;;  %5428 = vmatprep.mubr.bf16.mxu1 %v7087_v37 }
 0x10f   : > { %5636 = vmatprep.mubr.bf16.mxu0 %v6982_v47  ;;  %5665 = vmatpush3.bf16.msra.mxu0 %v6069_v44 }
 0x110   : > { %5666 = vmatprep.subr.bf16.mxu0 %v6070_v31 }
 0x113   : > { %5667 = vmatpush3.bf16.msra.mxu0 %v6070_v31 }
 0x115   : > { %5429 = vmatmul.mubr.bf16.vlgmr.msra.gmra.mrb[0].mxu1 %v7367_v35 }
 0x116   : > { %5637 = vmatmul.mubr.bf16.gmra.mrb[16].mxu0 %v6987_v30  ;;  %5432 = vmatprep.mubr.bf16.mxu1 %v7368_v52 }
 0x117   : > { %5708 = vmatpush3.bf16.msra.mxu1 %v6099_v26  ;;  %5640 = vmatprep.mubr.bf16.mxu0 %v7004_v29 }
 0x118   : > { %5701 = vmatprep.subr.bf16.mxu1 %v6104_v8 }
 0x11b   : > { %5709 = vmatpush3.bf16.msra.mxu1 %v6104_v8 }
 0x11c   : > { %5702 = vmatprep.subr.bf16.mxu1 %v6105_v3 }
 0x11d   : > { %5433 = vmatmul.mubr.bf16.gmra.mrb[4].mxu1 %v7369_v15 }
 0x11e   : > { %5641 = vmatmul.mubr.bf16.gmra.mrb[20].mxu0 %v7012_v53  ;;  %5436 = vmatprep.mubr.bf16.mxu1 %v7370_v51 }
 0x11f   : > { %5644 = vmatprep.mubr.bf16.mxu0 %v7024_v5  ;;  %5710 = vmatpush3.bf16.msra.mxu1 %v6105_v3 }
 0x120   : > { %5703 = vmatprep.subr.bf16.mxu1 %v6106_v61 }
 0x123   : > { %5711 = vmatpush3.bf16.msra.mxu1 %v6106_v61 }
 0x124   : > { %5704 = vmatprep.subr.bf16.mxu1 %v6107_v28 }
 0x125   : > { %5437 = vmatmul.mubr.bf16.gmra.mrb[8].mxu1 %v7371_v56 }
 0x126   : > { %5645 = vmatmul.mubr.bf16.gmra.mrb[24].mxu0 %v7028_v20  ;;  %5440 = vmatprep.mubr.bf16.mxu1 %v7372_v7 }
 0x127   : > { %5648 = vmatprep.mubr.bf16.mxu0 %v7041_v10  ;;  %5712 = vmatpush3.bf16.msra.mxu1 %v6107_v28 }
 0x128   : > { %5705 = vmatprep.subr.bf16.mxu1 %v6108_v50 }
 0x12b   : > { %5713 = vmatpush3.bf16.msra.mxu1 %v6108_v50 }
 0x12c   : > { %5706 = vmatprep.subr.bf16.mxu1 %v6109_v2 }
 0x12d   : > { %5441 = vmatmul.mubr.bf16.gmra.mrb[12].mxu1 %v7373_v45 }
 0x12e   : > { %5649 = vmatmul.mubr.bf16.gmra.mrb[28].mxu0 %v7079_v34  ;;  %5444 = vmatprep.mubr.bf16.mxu1 %v7374_v38 }
 0x12f   : > { %5668 = vmatprep.mubr.bf16.mxu0 %v7365_v62  ;;  %5714 = vmatpush3.bf16.msra.mxu1 %v6109_v2 }
 0x130   : > { %5707 = vmatprep.subr.bf16.mxu1 %v6110_v1 }
 0x133   : > { %5715 = vmatpush3.bf16.msra.mxu1 %v6110_v1 }
 0x135   : > { %5445 = vmatmul.mubr.bf16.gmra.mrb[16].mxu1 %v7375_v36 }
 0x136   : > { %5669 = vmatmul.mubr.bf16.vlgmr.msra.gmra.mrb[0].mxu0 %v6920_v11  ;;  %5448 = vmatprep.mubr.bf16.mxu1 %v7376_v41  ;;  %v7381_v11 = vld [vmem:[#allocation20_spill] sm:$0xff] }
 0x137   : > { %5672 = vmatprep.mubr.bf16.mxu0 %v6932_v0 }
 0x13d   : > { %5449 = vmatmul.mubr.bf16.gmra.mrb[20].mxu1 %v7377_v12 }
 0x13e   : > { %5673 = vmatmul.mubr.bf16.gmra.mrb[4].mxu0 %v6941_v19  ;;  %5452 = vmatprep.mubr.bf16.mxu1 %v7378_v4  ;;  %v3076_v19 = vld [vmem:[#allocation2 + $0xcc] sm:$0xe] }
 0x13f   : > { %5676 = vmatprep.mubr.bf16.mxu0 %v6950_v17  ;;  %v4784_v17 = vrot.slane %v3076_v19, 9 }
 0x145   : > { %5453 = vmatmul.mubr.bf16.gmra.mrb[24].mxu1 %v7379_v9 }
 0x146   : > { %5677 = vmatmul.mubr.bf16.gmra.mrb[8].mxu0 %v7081_v49  ;;  %5456 = vmatprep.mubr.bf16.mxu1 %v7380_v42  ;;  %v3842_v49 = vrot.slane %v7383_v63, 5 }
 0x147   : > { %5680 = vmatprep.mubr.bf16.mxu0 %v7083_v13 }
 0x14d   : > { %5457 = vmatmul.mubr.bf16.gmra.mrb[28].mxu1 %v7381_v11 }
 0x14e   : > { %5681 = vmatmul.mubr.bf16.gmra.mrb[12].mxu0 %v6982_v47  ;;  %5492 = vmatprep.mubr.bf16.mxu1 %v7375_v36  ;;  %v7382_v47 = vld [vmem:[#allocation17_spill] sm:$0xff] }
 0x14f   : > { %5684 = vmatprep.mubr.bf16.mxu0 %v6987_v30  ;;  %v3839_v0 = vrot.slane %v7382_v47, 5 }
 0x151   : > { %v3841_v30 = vrot.slane %v3839_v0, 4 }
 0x155   : > { %5493 = vmatmul.mubr.bf16.vlgmr.msra.gmra.mrb[16].mxu1 %v7376_v41 }
 0x156   : > { %5685 = vmatmul.mubr.bf16.gmra.mrb[16].mxu0 %v7004_v29  ;;  %5496 = vmatprep.mubr.bf16.mxu1 %v7377_v12  ;;  %v3840_v29 = vsel %vm6842_vm8, %v4784_v17, %v3839_v0 }
 0x157   : > { %5688 = vmatprep.mubr.bf16.mxu0 %v7012_v53  ;;  %v3843_v53 = vsel %vm6842_vm8, %v3841_v30, %v3842_v49 }
 0x15d   : > { %5497 = vmatmul.mubr.bf16.gmra.mrb[20].mxu1 %v7378_v4 }
 0x15e   : > { %5689 = vmatmul.mubr.bf16.gmra.mrb[20].mxu0 %v7024_v5  ;;  %5500 = vmatprep.mubr.bf16.mxu1 %v7379_v9  ;;  %v4801_v5 = vcombine.low %v3840_v29, %v3843_v53 }
 0x15f   : > { %5692 = vmatprep.mubr.bf16.mxu0 %v7028_v20  ;;  %v7384_v20 = vld [vmem:[#allocation22_spill] sm:$0xff] }
 0x165   : > { %5501 = vmatmul.mubr.bf16.gmra.mrb[24].mxu1 %v7380_v42 }
 0x166   : > { %5693 = vmatmul.mubr.bf16.gmra.mrb[24].mxu0 %v7041_v10  ;;  %5504 = vmatprep.mubr.bf16.mxu1 %v7381_v11 }
 0x167   : > { %5696 = vmatprep.mubr.bf16.mxu0 %v7079_v34 }
 0x16d   : > { %5505 = vmatmul.mubr.bf16.gmra.mrb[28].mxu1 %v7384_v20 }
 0x16e   : > { %5697 = vmatmul.mubr.bf16.gmra.mrb[28].mxu0 %v4801_v5 }
 0x1e8   : > { %v5430_v13 = vpop.f32.mrb[0].mxu1 }
 0x1e9   : > { %v2328_v33 = vpop.f32.mrb[1].mxu1 }
 0x1ea   : > { %v5431_v37 = vpop.f32.mrb[2].mxu1 }
 0x1eb   : > { %v2331_v23 = vpop.f32.mrb[3].mxu1 }
 0x1f0   : > { %v5434_v54 = vpop.f32.mrb[4].mxu1 }
 0x1f1   : > { %v2344_v10 = vpop.f32.mrb[5].mxu1 }
 0x1f2   : > { %v5435_v40 = vpop.f32.mrb[6].mxu1 }
 0x1f3   : > { %v2347_v48 = vpop.f32.mrb[7].mxu1 }
 0x1f8   : > { %v5438_v34 = vpop.f32.mrb[8].mxu1 }
 0x1f9   : > { %v2360_v39 = vpop.f32.mrb[9].mxu1 }
 0x1fa   : > { %v5439_v6 = vpop.f32.mrb[10].mxu1 }
 0x1fb   : > { %v2363_v32 = vpop.f32.mrb[11].mxu1 }
 0x200   : > { %v7244_v22 = vpop.f32.mrb[12].mxu1 }
 0x201   : > { %v7246_v24 = vpop.f32.mrb[13].mxu1 }
 0x202   : > { %v7248_v18 = vpop.f32.mrb[14].mxu1 }
 0x203   : > { %v7250_v25 = vpop.f32.mrb[15].mxu1 }
 0x209   : > { %v5670_v14 = vpop.f32.mrb[0].mxu0 }
 0x20a   : > { %v5716_v26 = vadd.f32 %v5670_v14, %v5430_v13  ;;  %v3947_v21 = vpop.f32.mrb[1].mxu0 }
 0x20b   : > { %v5717_v62 = vadd.f32 %v3947_v21, %v2328_v33  ;;  %v5671_v58 = vpop.f32.mrb[2].mxu0 }
 0x20c   : > { %v5718_v60 = vadd.f32 %v5671_v58, %v5431_v37  ;;  %v3950_v16 = vpop.f32.mrb[3].mxu0  ;;  %v4306_v27 = vmul.f32 %v5716_v26, %v5716_v26 }
 0x20d   : > { %v5719_v46 = vadd.f32 %v3950_v16, %v2331_v23  ;;  %v4304_v43 = vmul.f32 %v5717_v62, %v5717_v62 }
 0x20e   : > { %v4950_v57 = vpack.c.bf16 %v5718_v60, %v5716_v26  ;;  %v4307_v15 = vmul.f32 %v5718_v60, %v5718_v60 }
 0x20f   : > { %v4945_v59 = vpack.c.bf16 %v5719_v46, %v5717_v62  ;;  %v4266_v55 = vadd.f32 %v5719_v46, %v5717_v62  ;;  %v4305_v44 = vmul.f32 %v5719_v46, %v5719_v46 }
 0x210   : > { %5037 = vst [vmem:[%s7257_s8 + $0x8] sm:$0xff] %v4950_v57  }
 0x211   : > { %4946 = vst [vmem:[%s7257_s8] sm:$0xff] %v4945_v59   ;;  %v4267_v31 = vadd.f32 %v5716_v26, %v4266_v55  ;;  %v4336_v35 = vadd.f32 %v4305_v44, %v4304_v43  ;;  %v5674_v52 = vpop.f32.mrb[4].mxu0 }
 0x212   : > { %v5720_v8 = vadd.f32 %v5674_v52, %v5434_v54  ;;  %v3963_v3 = vpop.f32.mrb[5].mxu0 }
 0x213   : > { %v4337_v51 = vadd.f32 %v4336_v35, %v4306_v27  ;;  %v5721_v61 = vadd.f32 %v3963_v3, %v2344_v10  ;;  %v4268_v28 = vadd.f32 %v5718_v60, %v4267_v31  ;;  %v5675_v56 = vpop.f32.mrb[6].mxu0 }
 0x214   : > { %v5722_v7 = vadd.f32 %v5675_v56, %v5435_v40  ;;  %v3966_v50 = vpop.f32.mrb[7].mxu0  ;;  %v4310_v42 = vmul.f32 %v5720_v8, %v5720_v8 }
 0x215   : > { %v4269_v2 = vadd.f32 %v5721_v61, %v4268_v28  ;;  %v4308_v45 = vmul.f32 %v5721_v61, %v5721_v61  ;;  %v4338_v38 = vadd.f32 %v4337_v51, %v4307_v15  ;;  %v5723_v1 = vadd.f32 %v3966_v50, %v2347_v48 }
 0x216   : > { %v4960_v36 = vpack.c.bf16 %v5722_v7, %v5720_v8  ;;  %v4311_v30 = vmul.f32 %v5722_v7, %v5722_v7 }
 0x217   : > { %v4339_v41 = vadd.f32 %v4338_v38, %v4308_v45  ;;  %v4955_v12 = vpack.c.bf16 %v5723_v1, %v5721_v61  ;;  %v4270_v4 = vadd.f32 %v5723_v1, %v4269_v2  ;;  %v4309_v9 = vmul.f32 %v5723_v1, %v5723_v1 }
 0x218   : > { %5039 = vst [vmem:[%s7257_s8 + $0x18] sm:$0xff] %v4960_v36  }
 0x219   : > { %5038 = vst [vmem:[%s7257_s8 + $0x10] sm:$0xff] %v4955_v12   ;;  %v4271_v11 = vadd.f32 %v5720_v8, %v4270_v4  ;;  %v4340_v47 = vadd.f32 %v4339_v41, %v4309_v9  ;;  %v5678_v0 = vpop.f32.mrb[8].mxu0 }
 0x21a   : > { %v5724_v19 = vadd.f32 %v5678_v0, %v5438_v34  ;;  %v3979_v17 = vpop.f32.mrb[9].mxu0 }
 0x21b   : > { %v4341_v63 = vadd.f32 %v4340_v47, %v4310_v42  ;;  %v5725_v49 = vadd.f32 %v3979_v17, %v2360_v39  ;;  %v4272_v29 = vadd.f32 %v5722_v7, %v4271_v11  ;;  %v5679_v53 = vpop.f32.mrb[10].mxu0 }
 0x21c   : > { %v5726_v5 = vadd.f32 %v5679_v53, %v5439_v6  ;;  %v3982_v20 = vpop.f32.mrb[11].mxu0  ;;  %v4314_v34 = vmul.f32 %v5724_v19, %v5724_v19 }
 0x21d   : > { %v4273_v13 = vadd.f32 %v5725_v49, %v4272_v29  ;;  %v4312_v33 = vmul.f32 %v5725_v49, %v5725_v49  ;;  %v4342_v37 = vadd.f32 %v4341_v63, %v4311_v30  ;;  %v5727_v23 = vadd.f32 %v3982_v20, %v2363_v32 }
 0x21e   : > { %v4970_v54 = vpack.c.bf16 %v5726_v5, %v5724_v19  ;;  %v4315_v6 = vmul.f32 %v5726_v5, %v5726_v5 }
 0x21f   : > { %v4343_v10 = vadd.f32 %v4342_v37, %v4312_v33  ;;  %v4965_v40 = vpack.c.bf16 %v5727_v23, %v5725_v49  ;;  %v4274_v48 = vadd.f32 %v5727_v23, %v4273_v13  ;;  %v4313_v14 = vmul.f32 %v5727_v23, %v5727_v23 }
 0x220   : > { %5041 = vst [vmem:[%s7257_s8 + $0x28] sm:$0xff] %v4970_v54  }
 0x221   : > { %5040 = vst [vmem:[%s7257_s8 + $0x20] sm:$0xff] %v4965_v40   ;;  %v4275_v26 = vadd.f32 %v5724_v19, %v4274_v48  ;;  %v4344_v21 = vadd.f32 %v4343_v10, %v4313_v14  ;;  %v5682_v39 = vpop.f32.mrb[12].mxu0 }
 0x222   : > { %v5728_v62 = vadd.f32 %v5682_v39, %v7244_v22  ;;  %v3995_v58 = vpop.f32.mrb[13].mxu0 }
 0x223   : > { %v4345_v60 = vadd.f32 %v4344_v21, %v4314_v34  ;;  %v5729_v16 = vadd.f32 %v3995_v58, %v7246_v24  ;;  %v4276_v32 = vadd.f32 %v5726_v5, %v4275_v26  ;;  %v5683_v46 = vpop.f32.mrb[14].mxu0 }
 0x224   : > { %v5730_v57 = vadd.f32 %v5683_v46, %v7248_v18  ;;  %v3998_v43 = vpop.f32.mrb[15].mxu0  ;;  %v4318_v15 = vmul.f32 %v5728_v62, %v5728_v62 }
 0x225   : > { %v4277_v59 = vadd.f32 %v5729_v16, %v4276_v32  ;;  %v4316_v55 = vmul.f32 %v5729_v16, %v5729_v16  ;;  %v4346_v44 = vadd.f32 %v4345_v60, %v4315_v6  ;;  %v5731_v27 = vadd.f32 %v3998_v43, %v7250_v25 }
 0x226   : > { %v4980_v31 = vpack.c.bf16 %v5730_v57, %v5728_v62  ;;  %v4319_v50 = vmul.f32 %v5730_v57, %v5730_v57 }
 0x227   : > { %v4347_v35 = vadd.f32 %v4346_v44, %v4316_v55  ;;  %v4975_v22 = vpack.c.bf16 %v5731_v27, %v5729_v16  ;;  %v4278_v52 = vadd.f32 %v5731_v27, %v4277_v59  ;;  %v4317_v8 = vmul.f32 %v5731_v27, %v5731_v27 }
 0x228   : > { %5043 = vst [vmem:[%s7257_s8 + $0x38] sm:$0xff] %v4980_v31   ;;  %v5494_v3 = vpop.f32.mrb[16].mxu1 }
 0x229   : > { %5042 = vst [vmem:[%s7257_s8 + $0x30] sm:$0xff] %v4975_v22   ;;  %v4279_v24 = vadd.f32 %v5728_v62, %v4278_v52  ;;  %v4348_v51 = vadd.f32 %v4347_v35, %v4317_v8  ;;  %v5686_v61 = vpop.f32.mrb[16].mxu0  ;;  %v2678_v28 = vpop.f32.mrb[17].mxu1 }
 0x22a   : > { %v5732_v18 = vadd.f32 %v5686_v61, %v5494_v3  ;;  %v4011_v56 = vpop.f32.mrb[17].mxu0  ;;  %v5495_v7 = vpop.f32.mrb[18].mxu1 }
 0x22b   : > { %v4349_v2 = vadd.f32 %v4348_v51, %v4318_v15  ;;  %v5733_v25 = vadd.f32 %v4011_v56, %v2678_v28  ;;  %v4280_v45 = vadd.f32 %v5730_v57, %v4279_v24  ;;  %v5687_v38 = vpop.f32.mrb[18].mxu0  ;;  %v2681_v1 = vpop.f32.mrb[19].mxu1 }
 0x22c   : > { %v5734_v36 = vadd.f32 %v5687_v38, %v5495_v7  ;;  %v4014_v41 = vpop.f32.mrb[19].mxu0  ;;  %v4322_v63 = vmul.f32 %v5732_v18, %v5732_v18 }
 0x22d   : > { %v4281_v12 = vadd.f32 %v5733_v25, %v4280_v45  ;;  %v4320_v4 = vmul.f32 %v5733_v25, %v5733_v25  ;;  %v4350_v9 = vadd.f32 %v4349_v2, %v4319_v50  ;;  %v5735_v42 = vadd.f32 %v4014_v41, %v2681_v1 }
 0x22e   : > { %v4990_v11 = vpack.c.bf16 %v5734_v36, %v5732_v18  ;;  %v4323_v37 = vmul.f32 %v5734_v36, %v5734_v36 }
 0x22f   : > { %v4351_v47 = vadd.f32 %v4350_v9, %v4320_v4  ;;  %v4985_v0 = vpack.c.bf16 %v5735_v42, %v5733_v25  ;;  %v4282_v19 = vadd.f32 %v5735_v42, %v4281_v12  ;;  %v4321_v17 = vmul.f32 %v5735_v42, %v5735_v42 }
 0x230   : > { %5045 = vst [vmem:[%s7257_s8 + $0x48] sm:$0xff] %v4990_v11   ;;  %v5498_v30 = vpop.f32.mrb[20].mxu1 }
 0x231   : > { %5044 = vst [vmem:[%s7257_s8 + $0x40] sm:$0xff] %v4985_v0   ;;  %v4283_v49 = vadd.f32 %v5732_v18, %v4282_v19  ;;  %v4352_v29 = vadd.f32 %v4351_v47, %v4321_v17  ;;  %v5690_v53 = vpop.f32.mrb[20].mxu0  ;;  %v2694_v5 = vpop.f32.mrb[21].mxu1 }
 0x232   : > { %v5736_v20 = vadd.f32 %v5690_v53, %v5498_v30  ;;  %v4027_v13 = vpop.f32.mrb[21].mxu0  ;;  %v5499_v33 = vpop.f32.mrb[22].mxu1 }
 0x233   : > { %v4353_v23 = vadd.f32 %v4352_v29, %v4322_v63  ;;  %v5737_v54 = vadd.f32 %v4027_v13, %v2694_v5  ;;  %v4284_v10 = vadd.f32 %v5734_v36, %v4283_v49  ;;  %v5691_v40 = vpop.f32.mrb[22].mxu0  ;;  %v2697_v48 = vpop.f32.mrb[23].mxu1 }
 0x234   : > { %v5738_v14 = vadd.f32 %v5691_v40, %v5499_v33  ;;  %v4030_v34 = vpop.f32.mrb[23].mxu0  ;;  %v4326_v57 = vmul.f32 %v5736_v20, %v5736_v20 }
 0x235   : > { %v4285_v26 = vadd.f32 %v5737_v54, %v4284_v10  ;;  %v4324_v21 = vmul.f32 %v5737_v54, %v5737_v54  ;;  %v4354_v39 = vadd.f32 %v4353_v23, %v4323_v37  ;;  %v5739_v62 = vadd.f32 %v4030_v34, %v2697_v48 }
 0x236   : > { %v5000_v58 = vpack.c.bf16 %v5738_v14, %v5736_v20  ;;  %v4327_v22 = vmul.f32 %v5738_v14, %v5738_v14 }
 0x237   : > { %v4355_v6 = vadd.f32 %v4354_v39, %v4324_v21  ;;  %v4995_v60 = vpack.c.bf16 %v5739_v62, %v5737_v54  ;;  %v4286_v16 = vadd.f32 %v5739_v62, %v4285_v26  ;;  %v4325_v32 = vmul.f32 %v5739_v62, %v5739_v62 }
 0x238   : > { %5047 = vst [vmem:[%s7257_s8 + $0x58] sm:$0xff] %v5000_v58   ;;  %v5502_v46 = vpop.f32.mrb[24].mxu1 }
 0x239   : > { %5046 = vst [vmem:[%s7257_s8 + $0x50] sm:$0xff] %v4995_v60   ;;  %v4287_v43 = vadd.f32 %v5736_v20, %v4286_v16  ;;  %v4356_v59 = vadd.f32 %v4355_v6, %v4325_v32  ;;  %v5694_v55 = vpop.f32.mrb[24].mxu0  ;;  %v2710_v44 = vpop.f32.mrb[25].mxu1 }
 0x23a   : > { %v5740_v27 = vadd.f32 %v5694_v55, %v5502_v46  ;;  %v4043_v31 = vpop.f32.mrb[25].mxu0  ;;  %v5503_v35 = vpop.f32.mrb[26].mxu1 }
 0x23b   : > { %v4357_v52 = vadd.f32 %v4356_v59, %v4326_v57  ;;  %v5741_v8 = vadd.f32 %v4043_v31, %v2710_v44  ;;  %v4288_v3 = vadd.f32 %v5738_v14, %v4287_v43  ;;  %v5695_v15 = vpop.f32.mrb[26].mxu0  ;;  %v2713_v24 = vpop.f32.mrb[27].mxu1 }
 0x23c   : > { %v5742_v51 = vadd.f32 %v5695_v15, %v5503_v35  ;;  %v4046_v61 = vpop.f32.mrb[27].mxu0  ;;  %v4330_v36 = vmul.f32 %v5740_v27, %v5740_v27 }
 0x23d   : > { %v4289_v28 = vadd.f32 %v5741_v8, %v4288_v3  ;;  %v4328_v18 = vmul.f32 %v5741_v8, %v5741_v8  ;;  %v4358_v56 = vadd.f32 %v4357_v52, %v4327_v22  ;;  %v5743_v7 = vadd.f32 %v4046_v61, %v2713_v24 }
 0x23e   : > { %v5010_v50 = vpack.c.bf16 %v5742_v51, %v5740_v27  ;;  %v4331_v0 = vmul.f32 %v5742_v51, %v5742_v51 }
 0x23f   : > { %v4359_v2 = vadd.f32 %v4358_v56, %v4328_v18  ;;  %v5005_v25 = vpack.c.bf16 %v5743_v7, %v5741_v8  ;;  %v4290_v45 = vadd.f32 %v5743_v7, %v4289_v28  ;;  %v4329_v38 = vmul.f32 %v5743_v7, %v5743_v7 }
 0x240   : > { %5049 = vst [vmem:[%s7257_s8 + $0x68] sm:$0xff] %v5010_v50   ;;  %v5506_v1 = vpop.f32.mrb[28].mxu1 }
 0x241   : > { %5048 = vst [vmem:[%s7257_s8 + $0x60] sm:$0xff] %v5005_v25   ;;  %v4291_v41 = vadd.f32 %v5740_v27, %v4290_v45  ;;  %v4360_v12 = vadd.f32 %v4359_v2, %v4329_v38  ;;  %v5698_v4 = vpop.f32.mrb[28].mxu0  ;;  %v2726_v9 = vpop.f32.mrb[29].mxu1 }
 0x242   : > { %v5744_v42 = vadd.f32 %v5698_v4, %v5506_v1  ;;  %v4059_v11 = vpop.f32.mrb[29].mxu0  ;;  %v5507_v47 = vpop.f32.mrb[30].mxu1 }
 0x243   : > { %v4361_v19 = vadd.f32 %v4360_v12, %v4330_v36  ;;  %v5745_v17 = vadd.f32 %v4059_v11, %v2726_v9  ;;  %v4292_v30 = vadd.f32 %v5742_v51, %v4291_v41  ;;  %v5699_v63 = vpop.f32.mrb[30].mxu0  ;;  %v2729_v49 = vpop.f32.mrb[31].mxu1 }
 0x244   : > { %v5746_v29 = vadd.f32 %v5699_v63, %v5507_v47  ;;  %v4062_v53 = vpop.f32.mrb[31].mxu0  ;;  %v4334_v48 = vmul.f32 %v5744_v42, %v5744_v42 }
 0x245   : > { %v4293_v5 = vadd.f32 %v5745_v17, %v4292_v30  ;;  %v4332_v20 = vmul.f32 %v5745_v17, %v5745_v17  ;;  %v4362_v13 = vadd.f32 %v4361_v19, %v4331_v0  ;;  %v5747_v33 = vadd.f32 %v4062_v53, %v2729_v49 }
 0x246   : > { %v5020_v37 = vpack.c.bf16 %v5746_v29, %v5744_v42  ;;  %v4335_v26 = vmul.f32 %v5746_v29, %v5746_v29 }
 0x247   : > { %v4363_v23 = vadd.f32 %v4362_v13, %v4332_v20  ;;  %v5015_v54 = vpack.c.bf16 %v5747_v33, %v5745_v17  ;;  %v4294_v10 = vadd.f32 %v5747_v33, %v4293_v5  ;;  %v4333_v40 = vmul.f32 %v5747_v33, %v5747_v33 }
 0x248   : > { %5051 = vst [vmem:[%s7257_s8 + $0x78] sm:$0xff] %v5020_v37  }
 0x249   : > { %5050 = vst [vmem:[%s7257_s8 + $0x70] sm:$0xff] %v5015_v54   ;;  %v4295_v14 = vadd.f32 %v5744_v42, %v4294_v10  ;;  %v4364_v34 = vadd.f32 %v4363_v23, %v4333_v40 }
 0x24b   : > { %v4296_v21 = vadd.f32 %v5746_v29, %v4295_v14  ;;  %v4365_v39 = vadd.f32 %v4364_v34, %v4334_v48 }
 0x24d   : > { %v4297_v62 = vrot.slane %v4296_v21, 4  ;;  %v4366_v58 = vadd.f32 %v4365_v39, %v4335_v26 }
 0x24f   : > { %v4298_v6 = vadd.f32 %v4297_v62, %v4296_v21  ;;  %v4367_v60 = vrot.slane %v4366_v58, 4 }
 0x251   : > { %v4299_v16 = vrot.slane %v4298_v6, 2  ;;  %v4368_v32 = vadd.f32 %v4367_v60, %v4366_v58 }
 0x253   : > { %v4300_v46 = vadd.f32 %v4299_v16, %v4298_v6  ;;  %v4369_v57 = vrot.slane %v4368_v32, 2 }
 0x255   : > { %v4301_v43 = vrot.slane %v4300_v46, 1  ;;  %v4370_v59 = vadd.f32 %v4369_v57, %v4368_v32 }
 0x257   : > { %v4302_v55 = vadd.f32 %v4301_v43, %v4300_v46  ;;  %v4371_v44 = vrot.slane %v4370_v59, 1 }
 0x259   : > { %4303 = vst [vmem:[%s265_s10] sm:$0x1] %v4302_v55  ;;  %v4372_v27 = vadd.f32 %v4371_v44, %v4370_v59 }
 0x25b   : > { %4373 = vst [vmem:[%s268_s14] sm:$0x1] %v4372_v27 }
 0x25c PF: > { %s17_s21 = sadd.s32 1, %s6117_s21  }
 0x25d   : > { %p14_p4 = scmp.ge.s32.totalorder %s17_s21, 4  }
 0x25f   :  { %16 = sbr.rel (!%p14_p4) target bundleno = 1 (0x1), region = 100 }

// kernel: double_conv_forward.3
= control target key start
LH: loop header
LB: loop body
LE: loop exit
PB: predicated region body
PF: predicated region fallthrough
CT: control target
= control target key end

     0   :  { %s6026_s21 = smov 0   ;;  %s7124_s0 = inlined_call_operand.vmem [shape: bf16[2,16,16,128], index: 0, kind: input, shape index: {}]   ;;  %s7125_s1 = inlined_call_operand.vmem [shape: bf16[3,3,128,128], index: 1, kind: input, shape index: {}]   ;;  %s7126_s2 = inlined_call_operand.vmem [shape: f32[1,128], index: 2, kind: input, shape index: {}]   ;;  %s7127_s3 = inlined_call_operand.vmem [shape: f32[1,128], index: 3, kind: input, shape index: {}]   ;;  %s7128_s4 = inlined_call_operand.vmem [shape: bf16[2,16,16,128], index: 4, kind: output, shape index: {0}]   ;;  %s7129_s5 = inlined_call_operand.vmem [shape: f32[2,1,128], index: 5, kind: output, shape index: {1}]   ;;  %s7130_s6 = inlined_call_operand.vmem [shape: f32[2,1,128], index: 6, kind: output, shape index: {2}]  }
   0x1 LB: > { %s4401_s2 = sadd.s32 4294967295, %s5988_s21   ;;  %p4405_p0 = scmp.ge.s32.totalorder %s5988_s21, 1  ;;  %s5988_s21 = sphi %s6026_s21, %s17_s21  }
   0x2   : > { %p217_p1 = scmp.lt.s32.totalorder %s5988_s21, 3 }
   0x4   : > { %p218_p2 = pnand %p4405_p0, %p217_p1 }
   0x6   : > { %221 = sbr.rel (%p218_p2) target bundleno = 586 (0x24a), region = 36 }
   0xd   : > { %v5838_v0 = vld [vmem:[%s7125_s1 + $0xc0] sm:$0xff]   ;;  %v5840_v2 = vld [vmem:[%s7125_s1 + $0xc8] sm:$0xff]   ;;  %p6043_p3 = scmp.lt.s32.totalorder %s4401_s2, 1  ;;  %v5842_v4 = vld [vmem:[%s7125_s1 + $0xd0] sm:$0xff]   ;;  %v5990_v5 = vmov 0   ;;  %vm533_vm1 = vcmask 1040384  }
   0xe   : > { %v5839_v1 = vld [vmem:[%s7125_s1 + $0x100] sm:$0xff]   ;;  %5125 = vmatprep.subr.bf16.mxu1 %v5838_v0  ;;  %v5841_v3 = vld [vmem:[%s7125_s1 + $0x108] sm:$0xff]   ;;  %302 = vst [vmem:[#allocation2] sm:$0xf] %v5990_v5  ;;  %303 = vst [vmem:[#allocation2 + $0x4] sm:$0xf] %v5990_v5 }
   0xf   : > { %5126 = vmatpush3.bf16.msra.mxu1 %v5838_v0  ;;  %5317 = vmatprep.subr.bf16.mxu0 %v5839_v1  ;;  %304 = vst [vmem:[#allocation2 + $0x8] sm:$0x1] %v5990_v5  ;;  %306 = vst [vmem:[#allocation2 + $0xcc] sm:$0xf] %v5990_v5  ;;  %v5843_v6 = vld [vmem:[%s7125_s1 + $0x110] sm:$0xff]   ;;  %s7240_s2 = smov (!%p6043_p3, %s4401_s2), 1 }
  0x10   : > { %5318 = vmatpush3.bf16.msra.mxu0 %v5839_v1  ;;  %5127 = vmatprep.subr.bf16.mxu1 %v5840_v2  ;;  %307 = vst [vmem:[#allocation2 + $0xd0] sm:$0xf] %v5990_v5  ;;  %308 = vst [vmem:[#allocation2 + $0xd4] sm:$0x1] %v5990_v5  ;;  %v5844_v7 = vld [vmem:[%s7125_s1 + $0xd8] sm:$0xff]   ;;  %s4780_s14 = sshll.u32 %s7240_s2, 7  ;;  %s265_s29 = scalar_lea.vmem %s7129_s5, %s7240_s2 }
  0x11   : > { %5319 = vmatprep.subr.bf16.mxu0 %v5841_v3  ;;  %v5845_v8 = vld [vmem:[%s7125_s1 + $0x118] sm:$0xff]   ;;  %v5846_v9 = vld [vmem:[%s7125_s1 + $0xe0] sm:$0xff]   ;;  %s6078_s3 = scalar_lea.vmem %s7124_s0, %s4780_s14  ;;  %v5848_v11 = vld [vmem:[%s7125_s1 + $0xe8] sm:$0xff]   ;;  %vm534_vm0 = vsmask.f32 256  ;;  %vm3047_vm6 = vcmask 1042432   ;;  %s7091_s27 = scalar_lea.vmem %s7128_s4, %s4780_s14 }
  0x12   : > { %v5847_v10 = vld [vmem:[%s7125_s1 + $0x120] sm:$0xff]   ;;  %v5849_v12 = vld [vmem:[%s7125_s1 + $0x128] sm:$0xff]   ;;  %v5850_v17 = vld [vmem:[%s7125_s1 + $0xf0] sm:$0xff]   ;;  %vm1700_vm3 = vsmask.f32 3328  ;;  %vm3048_vm7 = vcmask 1046532   ;;  %s268_s8 = scalar_lea.vmem %s7130_s6, %s7240_s2 }
  0x13   : > { %5128 = vmatpush3.bf16.msra.mxu1 %v5840_v2  ;;  %v5854_v13 = vld [vmem:[%s6078_s3] sm:$0xff]   ;;  %v5856_v16 = vld [vmem:[%s6078_s3 + $0x8] sm:$0xff]   ;;  %v5851_v18 = vld [vmem:[%s7125_s1 + $0x130] sm:$0xff]   ;;  %vm1701_vm4 = vsmask.f32 7440 }
  0x14   : > { %5320 = vmatpush3.bf16.msra.mxu0 %v5841_v3  ;;  %5129 = vmatprep.subr.bf16.mxu1 %v5842_v4  ;;  %v390_v14 = vshrl.u32 %v5854_v13, 16  ;;  %v393_v15 = vshll.u32 %v5854_v13, 16  ;;  %v397_v20 = vshrl.u32 %v5856_v16, 16  ;;  %v400_v21 = vshll.u32 %v5856_v16, 16  ;;  %vm6094_vm2 = vmand %vm533_vm1, %vm534_vm0  ;;  %v5852_v23 = vld [vmem:[%s7125_s1 + $0xf8] sm:$0xff]   ;;  %v5861_v29 = vld [vmem:[%s6078_s3 + $0x10] sm:$0xff]  }
  0x15   : > { %5321 = vmatprep.subr.bf16.mxu0 %v5843_v6  ;;  %v5853_v27 = vld [vmem:[%s7125_s1 + $0x138] sm:$0xff]   ;;  %v404_v36 = vshrl.u32 %v5861_v29, 16  ;;  %v407_v39 = vshll.u32 %v5861_v29, 16  ;;  %v5858_v44 = vld [vmem:[%s7125_s1] sm:$0xff]   ;;  %v6133_v56 = vld [vmem:[%s6078_s3 + $0x28] sm:$0xff]  }
  0x16   : > { %v392_v19 = vrot.slane %v390_v14, 7  ;;  %v399_v25 = vrot.slane %v397_v20, 7  ;;  %v5863_v37 = vld [vmem:[%s6078_s3 + $0x18] sm:$0xff]   ;;  %v6120_v46 = vld [vmem:[%s7125_s1 + $0x1c0] sm:$0xff]   ;;  %v5865_v2 = vld [vmem:[%s7125_s1 + $0x8] sm:$0xff]  }
  0x17   : > { %5130 = vmatpush3.bf16.msra.mxu1 %v5842_v4  ;;  %v406_v42 = vrot.slane %v404_v36, 7  ;;  %v411_v43 = vshrl.u32 %v5863_v37, 16  ;;  %v414_v45 = vshll.u32 %v5863_v37, 16  ;;  %v6125_v50 = vld [vmem:[%s6078_s3 + $0x20] sm:$0xff]   ;;  %vm6158_vm5 = vmor %vm1700_vm3, %vm1701_vm4  ;;  %v5913_v22 = vld [vmem:[%s7125_s1 + $0x198] sm:$0xff]  }
  0x18   : > { %5322 = vmatpush3.bf16.msra.mxu0 %v5843_v6  ;;  %5131 = vmatprep.subr.bf16.mxu1 %v5844_v7  ;;  %v395_v24 = vor.u32 %v393_v15, %v392_v19  ;;  %v552_v26 = vsel %vm6094_vm2, %v392_v19, 0  ;;  %v402_v31 = vor.u32 %v400_v21, %v399_v25  ;;  %v553_v32 = vsel %vm6094_vm2, %v399_v25, 0  ;;  %v5872_v19 = vld [vmem:[%s7125_s1 + $0x10] sm:$0xff]   ;;  %vm6637_vm8 = vmor %vm3047_vm6, %vm3048_vm7 }
  0x19   : > { %5323 = vmatprep.subr.bf16.mxu0 %v5845_v8  ;;  %v4428_v28 = vcombine.low %v552_v26, %v552_v26  ;;  %v4431_v35 = vcombine.low %v553_v32, %v553_v32  ;;  %v409_v47 = vor.u32 %v407_v39, %v406_v42  ;;  %v413_v48 = vrot.slane %v411_v43, 7 }
  0x1a   : > { %v536_v30 = vsel %vm6094_vm2, 0, %v395_v24  ;;  %v537_v38 = vsel %vm6094_vm2, 0, %v402_v31  ;;  %v554_v49 = vsel %vm6094_vm2, %v406_v42, 0  ;;  %v418_v55 = vshrl.u32 %v6125_v50, 16 }
  0x1b   : > { %5132 = vmatpush3.bf16.msra.mxu1 %v5844_v7  ;;  %v4426_v33 = vcombine.low %v536_v30, %v536_v30  ;;  %v4427_v34 = vcombine.high %v536_v30, %v536_v30  ;;  %747 = vst [vmem:[#allocation2 + $0x14] sm:$0x1] %v4428_v28  ;;  %v4429_v40 = vcombine.low %v537_v38, %v537_v38  ;;  %750 = vst [vmem:[#allocation2 + $0x20] sm:$0x1] %v4431_v35 }
  0x1c   : > { %5324 = vmatpush3.bf16.msra.mxu0 %v5845_v8  ;;  %5133 = vmatprep.subr.bf16.mxu1 %v5846_v9  ;;  %v4430_v41 = vcombine.high %v537_v38, %v537_v38  ;;  %v4434_v51 = vcombine.low %v554_v49, %v554_v49  ;;  %v538_v52 = vsel %vm6094_vm2, 0, %v409_v47  ;;  %v416_v53 = vor.u32 %v414_v45, %v413_v48 }
  0x1d   : > { %5325 = vmatprep.subr.bf16.mxu0 %v5847_v10  ;;  %745 = vst [vmem:[#allocation2 + $0xc] sm:$0xf] %v4426_v33  ;;  %746 = vst [vmem:[#allocation2 + $0x10] sm:$0xf] %v4427_v34  ;;  %v555_v54 = vsel %vm6094_vm2, %v413_v48, 0  ;;  %v4432_v58 = vcombine.low %v538_v52, %v538_v52  ;;  %v4433_v59 = vcombine.high %v538_v52, %v538_v52  ;;  %v421_v3 = vshll.u32 %v6125_v50, 16 }
  0x1e   : > { %748 = vst [vmem:[#allocation2 + $0x18] sm:$0xf] %v4429_v40  ;;  %749 = vst [vmem:[#allocation2 + $0x1c] sm:$0xf] %v4430_v41  ;;  %v4437_v60 = vcombine.low %v555_v54, %v555_v54  ;;  %v539_v62 = vsel %vm6094_vm2, 0, %v416_v53  ;;  %v6147_v6 = vrot.slane %v418_v55, 7 }
  0x1f   : > { %5134 = vmatpush3.bf16.msra.mxu1 %v5846_v9  ;;  %753 = vst [vmem:[#allocation2 + $0x2c] sm:$0x1] %v4434_v51  ;;  %751 = vst [vmem:[#allocation2 + $0x24] sm:$0xf] %v4432_v58  ;;  %v4435_v0 = vcombine.low %v539_v62, %v539_v62  ;;  %v4436_v1 = vcombine.high %v539_v62, %v539_v62  ;;  %v425_v7 = vshrl.u32 %v6133_v56, 16  ;;  %v428_v25 = vshll.u32 %v6133_v56, 16 }
  0x20   : > { %5326 = vmatpush3.bf16.msra.mxu0 %v5847_v10  ;;  %5135 = vmatprep.subr.bf16.mxu1 %v5848_v11  ;;  %752 = vst [vmem:[#allocation2 + $0x28] sm:$0xf] %v4433_v59  ;;  %756 = vst [vmem:[#allocation2 + $0x38] sm:$0x1] %v4437_v60  ;;  %v5930_v34 = vld [vmem:[%s7125_s1 + $0x178] sm:$0xff]  }
  0x21   : > { %5327 = vmatprep.subr.bf16.mxu0 %v5849_v12  ;;  %754 = vst [vmem:[#allocation2 + $0x30] sm:$0xf] %v4435_v0  ;;  %755 = vst [vmem:[#allocation2 + $0x34] sm:$0xf] %v4436_v1 }
  0x22   : > { %v6135_v57 = vld [vmem:[#allocation2 + $0x14] sm:$0x1] }
  0x23   : > { %5136 = vmatpush3.bf16.msra.mxu1 %v5848_v11  ;;  %v1747_v61 = vshll.u32 %v6135_v57, 16 }
  0x24   : > { %5328 = vmatpush3.bf16.msra.mxu0 %v5849_v12  ;;  %5137 = vmatprep.subr.bf16.mxu1 %v5850_v17  ;;  %v5855_v63 = vld [vmem:[#allocation2 + $0xc] sm:$0xff]  }
  0x25   : > { %5329 = vmatprep.subr.bf16.mxu0 %v5851_v18  ;;  %v1649_v4 = vld [vmem:[#allocation2 + $0xc] sm:$0xf]  ;;  %v6145_v5 = vld [vmem:[#allocation2 + $0x10] sm:$0xf]  ;;  %5141 = vmatprep.mubr.bf16.mxu1 %v5855_v63  ;;  %v5857_v8 = vld [vmem:[#allocation2 + $0x18] sm:$0xff]   ;;  %v1749_v13 = vrot.slane %v1747_v61, 5 }
  0x26   : > { %v1728_v9 = vshrl.u32 %v1649_v4, 16  ;;  %v1731_v10 = vshll.u32 %v1649_v4, 16  ;;  %v1737_v11 = vshll.u32 %v6145_v5, 16  ;;  %v1741_v12 = vshrl.u32 %v6145_v5, 16  ;;  %v1652_v14 = vld [vmem:[#allocation2 + $0x18] sm:$0xf] }
  0x27   : > { %5138 = vmatpush3.bf16.msra.mxu1 %v5850_v17  ;;  %v1653_v16 = vld [vmem:[#allocation2 + $0x1c] sm:$0xf]  ;;  %v1654_v17 = vld [vmem:[#allocation2 + $0x20] sm:$0x1]  ;;  %v1657_v24 = vld [vmem:[#allocation2 + $0x2c] sm:$0x1] }
  0x28   : > { %5330 = vmatpush3.bf16.msra.mxu0 %v5851_v18  ;;  %5139 = vmatprep.subr.bf16.mxu1 %v5852_v23  ;;  %v1730_v15 = vrot.slane %v1728_v9, 4  ;;  %v1752_v18 = vshrl.u32 %v1652_v14, 16  ;;  %v1733_v20 = vrot.slane %v1731_v10, 5  ;;  %v1739_v21 = vrot.slane %v1737_v11, 5  ;;  %v5862_v33 = vld [vmem:[#allocation2 + $0x24] sm:$0xff]   ;;  %v5864_v43 = vld [vmem:[#allocation2 + $0x30] sm:$0xff]  }
  0x29   : > { %5331 = vmatprep.subr.bf16.mxu0 %v5853_v27  ;;  %v1761_v28 = vshll.u32 %v1653_v16, 16  ;;  %v1765_v29 = vshrl.u32 %v1653_v16, 16  ;;  %v1771_v32 = vshll.u32 %v1654_v17, 16  ;;  %v1655_v38 = vld [vmem:[#allocation2 + $0x24] sm:$0xf]  ;;  %v1795_v39 = vshll.u32 %v1657_v24, 16 }
  0x2a   : > { %v1754_v26 = vrot.slane %v1752_v18, 4  ;;  %v1734_v30 = vor.u32 %v1733_v20, %v1730_v15  ;;  %v1656_v48 = vld [vmem:[#allocation2 + $0x28] sm:$0xf]  ;;  %v1776_v49 = vshrl.u32 %v1655_v38, 16  ;;  %v1779_v50 = vshll.u32 %v1655_v38, 16  ;;  %v5875_v20 = vld [vmem:[%s6078_s3 + $0x30] sm:$0xff]  }
  0x2b   : > { %5140 = vmatpush3.bf16.msra.mxu1 %v5852_v23  ;;  %v1743_v23 = vrot.slane %v1741_v12, 4  ;;  %v1763_v36 = vrot.slane %v1761_v28, 5  ;;  %v1767_v37 = vrot.slane %v1765_v29, 4  ;;  %v1773_v42 = vrot.slane %v1771_v32, 5  ;;  %v1658_v55 = vld [vmem:[#allocation2 + $0x30] sm:$0xf] }
  0x2c   : > { %5332 = vmatpush3.bf16.msra.mxu0 %v5853_v27  ;;  %5173 = vmatprep.subr.bf16.mxu1 %v5858_v44  ;;  %v1755_v27 = vshll.u32 %v1652_v14, 16  ;;  %v1735_v40 = vrot.slane %v1734_v30, 4  ;;  %v1785_v53 = vshll.u32 %v1656_v48, 16  ;;  %v1789_v54 = vshrl.u32 %v1656_v48, 16  ;;  %v1659_v58 = vld [vmem:[#allocation2 + $0x34] sm:$0xf] }
  0x2d   : > { %5365 = vmatprep.subr.bf16.mxu0 %v6120_v46  ;;  %v1744_v31 = vor.u32 %v1743_v23, %v1739_v21  ;;  %v1768_v47 = vor.u32 %v1767_v37, %v1763_v36  ;;  %v1778_v62 = vrot.slane %v1776_v49, 4  ;;  %v1660_v63 = vld [vmem:[#allocation2 + $0x38] sm:$0x1]  ;;  %v1781_v0 = vrot.slane %v1779_v50, 5  ;;  %v5860_v12 = vld [vmem:[%s7125_s1 + $0x1c8] sm:$0xff]  }
  0x2e   : > { %5142 = vmatmul.mubr.bf16.vlgmr.msra.gmra.mrb[0].mxu1 %v5857_v8  ;;  %v1757_v35 = vrot.slane %v1755_v27, 5  ;;  %v1740_v51 = vsel %vm6158_vm5, %v1735_v40, %v1739_v21  ;;  %v1787_v1 = vrot.slane %v1785_v53, 5  ;;  %v1800_v9 = vshrl.u32 %v1658_v55, 16  ;;  %v5879_v21 = vld [vmem:[%s7125_s1 + $0x18] sm:$0xff]   ;;  %v6218_v53 = vld [vmem:[%s6078_s3 + $0x48] sm:$0xff]  }
  0x2f   : > { %5174 = vmatpush3.bf16.msra.mxu1 %v5858_v44  ;;  %v1745_v41 = vrot.slane %v1744_v31, 4  ;;  %5145 = vmatprep.mubr.bf16.mxu1 %v5862_v33  ;;  %v423_v44 = vor.u32 %v421_v3, %v6147_v6  ;;  %v1769_v61 = vrot.slane %v1768_v47, 4  ;;  %v1797_v3 = vrot.slane %v1795_v39, 5  ;;  %v5877_v38 = vld [vmem:[%s6078_s3 + $0x38] sm:$0xff]  }
  0x30   : > { %5175 = vmatprep.subr.bf16.mxu1 %v5865_v2  ;;  %v1758_v45 = vor.u32 %v1757_v35, %v1754_v26  ;;  %v1803_v10 = vshll.u32 %v1658_v55, 16  ;;  %v1809_v15 = vshll.u32 %v1659_v58, 16  ;;  %v1802_v16 = vrot.slane %v1800_v9, 4  ;;  %v5866_v26 = vld [vmem:[%s7125_s1 + $0x1d0] sm:$0xff]  }
  0x31   : > { %v1750_v52 = vsel %vm6158_vm5, %v1745_v41, %v1749_v13  ;;  %v1774_v8 = vsel %vm6158_vm5, %v1769_v61, %v1773_v42  ;;  %v1782_v13 = vor.u32 %v1781_v0, %v1778_v62  ;;  %v1813_v18 = vshrl.u32 %v1659_v58, 16  ;;  %v6203_v42 = vld [vmem:[%s6078_s3 + $0x40] sm:$0xff]  }
  0x32   : > { %v6167_v59 = vcombine.low %v1740_v51, %v1750_v52  ;;  %v1759_v60 = vrot.slane %v1758_v45, 4  ;;  %v1805_v17 = vrot.slane %v1803_v10, 5  ;;  %v1811_v27 = vrot.slane %v1809_v15, 5 }
  0x33   : > { %5176 = vmatpush3.bf16.msra.mxu1 %v5865_v2  ;;  %v1791_v2 = vrot.slane %v1789_v54, 4  ;;  %v1783_v23 = vrot.slane %v1782_v13, 4  ;;  %v540_v28 = vsel %vm6094_vm2, 0, %v423_v44  ;;  %v1815_v30 = vrot.slane %v1813_v18, 4  ;;  %v5886_v54 = vld [vmem:[%s7125_s1 + $0x20] sm:$0xff]  }
  0x34   : > { %5177 = vmatprep.subr.bf16.mxu1 %v5872_v19  ;;  %7169 = vst [vmem:[#allocation3_spill] sm:$0xff] %v6167_v59  ;;  %5333 = vmatprep.mubr.bf16.mxu0 %v6167_v59  ;;  %v1764_v4 = vsel %vm6158_vm5, %v1759_v60, %v1763_v36  ;;  %v1806_v29 = vor.u32 %v1805_v17, %v1802_v16  ;;  %v427_v37 = vrot.slane %v425_v7, 7  ;;  %v556_v41 = vsel %vm6094_vm2, %v6147_v6, 0 }
  0x35   : > { %v6174_v11 = vcombine.low %v1764_v4, %v1774_v8  ;;  %v1792_v14 = vor.u32 %v1791_v2, %v1787_v1  ;;  %v4438_v32 = vcombine.low %v540_v28, %v540_v28  ;;  %v1788_v33 = vsel %vm6158_vm5, %v1783_v23, %v1787_v1  ;;  %v5873_v2 = vld [vmem:[%s7125_s1 + $0x1e0] sm:$0xff]  }
  0x36   : > { %5146 = vmatmul.mubr.bf16.gmra.mrb[4].mxu1 %v5864_v43  ;;  %v4439_v36 = vcombine.high %v540_v28, %v540_v28  ;;  %v1807_v39 = vrot.slane %v1806_v29, 4  ;;  %v1816_v40 = vor.u32 %v1815_v30, %v1811_v27  ;;  %v5867_v43 = vld [vmem:[%s7125_s1 + $0x1d8] sm:$0xff]   ;;  %v430_v7 = vor.u32 %v428_v25, %v427_v37 }
  0x37   : > { %5178 = vmatpush3.bf16.msra.mxu1 %v5872_v19  ;;  %7170 = vst [vmem:[#allocation4_spill] sm:$0xff] %v6174_v11  ;;  %v1819_v19 = vshll.u32 %v1660_v63, 16  ;;  %5334 = vmatmul.mubr.bf16.vlgmr.msra.gmra.mrb[0].mxu0 %v6174_v11  ;;  %v1793_v24 = vrot.slane %v1792_v14, 4  ;;  %757 = vst [vmem:[#allocation2 + $0x3c] sm:$0xf] %v4438_v32  ;;  %v4440_v44 = vcombine.low %v556_v41, %v556_v41  ;;  %v557_v45 = vsel %vm6094_vm2, %v427_v37, 0 }
  0x38   : > { %5366 = vmatpush3.bf16.msra.mxu0 %v6120_v46  ;;  %5179 = vmatprep.subr.bf16.mxu1 %v5879_v21  ;;  %758 = vst [vmem:[#allocation2 + $0x40] sm:$0xf] %v4439_v36  ;;  %v432_v47 = vshrl.u32 %v5875_v20, 16  ;;  %v1812_v6 = vsel %vm6158_vm5, %v1807_v39, %v1811_v27  ;;  %v1817_v48 = vrot.slane %v1816_v40, 4  ;;  %v4443_v49 = vcombine.low %v557_v45, %v557_v45 }
  0x39   : > { %v1821_v31 = vrot.slane %v1819_v19, 5  ;;  %5367 = vmatprep.subr.bf16.mxu0 %v5860_v12  ;;  %v1798_v35 = vsel %vm6158_vm5, %v1793_v24, %v1797_v3  ;;  %v435_v50 = vshll.u32 %v5875_v20, 16  ;;  %v541_v56 = vsel %vm6094_vm2, 0, %v430_v7  ;;  %759 = vst [vmem:[#allocation2 + $0x44] sm:$0x1] %v4440_v44 }
  0x3a   : > { %v6197_v46 = vcombine.low %v1788_v33, %v1798_v35  ;;  %v434_v25 = vrot.slane %v432_v47, 7  ;;  %v439_v51 = vshrl.u32 %v5877_v38, 16  ;;  %v442_v52 = vshll.u32 %v5877_v38, 16  ;;  %762 = vst [vmem:[#allocation2 + $0x50] sm:$0x1] %v4443_v49  ;;  %v6249_v33 = vld [vmem:[%s6078_s3 + $0x50] sm:$0xff]  }
  0x3b   : > { %5180 = vmatpush3.bf16.msra.mxu1 %v5879_v21  ;;  %v1822_v55 = vsel %vm6158_vm5, %v1817_v48, %v1821_v31  ;;  %v4441_v58 = vcombine.low %v541_v56, %v541_v56  ;;  %v4442_v60 = vcombine.high %v541_v56, %v541_v56  ;;  %v446_v61 = vshrl.u32 %v6203_v42, 16 }
  0x3c   : > { %7171 = vst [vmem:[#allocation5_spill] sm:$0xff] %v6197_v46  ;;  %5368 = vmatpush3.bf16.msra.mxu0 %v5860_v12  ;;  %5337 = vmatprep.mubr.bf16.mxu0 %v6197_v46  ;;  %v6226_v62 = vcombine.low %v1812_v6, %v1822_v55  ;;  %v437_v63 = vor.u32 %v435_v50, %v434_v25  ;;  %v441_v0 = vrot.slane %v439_v51, 7  ;;  %v558_v1 = vsel %vm6094_vm2, %v434_v25, 0  ;;  %v5880_v6 = vld [vmem:[%s7125_s1 + $0x1f0] sm:$0xff]  }
  0x3d   : > { %5369 = vmatprep.subr.bf16.mxu0 %v5866_v26  ;;  %5181 = vmatprep.subr.bf16.mxu1 %v5886_v54  ;;  %760 = vst [vmem:[#allocation2 + $0x48] sm:$0xf] %v4441_v58  ;;  %761 = vst [vmem:[#allocation2 + $0x4c] sm:$0xf] %v4442_v60  ;;  %v4446_v3 = vcombine.low %v558_v1, %v558_v1  ;;  %v6233_v4 = vrot.slane %v446_v61, 7  ;;  %v449_v8 = vshll.u32 %v6203_v42, 16 }
  0x3e   : > { %7172 = vst [vmem:[#allocation6_spill] sm:$0xff] %v6226_v62  ;;  %v453_v9 = vshrl.u32 %v6218_v53, 16  ;;  %v1661_v10 = vld [vmem:[#allocation2 + $0x3c] sm:$0xf]  ;;  %v542_v12 = vsel %vm6094_vm2, 0, %v437_v63  ;;  %v444_v13 = vor.u32 %v442_v52, %v441_v0  ;;  %v559_v14 = vsel %vm6094_vm2, %v441_v0, 0 }
  0x3f   : > { %5182 = vmatpush3.bf16.msra.mxu1 %v5886_v54  ;;  %5338 = vmatmul.mubr.bf16.gmra.mrb[4].mxu0 %v6226_v62  ;;  %v5869_v15 = vld [vmem:[#allocation2 + $0x3c] sm:$0xff]   ;;  %v1824_v17 = vshrl.u32 %v1661_v10, 16  ;;  %v4444_v18 = vcombine.low %v542_v12, %v542_v12  ;;  %v4445_v19 = vcombine.high %v542_v12, %v542_v12  ;;  %765 = vst [vmem:[#allocation2 + $0x5c] sm:$0x1] %v4446_v3  ;;  %v1827_v21 = vshll.u32 %v1661_v10, 16 }
  0x40   : > { %5370 = vmatpush3.bf16.msra.mxu0 %v5866_v26  ;;  %v1662_v16 = vld [vmem:[#allocation2 + $0x40] sm:$0xf]  ;;  %v4449_v20 = vcombine.low %v559_v14, %v559_v14  ;;  %v5874_v26 = vld [vmem:[%s7125_s1 + $0x1e8] sm:$0xff]   ;;  %v543_v27 = vsel %vm6094_vm2, 0, %v444_v13  ;;  %5149 = vmatprep.mubr.bf16.mxu1 %v5869_v15  ;;  %v1663_v28 = vld [vmem:[#allocation2 + $0x44] sm:$0x1]  ;;  %v451_v32 = vor.u32 %v449_v8, %v6233_v4 }
  0x41   : > { %5371 = vmatprep.subr.bf16.mxu0 %v5867_v43  ;;  %v1833_v23 = vshll.u32 %v1662_v16, 16  ;;  %v1837_v24 = vshrl.u32 %v1662_v16, 16  ;;  %v1826_v29 = vrot.slane %v1824_v17, 4  ;;  %763 = vst [vmem:[#allocation2 + $0x54] sm:$0xf] %v4444_v18  ;;  %v4447_v30 = vcombine.low %v543_v27, %v543_v27  ;;  %v5881_v10 = vld [vmem:[%s7125_s1 + $0x1f8] sm:$0xff]  }
  0x42   : > { %764 = vst [vmem:[#allocation2 + $0x58] sm:$0xf] %v4445_v19  ;;  %v4448_v31 = vcombine.high %v543_v27, %v543_v27  ;;  %768 = vst [vmem:[#allocation2 + $0x68] sm:$0x1] %v4449_v20  ;;  %v1829_v35 = vrot.slane %v1827_v21, 5  ;;  %v1843_v38 = vshll.u32 %v1663_v28, 16 }
  0x43   : > { %v1835_v36 = vrot.slane %v1833_v23, 5  ;;  %v1839_v37 = vrot.slane %v1837_v24, 4  ;;  %v1666_v39 = vld [vmem:[#allocation2 + $0x50] sm:$0x1]  ;;  %766 = vst [vmem:[#allocation2 + $0x60] sm:$0xf] %v4447_v30 }
  0x44   : > { %5372 = vmatpush3.bf16.msra.mxu0 %v5867_v43  ;;  %v1867_v40 = vshll.u32 %v1666_v39, 16  ;;  %767 = vst [vmem:[#allocation2 + $0x64] sm:$0xf] %v4448_v31  ;;  %v544_v41 = vsel %vm6094_vm2, 0, %v451_v32  ;;  %v6253_v42 = vrot.slane %v453_v9, 7  ;;  %v456_v43 = vshll.u32 %v6218_v53, 16 }
  0x45   : > { %5373 = vmatprep.subr.bf16.mxu0 %v5873_v2  ;;  %v6256_v7 = vld [vmem:[#allocation2 + $0x48] sm:$0xff]   ;;  %v1830_v44 = vor.u32 %v1829_v35, %v1826_v29  ;;  %v1840_v45 = vor.u32 %v1839_v37, %v1835_v36  ;;  %v1845_v47 = vrot.slane %v1843_v38, 5  ;;  %v4450_v48 = vcombine.low %v544_v41, %v544_v41  ;;  %v6285_v37 = vld [vmem:[%s7125_s1 + $0x80] sm:$0xff]   ;;  %v5890_v38 = vld [vmem:[%s6078_s3 + $0x58] sm:$0xff]  }
  0x46   : > { %v1664_v49 = vld [vmem:[#allocation2 + $0x48] sm:$0xf]  ;;  %v1665_v50 = vld [vmem:[#allocation2 + $0x4c] sm:$0xf]  ;;  %v6261_v56 = vrot.slane %v1867_v40, 5  ;;  %v4451_v25 = vcombine.high %v544_v41, %v544_v41  ;;  %v458_v51 = vor.u32 %v456_v43, %v6253_v42  ;;  %v460_v52 = vshrl.u32 %v6249_v33, 16  ;;  %5150 = vmatmul.mubr.bf16.gmra.mrb[8].mxu1 %v6256_v7 }
  0x47   : > { %v1831_v53 = vrot.slane %v1830_v44, 4  ;;  %v1841_v54 = vrot.slane %v1840_v45, 4  ;;  %v1848_v55 = vshrl.u32 %v1664_v49, 16  ;;  %v1851_v58 = vshll.u32 %v1664_v49, 16  ;;  %v1669_v60 = vld [vmem:[#allocation2 + $0x5c] sm:$0x1] }
  0x48   : > { %5374 = vmatpush3.bf16.msra.mxu0 %v5873_v2  ;;  %769 = vst [vmem:[#allocation2 + $0x6c] sm:$0xf] %v4450_v48  ;;  %v1857_v61 = vshll.u32 %v1665_v50, 16  ;;  %v1861_v63 = vshrl.u32 %v1665_v50, 16  ;;  %v1891_v0 = vshll.u32 %v1669_v60, 16  ;;  %v545_v1 = vsel %vm6094_vm2, 0, %v458_v51 }
  0x49   : > { %5375 = vmatprep.subr.bf16.mxu0 %v5874_v26  ;;  %770 = vst [vmem:[#allocation2 + $0x70] sm:$0xf] %v4451_v25  ;;  %v1836_v2 = vsel %vm6158_vm5, %v1831_v53, %v1835_v36  ;;  %v1846_v3 = vsel %vm6158_vm5, %v1841_v54, %v1845_v47  ;;  %v1850_v8 = vrot.slane %v1848_v55, 4  ;;  %v1853_v9 = vrot.slane %v1851_v58, 5  ;;  %v5876_v15 = vld [vmem:[#allocation2 + $0x54] sm:$0xff]   ;;  %v5892_v60 = vld [vmem:[%s7125_s1 + $0x28] sm:$0xff]  }
  0x4a   : > { %v6275_v12 = vcombine.low %v1836_v2, %v1846_v3  ;;  %v1859_v13 = vrot.slane %v1857_v61, 5  ;;  %v1863_v14 = vrot.slane %v1861_v63, 4  ;;  %v1667_v16 = vld [vmem:[#allocation2 + $0x54] sm:$0xf]  ;;  %v6277_v17 = vrot.slane %v1891_v0, 5  ;;  %5153 = vmatprep.mubr.bf16.mxu1 %v5876_v15  ;;  %5183 = vmatprep.subr.bf16.mxu1 %v5892_v60 }
  0x4b   : > { %v1854_v18 = vor.u32 %v1853_v9, %v1850_v8  ;;  %v5878_v19 = vld [vmem:[#allocation2 + $0x60] sm:$0xff]   ;;  %v1872_v20 = vshrl.u32 %v1667_v16, 16  ;;  %v4453_v21 = vcombine.low %v545_v1, %v545_v1  ;;  %v4454_v23 = vcombine.high %v545_v1, %v545_v1  ;;  %v1668_v27 = vld [vmem:[#allocation2 + $0x58] sm:$0xf]  ;;  %v1672_v41 = vld [vmem:[#allocation2 + $0x68] sm:$0x1]  ;;  %5184 = vmatpush3.bf16.msra.mxu1 %v5892_v60 }
  0x4c   : > { %7173 = vst [vmem:[#allocation7_spill] sm:$0xff] %v6275_v12  ;;  %5376 = vmatpush3.bf16.msra.mxu0 %v5874_v26  ;;  %5341 = vmatprep.mubr.bf16.mxu0 %v6275_v12  ;;  %v1864_v24 = vor.u32 %v1863_v14, %v1859_v13  ;;  %v1875_v28 = vshll.u32 %v1667_v16, 16  ;;  %v1670_v29 = vld [vmem:[#allocation2 + $0x60] sm:$0xf]  ;;  %v6280_v30 = vrot.slane %v460_v52, 7  ;;  %v1881_v32 = vshll.u32 %v1668_v27, 16 }
  0x4d   : > { %5377 = vmatprep.subr.bf16.mxu0 %v5880_v6  ;;  %v1855_v26 = vrot.slane %v1854_v18, 4  ;;  %v1874_v31 = vrot.slane %v1872_v20, 4  ;;  %v1885_v35 = vshrl.u32 %v1668_v27, 16  ;;  %v1671_v36 = vld [vmem:[#allocation2 + $0x64] sm:$0xf]  ;;  %v1896_v43 = vshrl.u32 %v1670_v29, 16 }
  0x4e   : > { %772 = vst [vmem:[#allocation2 + $0x78] sm:$0xf] %v4453_v21  ;;  %773 = vst [vmem:[#allocation2 + $0x7c] sm:$0xf] %v4454_v23  ;;  %v1865_v39 = vrot.slane %v1864_v24, 4  ;;  %v1877_v40 = vrot.slane %v1875_v28, 5  ;;  %5154 = vmatmul.mubr.bf16.gmra.mrb[12].mxu1 %v5878_v19 }
  0x4f   : > { %v1899_v44 = vshll.u32 %v1670_v29, 16  ;;  %v1860_v45 = vsel %vm6158_vm5, %v1855_v26, %v1859_v13  ;;  %v1883_v47 = vrot.slane %v1881_v32, 5  ;;  %v1887_v48 = vrot.slane %v1885_v35, 4  ;;  %v5896_v21 = vld [vmem:[%s6078_s3 + $0x68] sm:$0xff]   ;;  %v5898_v32 = vld [vmem:[%s7125_s1 + $0x30] sm:$0xff]  }
  0x50   : > { %5378 = vmatpush3.bf16.msra.mxu0 %v5880_v6  ;;  %v1905_v49 = vshll.u32 %v1671_v36, 16  ;;  %v5883_v50 = vld [vmem:[#allocation2 + $0x6c] sm:$0xff]   ;;  %v1870_v25 = vsel %vm6158_vm5, %v1865_v39, %v6261_v56  ;;  %v1878_v51 = vor.u32 %v1877_v40, %v1874_v31  ;;  %v1898_v52 = vrot.slane %v1896_v43, 4  ;;  %v5894_v56 = vld [vmem:[%s6078_s3 + $0x60] sm:$0xff]   ;;  %5185 = vmatprep.subr.bf16.mxu1 %v5898_v32 }
  0x51   : > { %5379 = vmatprep.subr.bf16.mxu0 %v5881_v10  ;;  %v1901_v53 = vrot.slane %v1899_v44, 5  ;;  %v6293_v54 = vcombine.low %v1860_v45, %v1870_v25  ;;  %v1888_v6 = vor.u32 %v1887_v48, %v1883_v47  ;;  %v1909_v58 = vshrl.u32 %v1671_v36, 16  ;;  %5157 = vmatprep.mubr.bf16.mxu1 %v5883_v50  ;;  %v5900_v43 = vld [vmem:[%s6078_s3 + $0x70] sm:$0xff]   ;;  %v1697_v35 = vld [vmem:[#allocation2 + $0xcc] sm:$0xf] }
  0x52   : > { %v1907_v55 = vrot.slane %v1905_v49, 5  ;;  %v1879_v61 = vrot.slane %v1878_v51, 4  ;;  %v1915_v0 = vshll.u32 %v1672_v41, 16  ;;  %v463_v1 = vshll.u32 %v6249_v33, 16  ;;  %5186 = vmatpush3.bf16.msra.mxu1 %v5898_v32  ;;  %v5902_v51 = vld [vmem:[%s6078_s3 + $0x78] sm:$0xff]  }
  0x53   : > { %7174 = vst [vmem:[#allocation8_spill] sm:$0xff] %v6293_v54  ;;  %v1902_v63 = vor.u32 %v1901_v53, %v1898_v52  ;;  %5342 = vmatmul.mubr.bf16.gmra.mrb[8].mxu0 %v6293_v54  ;;  %v1889_v2 = vrot.slane %v1888_v6, 4  ;;  %v1911_v3 = vrot.slane %v1909_v58, 4  ;;  %v467_v8 = vshrl.u32 %v5890_v38, 16  ;;  %v5904_v53 = vld [vmem:[%s7125_s1 + $0x38] sm:$0xff]  }
  0x54   : > { %5380 = vmatpush3.bf16.msra.mxu0 %v5881_v10  ;;  %v470_v9 = vshll.u32 %v5890_v38, 16  ;;  %v1884_v13 = vsel %vm6158_vm5, %v1879_v61, %v1883_v47  ;;  %v1917_v15 = vrot.slane %v1915_v0, 5  ;;  %v465_v16 = vor.u32 %v463_v1, %v6280_v30  ;;  %v1673_v61 = vld [vmem:[#allocation2 + $0x6c] sm:$0xf]  ;;  %5187 = vmatprep.subr.bf16.mxu1 %v5904_v53 }
  0x55   : > { %5413 = vmatprep.subr.bf16.mxu0 %v6285_v37  ;;  %v1903_v14 = vrot.slane %v1902_v63, 4  ;;  %v1894_v33 = vsel %vm6158_vm5, %v1889_v2, %v6277_v17  ;;  %v1912_v10 = vor.u32 %v1911_v3, %v1907_v55  ;;  %v6308_v18 = vld [vmem:[#allocation2 + $0x78] sm:$0xff]   ;;  %v6310_v19 = vrot.slane %v467_v8, 7 }
  0x56   : > { %v474_v20 = vshrl.u32 %v5894_v56, 16  ;;  %v6313_v23 = vcombine.low %v1884_v13, %v1894_v33  ;;  %v546_v27 = vsel %vm6094_vm2, 0, %v465_v16  ;;  %v477_v28 = vshll.u32 %v5894_v56, 16  ;;  %5158 = vmatmul.mubr.bf16.gmra.mrb[16].mxu1 %v6308_v18  ;;  %v6352_v56 = vld [vmem:[#allocation2 + $0x70] sm:$0xf] }
  0x57   : > { %v1908_v24 = vsel %vm6158_vm5, %v1903_v14, %v1907_v55  ;;  %v1913_v29 = vrot.slane %v1912_v10, 4  ;;  %v4456_v17 = vcombine.low %v546_v27, %v546_v27  ;;  %v4457_v26 = vcombine.high %v546_v27, %v546_v27  ;;  %5188 = vmatpush3.bf16.msra.mxu1 %v5904_v53  ;;  %v5893_v27 = vld [vmem:[%s7125_s1 + $0x88] sm:$0xff]  }
  0x58   : > { %7175 = vst [vmem:[#allocation9_spill] sm:$0xff] %v6313_v23  ;;  %v472_v31 = vor.u32 %v470_v9, %v6310_v19  ;;  %5345 = vmatprep.mubr.bf16.mxu0 %v6313_v23  ;;  %v6326_v36 = vrot.slane %v474_v20, 7  ;;  %v481_v38 = vshrl.u32 %v5896_v21, 16  ;;  %v484_v39 = vshll.u32 %v5896_v21, 16 }
  0x59   : > { %v1918_v40 = vsel %vm6158_vm5, %v1913_v29, %v1917_v15  ;;  %775 = vst [vmem:[#allocation2 + $0x84] sm:$0xf] %v4456_v17  ;;  %776 = vst [vmem:[#allocation2 + $0x88] sm:$0xf] %v4457_v26  ;;  %v488_v50 = vshrl.u32 %v5900_v43, 16  ;;  %v491_v25 = vshll.u32 %v5900_v43, 16 }
  0x5a   : > { %v547_v41 = vsel %vm6094_vm2, 0, %v472_v31  ;;  %v6333_v44 = vcombine.low %v1908_v24, %v1918_v40  ;;  %v479_v48 = vor.u32 %v477_v28, %v6326_v36  ;;  %v6336_v49 = vrot.slane %v481_v38, 7  ;;  %v6367_v24 = vld [vmem:[%s7125_s1 + $0x180] sm:$0xff]   ;;  %v1676_v43 = vld [vmem:[#allocation2 + $0x78] sm:$0xf] }
  0x5b   : > { %v4459_v45 = vcombine.low %v547_v41, %v547_v41  ;;  %v4460_v47 = vcombine.high %v547_v41, %v547_v41  ;;  %v6347_v60 = vrot.slane %v488_v50, 7  ;;  %v495_v63 = vshrl.u32 %v5902_v51, 16  ;;  %5221 = vmatprep.subr.bf16.mxu1 %v6367_v24 }
  0x5c   : > { %7176 = vst [vmem:[#allocation10_spill] sm:$0xff] %v6333_v44  ;;  %5346 = vmatmul.mubr.bf16.gmra.mrb[12].mxu0 %v6333_v44  ;;  %v548_v52 = vsel %vm6094_vm2, 0, %v479_v48  ;;  %v486_v58 = vor.u32 %v484_v39, %v6336_v49  ;;  %v498_v0 = vshll.u32 %v5902_v51, 16  ;;  %v560_v1 = vsel %vm6094_vm2, %v6233_v4, 0  ;;  %v5899_v48 = vld [vmem:[%s7125_s1 + $0x90] sm:$0xff]  }
  0x5d   : > { %778 = vst [vmem:[#allocation2 + $0x90] sm:$0xf] %v4459_v45  ;;  %779 = vst [vmem:[#allocation2 + $0x94] sm:$0xf] %v4460_v47  ;;  %5381 = vmatprep.mubr.bf16.mxu0 %v6174_v11  ;;  %v4462_v6 = vcombine.low %v548_v52, %v548_v52  ;;  %v4463_v55 = vcombine.high %v548_v52, %v548_v52  ;;  %v1920_v2 = vshrl.u32 %v1673_v61, 16  ;;  %v1923_v13 = vshll.u32 %v1673_v61, 16 }
  0x5e   : > { %v549_v3 = vsel %vm6094_vm2, 0, %v486_v58  ;;  %v493_v8 = vor.u32 %v491_v25, %v6347_v60  ;;  %v4452_v9 = vcombine.low %v560_v1, %v560_v1  ;;  %v6359_v33 = vrot.slane %v495_v63, 7  ;;  %v6395_v52 = vld [vmem:[#allocation2 + $0x7c] sm:$0xf] }
  0x5f   : > { %781 = vst [vmem:[#allocation2 + $0x9c] sm:$0xf] %v4462_v6  ;;  %782 = vst [vmem:[#allocation2 + $0xa0] sm:$0xf] %v4463_v55  ;;  %v4465_v15 = vcombine.low %v549_v3, %v549_v3  ;;  %v4466_v16 = vcombine.high %v549_v3, %v549_v3  ;;  %v1922_v10 = vrot.slane %v1920_v2, 4  ;;  %v1925_v20 = vrot.slane %v1923_v13, 5 }
  0x60   : > { %v6357_v14 = vld [vmem:[#allocation2 + $0x84] sm:$0xff]   ;;  %v550_v4 = vsel %vm6094_vm2, 0, %v493_v8  ;;  %771 = vst [vmem:[#allocation2 + $0x74] sm:$0x1] %v4452_v9  ;;  %v1929_v21 = vshll.u32 %v6352_v56, 16  ;;  %v500_v17 = vor.u32 %v498_v0, %v6359_v33  ;;  %v1933_v26 = vshrl.u32 %v6352_v56, 16 }
  0x61   : > { %5161 = vmatprep.mubr.bf16.mxu1 %v6357_v14  ;;  %784 = vst [vmem:[#allocation2 + $0xa8] sm:$0xf] %v4465_v15  ;;  %785 = vst [vmem:[#allocation2 + $0xac] sm:$0xf] %v4466_v16  ;;  %v4468_v28 = vcombine.low %v550_v4, %v550_v4  ;;  %v4469_v29 = vcombine.high %v550_v4, %v550_v4  ;;  %v1926_v32 = vor.u32 %v1925_v20, %v1922_v10  ;;  %v1679_v2 = vld [vmem:[#allocation2 + $0x84] sm:$0xf] }
  0x62   : > { %v6377_v38 = vrot.slane %v1929_v21, 5  ;;  %v551_v39 = vsel %vm6094_vm2, 0, %v500_v17  ;;  %v1935_v40 = vrot.slane %v1933_v26, 4  ;;  %v561_v41 = vsel %vm6094_vm2, %v6253_v42, 0  ;;  %v5905_v8 = vld [vmem:[%s7125_s1 + $0x98] sm:$0xff]  }
  0x63   : > { %787 = vst [vmem:[#allocation2 + $0xb4] sm:$0xf] %v4468_v28  ;;  %788 = vst [vmem:[#allocation2 + $0xb8] sm:$0xf] %v4469_v29  ;;  %v562_v45 = vsel %vm6094_vm2, %v6280_v30, 0  ;;  %v7131_v47 = vrot.slane %v6145_v5, 5  ;;  %v4471_v50 = vcombine.low %v551_v39, %v551_v39  ;;  %v4472_v25 = vcombine.high %v551_v39, %v551_v39 }
  0x64   : > { %v6375_v31 = vld [vmem:[#allocation2 + $0x90] sm:$0xff]   ;;  %5382 = vmatmul.mubr.bf16.vlgmr.msra.gmra.mrb[0].mxu0 %v6197_v46  ;;  %v4455_v51 = vcombine.low %v561_v41, %v561_v41  ;;  %v1936_v30 = vor.u32 %v1935_v40, %v6377_v38  ;;  %v1944_v53 = vshrl.u32 %v1676_v43, 16  ;;  %v6401_v6 = vrot.slane %v1926_v32, 4  ;;  %v6418_v4 = vld [vmem:[#allocation2 + $0x88] sm:$0xf] }
  0x65   : > { %5414 = vmatpush3.bf16.msra.mxu0 %v6285_v37  ;;  %5162 = vmatmul.mubr.bf16.gmra.mrb[20].mxu1 %v6375_v31  ;;  %v4458_v37 = vcombine.low %v562_v45, %v562_v45  ;;  %790 = vst [vmem:[#allocation2 + $0xc0] sm:$0xf] %v4471_v50  ;;  %791 = vst [vmem:[#allocation2 + $0xc4] sm:$0xf] %v4472_v25  ;;  %v1947_v55 = vshll.u32 %v1676_v43, 16  ;;  %v1953_v58 = vshll.u32 %v6395_v52, 16 }
  0x66   : > { %5385 = vmatprep.mubr.bf16.mxu0 %v6226_v62  ;;  %5415 = vmatprep.subr.bf16.mxu0 %v5893_v27  ;;  %v6398_v42 = vld [vmem:[#allocation2 + $0x9c] sm:$0xff]   ;;  %774 = vst [vmem:[#allocation2 + $0x80] sm:$0x1] %v4455_v51  ;;  %v1957_v61 = vshrl.u32 %v6395_v52, 16  ;;  %v6408_v0 = vrot.slane %v1936_v30, 4  ;;  %v1946_v1 = vrot.slane %v1944_v53, 4  ;;  %v1932_v25 = vsel %vm6158_vm5, %v6401_v6, %v6377_v38 }
  0x67   : > { %5165 = vmatprep.mubr.bf16.mxu1 %v6398_v42  ;;  %v6406_v63 = vld [vmem:[#allocation2 + $0x74] sm:$0x1]  ;;  %777 = vst [vmem:[#allocation2 + $0x8c] sm:$0x1] %v4458_v37  ;;  %v1949_v13 = vrot.slane %v1947_v55, 5  ;;  %v6416_v15 = vrot.slane %v1953_v58, 5 }
  0x68   : > { %v6410_v3 = vld [vmem:[#allocation2 + $0xa8] sm:$0xff]   ;;  %v1939_v9 = vshll.u32 %v6406_v63, 16  ;;  %v1959_v16 = vrot.slane %v1957_v61, 4  ;;  %v1968_v10 = vshrl.u32 %v1679_v2, 16  ;;  %v1971_v17 = vshll.u32 %v1679_v2, 16  ;;  %v5908_v45 = vld [vmem:[%s7125_s1 + $0xa0] sm:$0xff]  }
  0x69   : > { %5416 = vmatpush3.bf16.msra.mxu0 %v5893_v27  ;;  %v6424_v27 = vrot.slane %v7131_v47, 4  ;;  %v1950_v28 = vor.u32 %v1949_v13, %v1946_v1  ;;  %v1977_v32 = vshll.u32 %v6418_v4, 16  ;;  %v1981_v39 = vshrl.u32 %v6418_v4, 16  ;;  %v1682_v41 = vld [vmem:[#allocation2 + $0x90] sm:$0xf]  ;;  %v5906_v37 = vld [vmem:[#allocation2] sm:$0xff]  }
  0x6a   : > { %5417 = vmatprep.subr.bf16.mxu0 %v5899_v48  ;;  %v6420_v20 = vld [vmem:[#allocation2 + $0xb4] sm:$0xff]   ;;  %v1941_v21 = vrot.slane %v1939_v9, 5  ;;  %v1960_v29 = vor.u32 %v1959_v16, %v6416_v15  ;;  %v1970_v26 = vrot.slane %v1968_v10, 4  ;;  %v563_v40 = vsel %vm6094_vm2, %v6310_v19, 0  ;;  %v6707_v62 = vld [vmem:[#allocation2 + $0x40] sm:$0xf] }
  0x6b   : > { %v1951_v43 = vrot.slane %v1950_v28, 4  ;;  %v4461_v50 = vcombine.low %v563_v40, %v563_v40  ;;  %v1973_v53 = vrot.slane %v1971_v17, 5  ;;  %v6454_v61 = vrot.slane %v1977_v32, 5  ;;  %v6456_v6 = vld [vmem:[#allocation2 + $0x94] sm:$0xf]  ;;  %v5910_v28 = vld [vmem:[%s7125_s1 + $0xa8] sm:$0xff]  }
  0x6c   : > { %5386 = vmatmul.mubr.bf16.gmra.mrb[4].mxu0 %v6275_v12  ;;  %v1942_v19 = vsel %vm6158_vm5, %v6408_v0, %v1941_v21  ;;  %v1983_v38 = vrot.slane %v1981_v39, 4  ;;  %v5903_v0 = vld [vmem:[#allocation2 + $0xc0] sm:$0xff]   ;;  %v1992_v9 = vshrl.u32 %v1682_v41, 16  ;;  %v1995_v13 = vshll.u32 %v1682_v41, 16  ;;  %v1685_v39 = vld [vmem:[#allocation2 + $0x9c] sm:$0xf] }
  0x6d   : > { %5166 = vmatmul.mubr.bf16.gmra.mrb[24].mxu1 %v6410_v3  ;;  %5389 = vmatprep.mubr.bf16.mxu0 %v6293_v54  ;;  %v6446_v51 = vld [vmem:[#allocation2 + $0x80] sm:$0x1]  ;;  %v1956_v55 = vsel %vm6158_vm5, %v1951_v43, %v6416_v15  ;;  %780 = vst [vmem:[#allocation2 + $0x98] sm:$0x1] %v4461_v50  ;;  %v1974_v1 = vor.u32 %v1973_v53, %v1970_v26  ;;  %v2001_v15 = vshll.u32 %v6456_v6, 16  ;;  %v2005_v21 = vshrl.u32 %v6456_v6, 16 }
  0x6e   : > { %5418 = vmatpush3.bf16.msra.mxu0 %v5899_v48  ;;  %5169 = vmatprep.mubr.bf16.mxu1 %v6420_v20  ;;  %v1961_v48 = vrot.slane %v1960_v29, 4  ;;  %v6448_v30 = vld [vmem:[#allocation2 + $0x8c] sm:$0x1]  ;;  %v1963_v58 = vshll.u32 %v6446_v51, 16  ;;  %v1984_v10 = vor.u32 %v1983_v38, %v6454_v61  ;;  %v1994_v26 = vrot.slane %v1992_v9, 4 }
  0x6f   : > { %5419 = vmatprep.subr.bf16.mxu0 %v5905_v8  ;;  %v1987_v2 = vshll.u32 %v6448_v30, 16  ;;  %v6465_v29 = vrot.slane %v1974_v1, 4  ;;  %v1997_v32 = vrot.slane %v1995_v13, 5  ;;  %v6472_v41 = vrot.slane %v2001_v15, 5  ;;  %v6474_v50 = vld [vmem:[#allocation2 + $0xa0] sm:$0xf] }
  0x70   : > { %v1965_v16 = vrot.slane %v1963_v58, 5  ;;  %v1985_v40 = vrot.slane %v1984_v10, 4  ;;  %v2007_v43 = vrot.slane %v2005_v21, 4  ;;  %v6477_v53 = vcombine.low %v1932_v25, %v1942_v19  ;;  %v1688_v25 = vld [vmem:[#allocation2 + $0xa8] sm:$0xf] }
  0x71   : > { %v6467_v17 = vrot.slane %v1987_v2, 5  ;;  %v1998_v38 = vor.u32 %v1997_v32, %v1994_v26  ;;  %v564_v1 = vsel %vm6094_vm2, %v6326_v36, 0  ;;  %v2016_v9 = vshrl.u32 %v1685_v39, 16  ;;  %v6489_v19 = vld [vmem:[#allocation2 + $0xac] sm:$0xf] }
  0x72   : > { %5420 = vmatpush3.bf16.msra.mxu0 %v5905_v8  ;;  %v1966_v8 = vsel %vm6158_vm5, %v1961_v48, %v1965_v16  ;;  %7177 = vst [vmem:[#allocation11_spill] sm:$0xff] %v6477_v53  ;;  %v1980_v48 = vsel %vm6158_vm5, %v6465_v29, %v6454_v61  ;;  %v4464_v2 = vcombine.low %v564_v1, %v564_v1  ;;  %v2025_v16 = vshll.u32 %v6474_v50, 16  ;;  %v1691_v1 = vld [vmem:[#allocation2 + $0xb4] sm:$0xf]  ;;  %v2982_v54 = vld [vmem:[#allocation2 + $0xc] sm:$0xe] }
  0x73   : > { %5421 = vmatprep.subr.bf16.mxu0 %v5908_v45  ;;  %v6479_v58 = vcombine.low %v1956_v55, %v1966_v8  ;;  %v1990_v55 = vsel %vm6158_vm5, %v1985_v40, %v6467_v17  ;;  %v1999_v36 = vrot.slane %v1998_v38, 4  ;;  %v2018_v15 = vrot.slane %v2016_v9, 4  ;;  %v5950_v12 = vld [vmem:[#allocation2 + $0x20] sm:$0x1] }
  0x74   : > { %5390 = vmatmul.mubr.bf16.gmra.mrb[8].mxu0 %v6313_v23  ;;  %v6494_v13 = vld [vmem:[#allocation2 + $0x98] sm:$0x1]  ;;  %783 = vst [vmem:[#allocation2 + $0xa4] sm:$0x1] %v4464_v2  ;;  %v2029_v21 = vshrl.u32 %v6474_v50, 16  ;;  %v6505_v26 = vrot.slane %v2025_v16, 5 }
  0x75   : > { %5170 = vmatmul.mubr.bf16.gmra.mrb[28].mxu1 %v5903_v0  ;;  %5393 = vmatprep.mubr.bf16.mxu0 %v6333_v44  ;;  %7178 = vst [vmem:[#allocation12_spill] sm:$0xff] %v6479_v58  ;;  %v2008_v0 = vor.u32 %v2007_v43, %v6472_v41  ;;  %v2011_v10 = vshll.u32 %v6494_v13, 16  ;;  %v2004_v29 = vsel %vm6158_vm5, %v1999_v36, %v6472_v41  ;;  %v565_v32 = vsel %vm6094_vm2, %v6336_v49, 0  ;;  %v6515_v36 = vld [vmem:[#allocation2 + $0xb8] sm:$0xf] }
  0x76   : > { %5189 = vmatprep.mubr.bf16.mxu1 %v5906_v37  ;;  %5422 = vmatpush3.bf16.msra.mxu0 %v5908_v45  ;;  %v2019_v37 = vshll.u32 %v1685_v39, 16  ;;  %v5912_v45 = vld [vmem:[%s7125_s1 + $0xb0] sm:$0xff]   ;;  %v5909_v39 = vld [vmem:[%s7125_s1 + $0x188] sm:$0xff]   ;;  %v2031_v40 = vrot.slane %v2029_v21, 4  ;;  %v4467_v43 = vcombine.low %v565_v32, %v565_v32  ;;  %v2040_v38 = vshrl.u32 %v1688_v25, 16  ;;  %v5914_v49 = vld [vmem:[%s7125_s1 + $0xb8] sm:$0xff]  }
  0x77   : > { %5423 = vmatprep.subr.bf16.mxu0 %v5910_v28  ;;  %v2009_v61 = vrot.slane %v2008_v0, 4  ;;  %v2013_v8 = vrot.slane %v2011_v10, 5  ;;  %v2043_v2 = vshll.u32 %v1688_v25, 16  ;;  %v2049_v41 = vshll.u32 %v6489_v19, 16  ;;  %v5944_v10 = vld [vmem:[#allocation2 + $0xc] sm:$0xff]  }
  0x78   : > { %v2021_v17 = vrot.slane %v2019_v37, 5  ;;  %v2053_v9 = vshrl.u32 %v6489_v19, 16  ;;  %v2032_v37 = vor.u32 %v2031_v40, %v6505_v26  ;;  %786 = vst [vmem:[#allocation2 + $0xb0] sm:$0x1] %v4467_v43  ;;  %v2042_v25 = vrot.slane %v2040_v38, 4 }
  0x79   : > { %v566_v16 = vsel %vm6094_vm2, %v6347_v60, 0  ;;  %v6530_v32 = vrot.slane %v2049_v41, 5  ;;  %v5911_v60 = vld [vmem:[%s7125_s1 + $0x190] sm:$0xff]   ;;  %v2064_v38 = vshrl.u32 %v1691_v1, 16  ;;  %v2073_v41 = vshll.u32 %v6515_v36, 16 }
  0x7a   : > { %5424 = vmatpush3.bf16.msra.mxu0 %v5910_v28  ;;  %v2022_v0 = vor.u32 %v2021_v17, %v2018_v15  ;;  %v2014_v28 = vsel %vm6158_vm5, %v2009_v61, %v2013_v8  ;;  %v6528_v15 = vcombine.low %v1980_v48, %v1990_v55  ;;  %v2045_v17 = vrot.slane %v2043_v2, 5  ;;  %v6533_v61 = vld [vmem:[#allocation2 + $0x18] sm:$0xff]   ;;  %v1694_v48 = vld [vmem:[#allocation2 + $0xc0] sm:$0xf] }
  0x7b   : > { %5425 = vmatprep.subr.bf16.mxu0 %v5912_v45  ;;  %v2033_v8 = vrot.slane %v2032_v37, 4  ;;  %v2055_v40 = vrot.slane %v2053_v9, 4  ;;  %v4470_v43 = vcombine.low %v566_v16, %v566_v16  ;;  %v6539_v55 = vcombine.low %v2004_v29, %v2014_v28  ;;  %v6550_v29 = vld [vmem:[%s7125_s1 + $0x140] sm:$0xff]  }
  0x7c   : > { %5394 = vmatmul.mubr.bf16.gmra.mrb[12].mxu0 %v6477_v53  ;;  %7179 = vst [vmem:[#allocation13_spill] sm:$0xff] %v6528_v15  ;;  %v2023_v21 = vrot.slane %v2022_v0, 4  ;;  %v6541_v0 = vld [vmem:[#allocation2 + $0xa4] sm:$0x1]  ;;  %v2046_v2 = vor.u32 %v2045_v17, %v2042_v25  ;;  %v2066_v47 = vrot.slane %v2064_v38, 4  ;;  %v2077_v9 = vshrl.u32 %v6515_v36, 16 }
  0x7d   : > { %5190 = vmatmul.mubr.bf16.vlgmr.msra.gmra.mrb[0].mxu1 %v5944_v10  ;;  %5397 = vmatprep.mubr.bf16.mxu0 %v6479_v58  ;;  %7180 = vst [vmem:[#allocation14_spill] sm:$0xff] %v6539_v55  ;;  %v2035_v37 = vshll.u32 %v6541_v0, 16  ;;  %v2056_v10 = vor.u32 %v2055_v40, %v6530_v32  ;;  %789 = vst [vmem:[#allocation2 + $0xbc] sm:$0x1] %v4470_v43  ;;  %v6557_v16 = vld [vmem:[#allocation2 + $0xc4] sm:$0xf] }
  0x7e   : > { %5222 = vmatpush3.bf16.msra.mxu1 %v6367_v24  ;;  %5193 = vmatprep.mubr.bf16.mxu1 %v6533_v61  ;;  %v2067_v24 = vshll.u32 %v1691_v1, 16  ;;  %v2047_v28 = vrot.slane %v2046_v2, 4  ;;  %v6552_v1 = vrot.slane %v2073_v41, 5  ;;  %v2028_v17 = vsel %vm6158_vm5, %v2023_v21, %v6505_v26 }
  0x7f   : > { %5223 = vmatprep.subr.bf16.mxu1 %v5909_v39  ;;  %5426 = vmatpush3.bf16.msra.mxu0 %v5912_v45  ;;  %v567_v45 = vsel %vm6094_vm2, %v6359_v33, 0  ;;  %v2037_v40 = vrot.slane %v2035_v37, 5  ;;  %v2079_v43 = vrot.slane %v2077_v9, 4  ;;  %v6562_v2 = vld [vmem:[#allocation2 + $0xb0] sm:$0x1]  ;;  %v2410_v33 = vshrl.u32 %v1694_v48, 16 }
  0x80   : > { %5427 = vmatprep.subr.bf16.mxu0 %v5914_v49  ;;  %v2069_v25 = vrot.slane %v2067_v24, 5  ;;  %v4473_v38 = vcombine.low %v567_v45, %v567_v45  ;;  %v2057_v24 = vrot.slane %v2056_v10, 4  ;;  %v2413_v58 = vshll.u32 %v1694_v48, 16  ;;  %v6583_v9 = vld [vmem:[#allocation2 + $0xd0] sm:$0xf] }
  0x81   : > { %v2038_v26 = vsel %vm6158_vm5, %v2033_v8, %v2037_v40  ;;  %v2080_v21 = vor.u32 %v2079_v43, %v6552_v1  ;;  %v2419_v37 = vshll.u32 %v6557_v16, 16  ;;  %v2052_v8 = vsel %vm6158_vm5, %v2047_v28, %v6530_v32  ;;  %7183 = vst [vmem:[#allocation17_spill] sm:$0xff] %v6583_v9 }
  0x82   : > { %5224 = vmatpush3.bf16.msra.mxu1 %v5909_v39  ;;  %v2070_v41 = vor.u32 %v2069_v25, %v2066_v47  ;;  %v2059_v39 = vshll.u32 %v6562_v2, 16  ;;  %792 = vst [vmem:[#allocation2 + $0xc8] sm:$0x1] %v4473_v38  ;;  %v6574_v47 = vld [vmem:[#allocation2 + $0x24] sm:$0xff]   ;;  %v2412_v48 = vrot.slane %v2410_v33, 4  ;;  %v2415_v10 = vrot.slane %v2413_v58, 5 }
  0x83   : > { %5225 = vmatprep.subr.bf16.mxu1 %v5911_v60  ;;  %5428 = vmatpush3.bf16.msra.mxu0 %v5914_v49  ;;  %7181 = vst [vmem:[#allocation15_spill] sm:$0xff] %v6574_v47  ;;  %v6578_v49 = vcombine.low %v2028_v17, %v2038_v26  ;;  %v6585_v25 = vld [vmem:[#allocation2 + $0x30] sm:$0xff]   ;;  %v6588_v43 = vrot.slane %v2419_v37, 5  ;;  %v2423_v17 = vshrl.u32 %v6557_v16, 16  ;;  %v2081_v32 = vrot.slane %v2080_v21, 4 }
  0x84   : > { %5398 = vmatmul.mubr.bf16.gmra.mrb[16].mxu0 %v6528_v15  ;;  %5461 = vmatprep.subr.bf16.mxu0 %v6550_v29  ;;  %7184 = vst [vmem:[#allocation18_spill] sm:$0xff] %v6585_v25  ;;  %v2061_v45 = vrot.slane %v2059_v39, 5  ;;  %v2071_v40 = vrot.slane %v2070_v41, 4  ;;  %v6591_v38 = vld [vmem:[#allocation2 + $0xd4] sm:$0x1]  ;;  %v2416_v58 = vor.u32 %v2415_v10, %v2412_v48  ;;  %v2696_v28 = vshrl.u32 %v1697_v35, 16 }
  0x85   : > { %5194 = vmatmul.mubr.bf16.gmra.mrb[4].mxu1 %v6574_v47  ;;  %5401 = vmatprep.mubr.bf16.mxu0 %v6539_v55  ;;  %7182 = vst [vmem:[#allocation16_spill] sm:$0xff] %v6578_v49  ;;  %7185 = vst [vmem:[#allocation19_spill] sm:$0xff] %v6591_v38  ;;  %v6593_v26 = vld [vmem:[#allocation2 + $0xbc] sm:$0x1]  ;;  %v2699_v33 = vshll.u32 %v1697_v35, 16  ;;  %v5915_v55 = vld [vmem:[%s7125_s1 + $0x1a0] sm:$0xff]  }
  0x86   : > { %5197 = vmatprep.mubr.bf16.mxu1 %v6585_v25  ;;  %5226 = vmatpush3.bf16.msra.mxu1 %v5911_v60  ;;  %v2062_v60 = vsel %vm6158_vm5, %v2057_v24, %v2061_v45  ;;  %v2083_v41 = vshll.u32 %v6593_v26, 16  ;;  %v2425_v39 = vrot.slane %v2423_v17, 4  ;;  %v2705_v37 = vshll.u32 %v6583_v9, 16  ;;  %v6604_v48 = vld [vmem:[#allocation2 + $0x4] sm:$0xf] }
  0x87   : > { %5227 = vmatprep.subr.bf16.mxu1 %v5913_v22  ;;  %v6602_v15 = vcombine.low %v2052_v8, %v2062_v60  ;;  %v2417_v53 = vrot.slane %v2416_v58, 4  ;;  %v2698_v21 = vrot.slane %v2696_v28, 4  ;;  %v2701_v44 = vrot.slane %v2699_v33, 5  ;;  %v2981_v45 = vld [vmem:[#allocation2] sm:$0xe]  ;;  %v5917_v8 = vld [vmem:[%s7125_s1 + $0x1a8] sm:$0xff]  }
  0x88   : > { %v2085_v35 = vrot.slane %v2083_v41, 5  ;;  %v2426_v10 = vor.u32 %v2425_v39, %v6588_v43  ;;  %v6607_v23 = vrot.slane %v2705_v37, 5  ;;  %v2709_v24 = vshrl.u32 %v6583_v9, 16  ;;  %v6621_v39 = vld [vmem:[#allocation2 + $0x3c] sm:$0xff]  }
  0x89   : > { %7186 = vst [vmem:[#allocation20_spill] sm:$0xff] %v6602_v15  ;;  %v6613_v17 = vld [vmem:[#allocation2 + $0xc8] sm:$0x1]  ;;  %v2702_v58 = vor.u32 %v2701_v44, %v2698_v21  ;;  %v2715_v28 = vshll.u32 %v6591_v38, 16  ;;  %7187 = vst [vmem:[#allocation21_spill] sm:$0xff] %v6621_v39  ;;  %v2422_v37 = vsel %vm6158_vm5, %v2417_v53, %v6588_v43  ;;  %v5919_v53 = vld [vmem:[%s7125_s1 + $0x1b0] sm:$0xff]  }
  0x8a   : > { %5228 = vmatpush3.bf16.msra.mxu1 %v5913_v22  ;;  %v2076_v22 = vsel %vm6158_vm5, %v2071_v40, %v6552_v1  ;;  %v2427_v33 = vrot.slane %v2426_v10, 4  ;;  %v2429_v60 = vshll.u32 %v6613_v17, 16  ;;  %v2711_v41 = vrot.slane %v2709_v24, 4  ;;  %v6632_v1 = vld [vmem:[#allocation2 + $0x8] sm:$0x1] }
  0x8b   : > { %5229 = vmatprep.subr.bf16.mxu1 %v5915_v55  ;;  %v2086_v44 = vsel %vm6158_vm5, %v2081_v32, %v2085_v35  ;;  %v6630_v21 = vrot.slane %v2702_v58, 4  ;;  %v2717_v24 = vrot.slane %v2715_v28, 5  ;;  %v3052_v32 = vrot.slane %v6604_v48, 5  ;;  %v2983_v28 = vld [vmem:[#allocation2 + $0x18] sm:$0xe] }
  0x8c   : > { %5402 = vmatmul.mubr.bf16.gmra.mrb[20].mxu0 %v6578_v49  ;;  %v2431_v40 = vrot.slane %v2429_v60, 5  ;;  %v2712_v10 = vor.u32 %v2711_v41, %v6607_v23  ;;  %v4638_v43 = vrot.slane %v2981_v45, 9  ;;  %v4639_v35 = vrot.slane %v2982_v54, 9  ;;  %v5949_v49 = vld [vmem:[#allocation2 + $0x1c] sm:$0xf] }
  0x8d   : > { %5198 = vmatmul.mubr.bf16.gmra.mrb[8].mxu1 %v6621_v39  ;;  %5405 = vmatprep.mubr.bf16.mxu0 %v6602_v15  ;;  %v6650_v60 = vcombine.low %v2076_v22, %v2086_v44  ;;  %v3055_v9 = vrot.slane %v6632_v1, 5  ;;  %v3054_v45 = vrot.slane %v3052_v32, 4  ;;  %v7193_v54 = vrot.slane %v6145_v5, 5  ;;  %v5921_v5 = vld [vmem:[%s7125_s1 + $0x1b8] sm:$0xff]  }
  0x8e   : > { %5201 = vmatprep.mubr.bf16.mxu1 %v6256_v7  ;;  %5230 = vmatpush3.bf16.msra.mxu1 %v5915_v55  ;;  %v7190_v7 = vrot.slane %v6135_v57, 5  ;;  %v2432_v41 = vsel %vm6158_vm5, %v2427_v33, %v2431_v40  ;;  %v2713_v55 = vrot.slane %v2712_v10, 4  ;;  %v4640_v44 = vrot.slane %v2983_v28, 9  ;;  %v6665_v40 = vld [vmem:[#allocation2 + $0x30] sm:$0xe] }
  0x8f   : > { %5231 = vmatprep.subr.bf16.mxu1 %v5917_v8  ;;  %7191 = vst [vmem:[#allocation22_spill] sm:$0xff] %v6650_v60  ;;  %v6655_v15 = vcombine.low %v2422_v37, %v2432_v41  ;;  %v3060_v57 = vsel %vm6637_vm8, %v4639_v35, %v7193_v54  ;;  %v3069_v33 = vrot.slane %v5950_v12, 5  ;;  %v3053_v10 = vsel %vm6637_vm8, %v4638_v43, %v3052_v32  ;;  %v5951_v12 = vld [vmem:[#allocation2 + $0x28] sm:$0xf]  ;;  %v6677_v35 = vld [vmem:[#allocation2 + $0x3c] sm:$0xe] }
  0x90   : > { %v3063_v58 = vsel %vm6637_vm8, %v6424_v27, %v7190_v7  ;;  %v3066_v27 = vrot.slane %v5949_v49, 5  ;;  %v6661_v7 = vld [vmem:[#allocation2 + $0x24] sm:$0xe]  ;;  %v2708_v49 = vsel %vm6158_vm5, %v6630_v21, %v6607_v23  ;;  %v2718_v28 = vsel %vm6158_vm5, %v2713_v55, %v2717_v24  ;;  %v6688_v21 = vld [vmem:[#allocation2 + $0x34] sm:$0xf] }
  0x91   : > { %7192 = vst [vmem:[#allocation23_spill] sm:$0xff] %v6655_v15  ;;  %v6663_v22 = vcombine.low %v3060_v57, %v3063_v58  ;;  %v6679_v58 = vld [vmem:[#allocation2 + $0x54] sm:$0xff]   ;;  %v3056_v41 = vsel %vm6637_vm8, %v3054_v45, %v3055_v9  ;;  %v4641_v23 = vrot.slane %v6661_v7, 9  ;;  %v3080_v32 = vrot.slane %v6688_v21, 5  ;;  %v6694_v43 = vld [vmem:[%s7125_s1 + $0x40] sm:$0xff]  }
  0x92   : > { %5232 = vmatpush3.bf16.msra.mxu1 %v5917_v8  ;;  %v3068_v37 = vrot.slane %v3066_v27, 4  ;;  %v3073_v8 = vrot.slane %v5951_v12, 5  ;;  %7194 = vst [vmem:[#allocation24_spill] sm:$0xff] %v6679_v58  ;;  %7195 = vst [vmem:[#allocation25_spill] sm:$0xff] %v6694_v43  ;;  %v6696_v54 = vld [vmem:[#allocation2 + $0x60] sm:$0xff]   ;;  %v3067_v24 = vsel %vm6637_vm8, %v4640_v44, %v3066_v27  ;;  %v4642_v57 = vrot.slane %v6665_v40, 9 }
  0x93   : > { %5233 = vmatprep.subr.bf16.mxu1 %v5919_v53  ;;  %7196 = vst [vmem:[#allocation26_spill] sm:$0xff] %v6696_v54  ;;  %v5955_v55 = vld [vmem:[#allocation2 + $0x2c] sm:$0x1]  ;;  %v6704_v7 = vld [vmem:[#allocation2 + $0x48] sm:$0xe]  ;;  %v4629_v27 = vcombine.low %v2708_v49, %v2718_v28  ;;  %v3082_v44 = vrot.slane %v3080_v32, 4 }
  0x94   : > { %5406 = vmatmul.mubr.bf16.gmra.mrb[24].mxu0 %v6650_v60  ;;  %v3070_v9 = vsel %vm6637_vm8, %v3068_v37, %v3069_v33  ;;  %v3076_v45 = vrot.slane %v5955_v55, 5  ;;  %v3075_v12 = vrot.slane %v3073_v8, 4  ;;  %v5956_v21 = vld [vmem:[#allocation2 + $0x38] sm:$0x1]  ;;  %v6710_v33 = vld [vmem:[#allocation2 + $0x4c] sm:$0xf] }
  0x95   : > { %5202 = vmatmul.mubr.bf16.gmra.mrb[12].mxu1 %v6679_v58  ;;  %5409 = vmatprep.mubr.bf16.mxu0 %v6655_v15  ;;  %v3083_v15 = vrot.slane %v5956_v21, 5  ;;  %v6713_v40 = vld [vmem:[#allocation2 + $0x54] sm:$0xe]  ;;  %v6715_v55 = vld [vmem:[#allocation2 + $0x60] sm:$0xe]  ;;  %v6717_v11 = vcombine.low %v3067_v24, %v3070_v9  ;;  %v7197_v28 = vrot.slane %v6707_v62, 5 }
  0x96   : > { %5205 = vmatprep.mubr.bf16.mxu1 %v6696_v54  ;;  %5234 = vmatpush3.bf16.msra.mxu1 %v5919_v53  ;;  %v4670_v53 = vcombine.low %v3053_v10, %v3056_v41  ;;  %v6719_v21 = vld [vmem:[#allocation2 + $0x44] sm:$0x1]  ;;  %v2990_v49 = vld [vmem:[#allocation2 + $0x6c] sm:$0xe]  ;;  %v6727_v37 = vld [vmem:[#allocation2 + $0x50] sm:$0x1] }
  0x97   : > { %5235 = vmatprep.subr.bf16.mxu1 %v5921_v5  ;;  %v6725_v59 = vrot.slane %v7197_v28, 4  ;;  %v6731_v24 = vld [vmem:[#allocation2 + $0x58] sm:$0xf]  ;;  %v6739_v60 = vld [vmem:[#allocation2 + $0x5c] sm:$0x1]  ;;  %v4647_v10 = vrot.slane %v2990_v49, 9 }
  0x98   : > { %v2991_v58 = vld [vmem:[#allocation2 + $0x78] sm:$0xe]  ;;  %v6743_v41 = vld [vmem:[#allocation2 + $0x6c] sm:$0xff]   ;;  %v6750_v9 = vld [vmem:[#allocation2 + $0x64] sm:$0xf]  ;;  %v3115_v28 = vrot.slane %v6352_v56, 5 }
  0x99   : > { %7199 = vst [vmem:[#allocation27_spill] sm:$0xff] %v6743_v41  ;;  %v7200_v49 = vrot.slane %v6731_v24, 5 }
  0x9a   : > { %5236 = vmatpush3.bf16.msra.mxu1 %v5921_v5  ;;  %v7198_v5 = vrot.slane %v6710_v33, 5  ;;  %v3116_v56 = vsel %vm6637_vm8, %v4647_v10, %v3115_v28  ;;  %v3117_v39 = vrot.slane %v3115_v28, 4  ;;  %v2994_v10 = vld [vmem:[#allocation2 + $0x9c] sm:$0xe]  ;;  %v3132_v28 = vrot.slane %v6448_v30, 5 }
  0x9b   : > { %5269 = vmatprep.subr.bf16.mxu1 %v6694_v43  ;;  %v6757_v54 = vrot.slane %v7200_v49, 4  ;;  %v3084_v49 = vsel %vm6637_vm8, %v3082_v44, %v3083_v15  ;;  %v5918_v15 = vld [vmem:[%s7125_s1 + $0x148] sm:$0xff]  }
  0x9c   : > { %5410 = vmatmul.mubr.bf16.gmra.mrb[28].mxu0 %v4629_v27  ;;  %v6737_v46 = vrot.slane %v7198_v5, 4  ;;  %v3074_v27 = vsel %vm6637_vm8, %v4641_v23, %v3073_v8  ;;  %v3077_v5 = vsel %vm6637_vm8, %v3075_v12, %v3076_v45  ;;  %v3118_v8 = vrot.slane %v6406_v63, 5  ;;  %v2992_v45 = vld [vmem:[#allocation2 + $0x84] sm:$0xe]  ;;  %v2993_v63 = vld [vmem:[#allocation2 + $0x90] sm:$0xe] }
  0x9d   : > { %5206 = vmatmul.mubr.bf16.gmra.mrb[16].mxu1 %v6743_v41  ;;  %5429 = vmatprep.mubr.bf16.mxu0 %v4670_v53  ;;  %v6759_v41 = vld [vmem:[#allocation2 + $0x68] sm:$0x1]  ;;  %v4648_v23 = vrot.slane %v2991_v58, 9  ;;  %v3081_v12 = vsel %vm6637_vm8, %v4642_v57, %v3080_v32  ;;  %v6768_v25 = vcombine.low %v3074_v27, %v3077_v5  ;;  %v3125_v53 = vrot.slane %v6446_v51, 5  ;;  %v2995_v30 = vld [vmem:[#allocation2 + $0xa8] sm:$0xe] }
  0x9e   : > { %5209 = vmatprep.mubr.bf16.mxu1 %v6308_v18  ;;  %v3122_v18 = vrot.slane %v6395_v52, 5  ;;  %v4649_v43 = vrot.slane %v2992_v45, 9  ;;  %v7201_v58 = vrot.slane %v6750_v9, 5  ;;  %v3119_v32 = vsel %vm6637_vm8, %v3117_v39, %v3118_v8 }
  0x9f   : > { %v6784_v44 = vcombine.low %v3116_v56, %v3119_v32  ;;  %v3129_v51 = vrot.slane %v6418_v4, 5  ;;  %v4650_v27 = vrot.slane %v2993_v63, 9  ;;  %v3136_v39 = vrot.slane %v6456_v6, 5  ;;  %v5920_v6 = vld [vmem:[%s7125_s1 + $0x150] sm:$0xff]  }
  0xa0   : > { %v6775_v47 = vrot.slane %v7201_v58, 4  ;;  %v3123_v57 = vsel %vm6637_vm8, %v4648_v23, %v3122_v18  ;;  %v3124_v52 = vrot.slane %v3122_v18, 4  ;;  %v3139_v8 = vrot.slane %v6494_v13, 5  ;;  %v2996_v32 = vld [vmem:[#allocation2 + $0xb4] sm:$0xe] }
  0xa1   : > { %v4651_v23 = vrot.slane %v2994_v10, 9  ;;  %v3130_v56 = vsel %vm6637_vm8, %v4649_v43, %v3129_v51  ;;  %v3131_v18 = vrot.slane %v3129_v51, 4  ;;  %v3143_v4 = vrot.slane %v6474_v50, 5 }
  0xa2   : > { %v3126_v5 = vsel %vm6637_vm8, %v3124_v52, %v3125_v53  ;;  %v3137_v13 = vsel %vm6637_vm8, %v4650_v27, %v3136_v39  ;;  %v3138_v53 = vrot.slane %v3136_v39, 4  ;;  %v3146_v63 = vrot.slane %v6541_v0, 5 }
  0xa3   : > { %v6793_v45 = vcombine.low %v3123_v57, %v3126_v5  ;;  %v4652_v58 = vrot.slane %v2995_v30, 9  ;;  %v3133_v50 = vsel %vm6637_vm8, %v3131_v18, %v3132_v28  ;;  %v3150_v43 = vrot.slane %v6489_v19, 5 }
  0xa4   : > { %5430 = vmatmul.mubr.bf16.vlgmr.msra.gmra.mrb[0].mxu0 %v6663_v22  ;;  %v6813_v57 = vcombine.low %v3130_v56, %v3133_v50  ;;  %v3140_v0 = vsel %vm6637_vm8, %v3138_v53, %v3139_v8  ;;  %v3153_v52 = vrot.slane %v6562_v2, 5  ;;  %v4653_v10 = vrot.slane %v2996_v32, 9 }
  0xa5   : > { %5462 = vmatpush3.bf16.msra.mxu0 %v6550_v29  ;;  %5210 = vmatmul.mubr.bf16.gmra.mrb[20].mxu1 %v6357_v14  ;;  %v3144_v14 = vsel %vm6637_vm8, %v4651_v23, %v3143_v4  ;;  %v3145_v29 = vrot.slane %v3143_v4, 4  ;;  %v6818_v51 = vcombine.low %v3137_v13, %v3140_v0  ;;  %v3151_v27 = vsel %vm6637_vm8, %v4652_v58, %v3150_v43 }
  0xa6   : > { %5433 = vmatprep.mubr.bf16.mxu0 %v6717_v11  ;;  %5463 = vmatprep.subr.bf16.mxu0 %v5918_v15  ;;  %v3152_v19 = vrot.slane %v3150_v43, 4  ;;  %v6824_v5 = vcombine.low %v3081_v12, %v3084_v49  ;;  %v3157_v2 = vrot.slane %v6515_v36, 5  ;;  %v3160_v8 = vrot.slane %v6593_v26, 5 }
  0xa7   : > { %5213 = vmatprep.mubr.bf16.mxu1 %v6375_v31  ;;  %v3147_v28 = vsel %vm6637_vm8, %v3145_v29, %v3146_v63  ;;  %v5922_v31 = vld [vmem:[%s7125_s1 + $0x158] sm:$0xff]   ;;  %v7202_v18 = vrot.slane %v6707_v62, 5  ;;  %v7203_v36 = vrot.slane %v6677_v35, 9  ;;  %v7204_v4 = vrot.slane %v6719_v21, 5 }
  0xa8   : > { %v6829_v39 = vcombine.low %v3144_v14, %v3147_v28  ;;  %v3154_v23 = vsel %vm6637_vm8, %v3152_v19, %v3153_v52  ;;  %v3158_v12 = vsel %vm6637_vm8, %v4653_v10, %v3157_v2  ;;  %v3159_v49 = vrot.slane %v3157_v2, 4  ;;  %v2997_v52 = vld [vmem:[#allocation2 + $0xc0] sm:$0xe] }
  0xa9   : > { %5464 = vmatpush3.bf16.msra.mxu0 %v5918_v15  ;;  %v6835_v56 = vcombine.low %v3151_v27, %v3154_v23  ;;  %v1713_v15 = vshll.u32 %v6604_v48, 16  ;;  %v3088_v26 = vsel %vm6637_vm8, %v7203_v36, %v7202_v18  ;;  %v3091_v30 = vsel %vm6637_vm8, %v6725_v59, %v7204_v4  ;;  %v7214_v4 = vld [vmem:[#allocation15_spill] sm:$0xff] }
  0xaa   : > { %5465 = vmatprep.subr.bf16.mxu0 %v5920_v6  ;;  %v7205_v13 = vrot.slane %v6710_v33, 5  ;;  %v7206_v53 = vrot.slane %v6704_v7, 9  ;;  %v7207_v35 = vrot.slane %v6727_v37, 5  ;;  %v3161_v59 = vsel %vm6637_vm8, %v3159_v49, %v3160_v8  ;;  %v1646_v33 = vld [vmem:[#allocation2] sm:$0xf] }
  0xab   : > { %v6871_v7 = vcombine.low %v3158_v12, %v3161_v59  ;;  %v1715_v63 = vrot.slane %v1713_v15, 5  ;;  %v1717_v37 = vshrl.u32 %v6604_v48, 16  ;;  %v1723_v58 = vshll.u32 %v6632_v1, 16  ;;  %v5926_v48 = vld [vmem:[%s7125_s1 + $0x168] sm:$0xff]  }
  0xac   : > { %5434 = vmatmul.mubr.bf16.gmra.mrb[4].mxu0 %v6768_v25  ;;  %v3095_v62 = vsel %vm6637_vm8, %v7206_v53, %v7205_v13  ;;  %v3098_v21 = vsel %vm6637_vm8, %v6737_v46, %v7207_v35  ;;  %v1704_v46 = vshrl.u32 %v1646_v33, 16  ;;  %v1707_v50 = vshll.u32 %v1646_v33, 16  ;;  %v7216_v13 = vld [vmem:[#allocation18_spill] sm:$0xff]  ;;  %v5929_v35 = vld [vmem:[%s7125_s1 + $0x58] sm:$0xff]   ;;  %v5966_v59 = vld [vmem:[#allocation2 + $0x48] sm:$0xff]  }
  0xad   : > { %5214 = vmatmul.mubr.bf16.gmra.mrb[24].mxu1 %v6398_v42  ;;  %5437 = vmatprep.mubr.bf16.mxu0 %v6824_v5  ;;  %v5924_v42 = vld [vmem:[%s7125_s1 + $0x160] sm:$0xff]   ;;  %v6875_v14 = vcombine.low %v3088_v26, %v3091_v30  ;;  %v1725_v29 = vrot.slane %v1723_v58, 5  ;;  %v4694_v10 = vrot.slane %v2997_v52, 9  ;;  %v3489_v28 = vrot.slane %v6557_v16, 5  ;;  %v5925_v26 = vld [vmem:[%s7125_s1 + $0x48] sm:$0xff]   ;;  %v5927_v53 = vld [vmem:[%s7125_s1 + $0x50] sm:$0xff]  }
  0xae   : > { %5466 = vmatpush3.bf16.msra.mxu0 %v5920_v6  ;;  %5217 = vmatprep.mubr.bf16.mxu1 %v6410_v3  ;;  %v1719_v6 = vrot.slane %v1717_v37, 4  ;;  %v6877_v3 = vcombine.low %v3095_v62, %v3098_v21  ;;  %v1706_v43 = vrot.slane %v1704_v46, 4  ;;  %v1709_v32 = vrot.slane %v1707_v50, 5  ;;  %v7215_v30 = vld [vmem:[#allocation25_spill] sm:$0xff]  ;;  %v5932_v62 = vld [vmem:[%s7125_s1 + $0x200] sm:$0xff]   ;;  %v7219_v37 = vld [vmem:[#allocation26_spill] sm:$0xff] }
  0xaf   : > { %5467 = vmatprep.subr.bf16.mxu0 %v5922_v31  ;;  %v3492_v27 = vrot.slane %v6613_v17, 5  ;;  %v7208_v19 = vrot.slane %v6731_v24, 5  ;;  %v7209_v2 = vrot.slane %v6713_v40, 9  ;;  %v7210_v23 = vrot.slane %v6739_v60, 5  ;;  %v7217_v21 = vld [vmem:[#allocation21_spill] sm:$0xff]  ;;  %v5935_v58 = vld [vmem:[%s7125_s1 + $0x70] sm:$0xff]  }
  0xb0   : > { %v1720_v0 = vor.u32 %v1719_v6, %v1715_v63  ;;  %v1710_v1 = vor.u32 %v1709_v32, %v1706_v43  ;;  %v3490_v24 = vsel %vm6637_vm8, %v4694_v10, %v3489_v28  ;;  %v3491_v12 = vrot.slane %v3489_v28, 4  ;;  %v5933_v33 = vld [vmem:[%s7125_s1 + $0x68] sm:$0xff]   ;;  %v5938_v46 = vld [vmem:[%s7125_s1 + $0x78] sm:$0xff]   ;;  %v5970_v32 = vld [vmem:[#allocation2 + $0x90] sm:$0xff]  }
  0xb1   : > { %v3105_v16 = vsel %vm6637_vm8, %v6757_v54, %v7210_v23  ;;  %v7211_v40 = vrot.slane %v6750_v9, 5  ;;  %v7212_v49 = vrot.slane %v6715_v55, 9  ;;  %v7213_v60 = vrot.slane %v6759_v41, 5  ;;  %v7220_v50 = vld [vmem:[#allocation27_spill] sm:$0xff]  ;;  %v5969_v43 = vld [vmem:[#allocation2 + $0x84] sm:$0xff]  }
  0xb2   : > { %5468 = vmatpush3.bf16.msra.mxu0 %v5922_v31  ;;  %v3102_v31 = vsel %vm6637_vm8, %v7209_v2, %v7208_v19  ;;  %v1721_v8 = vrot.slane %v1720_v0, 4  ;;  %v1711_v17 = vrot.slane %v1710_v1, 4  ;;  %v3493_v9 = vsel %vm6637_vm8, %v3491_v12, %v3492_v27  ;;  %v5967_v6 = vld [vmem:[#allocation2 + $0x78] sm:$0xff]   ;;  %v5934_v0 = vld [vmem:[%s7125_s1 + $0x208] sm:$0xff]   ;;  %v5974_v28 = vld [vmem:[#allocation2 + $0xc0] sm:$0xff]  }
  0xb3   : > { %5469 = vmatprep.subr.bf16.mxu0 %v5924_v42  ;;  %v3112_v54 = vsel %vm6637_vm8, %v6775_v47, %v7213_v60  ;;  %v6921_v41 = vcombine.low %v3102_v31, %v3105_v16  ;;  %v6925_v47 = vcombine.low %v3490_v24, %v3493_v9  ;;  %v5971_v52 = vld [vmem:[#allocation2 + $0x9c] sm:$0xff]   ;;  %v5972_v1 = vld [vmem:[#allocation2 + $0xa8] sm:$0xff]   ;;  %v5973_v10 = vld [vmem:[#allocation2 + $0xb4] sm:$0xff]  }
  0xb4   : > { %5438 = vmatmul.mubr.bf16.gmra.mrb[8].mxu0 %v6875_v14  ;;  %v1726_v15 = vsel %vm6158_vm5, %v1721_v8, %v1725_v29  ;;  %v1716_v55 = vsel %vm6158_vm5, %v1711_v17, %v1715_v63  ;;  %v7218_v63 = vld [vmem:[#allocation24_spill] sm:$0xff]  ;;  %v5937_v19 = vld [vmem:[#allocation2 + $0xcc] sm:$0xff]   ;;  %v5943_v8 = vld [vmem:[%s7125_s1 + $0x238] sm:$0xff]  }
  0xb5   : > { %5218 = vmatmul.mubr.bf16.gmra.mrb[28].mxu1 %v6420_v20  ;;  %5441 = vmatprep.mubr.bf16.mxu0 %v6877_v3  ;;  %v3109_v20 = vsel %vm6637_vm8, %v7212_v49, %v7211_v40  ;;  %v6923_v18 = vcombine.low %v1716_v55, %v1726_v15  ;;  %v5968_v29 = vld [vmem:[%s7125_s1 + $0x100] sm:$0xff]   ;;  %v5941_v2 = vld [vmem:[%s7125_s1 + $0x228] sm:$0xff]   ;;  %v5942_v31 = vld [vmem:[%s7125_s1 + $0x230] sm:$0xff]  }
  0xb6   : > { %5237 = vmatprep.mubr.bf16.mxu1 %v6533_v61  ;;  %5470 = vmatpush3.bf16.msra.mxu0 %v5924_v42  ;;  %v5928_v61 = vld [vmem:[%s7125_s1 + $0x170] sm:$0xff]   ;;  %v6927_v36 = vcombine.low %v3109_v20, %v3112_v54  ;;  %v5931_v42 = vld [vmem:[%s7125_s1 + $0x60] sm:$0xff]   ;;  %v7221_v23 = vld [vmem:[#allocation3_spill] sm:$0xff] }
  0xb7   : > { %5471 = vmatprep.subr.bf16.mxu0 %v5926_v48  ;;  %v5940_v27 = vld [vmem:[%s7125_s1 + $0x220] sm:$0xff]   ;;  %v5975_v17 = vld [vmem:[%s7125_s1 + $0x108] sm:$0xff]   ;;  %v5976_v24 = vld [vmem:[%s7125_s1 + $0x110] sm:$0xff]  }
  0xb8   : > { %v7222_v16 = vld [vmem:[#allocation4_spill] sm:$0xff]  ;;  %v7223_v12 = vld [vmem:[#allocation5_spill] sm:$0xff]  ;;  %v7224_v40 = vld [vmem:[#allocation6_spill] sm:$0xff] }
  0xb9   : > { %v5977_v49 = vld [vmem:[%s7125_s1 + $0x118] sm:$0xff]   ;;  %v5978_v20 = vld [vmem:[%s7125_s1 + $0x120] sm:$0xff]   ;;  %v5979_v15 = vld [vmem:[%s7125_s1 + $0x128] sm:$0xff]  }
  0xba   : > { %5472 = vmatpush3.bf16.msra.mxu0 %v5926_v48  ;;  %v5936_v48 = vld [vmem:[%s7125_s1 + $0x210] sm:$0xff]   ;;  %v7225_v60 = vld [vmem:[#allocation7_spill] sm:$0xff]  ;;  %v7226_v54 = vld [vmem:[#allocation8_spill] sm:$0xff] }
  0xbb   : > { %5473 = vmatprep.subr.bf16.mxu0 %v5928_v61  ;;  %v7227_v55 = vld [vmem:[#allocation9_spill] sm:$0xff]  ;;  %v7228_v9 = vld [vmem:[#allocation10_spill] sm:$0xff] }
  0xbc   : > { %5442 = vmatmul.mubr.bf16.gmra.mrb[12].mxu0 %v6921_v41 }
  0xbd   : > { %5238 = vmatmul.mubr.bf16.vlgmr.msra.gmra.mrb[0].mxu1 %v7214_v4  ;;  %5445 = vmatprep.mubr.bf16.mxu0 %v6927_v36  ;;  %v7231_v4 = vld [vmem:[#allocation13_spill] sm:$0xff] }
  0xbe   : > { %5270 = vmatpush3.bf16.msra.mxu1 %v7215_v30  ;;  %5241 = vmatprep.mubr.bf16.mxu1 %v7216_v13  ;;  %v7232_v30 = vld [vmem:[#allocation14_spill] sm:$0xff]  ;;  %v7233_v13 = vld [vmem:[#allocation16_spill] sm:$0xff] }
  0xbf   : > { %5271 = vmatprep.subr.bf16.mxu1 %v5925_v26  ;;  %5474 = vmatpush3.bf16.msra.mxu0 %v5928_v61  ;;  %v5980_v61 = vld [vmem:[%s7125_s1 + $0x130] sm:$0xff]  }
  0xc0   : > { %5475 = vmatprep.subr.bf16.mxu0 %v5930_v34 }
  0xc2   : > { %5272 = vmatpush3.bf16.msra.mxu1 %v5925_v26  ;;  %v7229_v26 = vld [vmem:[#allocation11_spill] sm:$0xff] }
  0xc3   : > { %5273 = vmatprep.subr.bf16.mxu1 %v5927_v53  ;;  %5476 = vmatpush3.bf16.msra.mxu0 %v5930_v34  ;;  %v7230_v34 = vld [vmem:[#allocation12_spill] sm:$0xff] }
  0xc4   : > { %5446 = vmatmul.mubr.bf16.gmra.mrb[16].mxu0 %v6784_v44  ;;  %5509 = vmatprep.subr.bf16.mxu0 %v5932_v62 }
  0xc5   : > { %5242 = vmatmul.mubr.bf16.gmra.mrb[4].mxu1 %v7217_v21  ;;  %5449 = vmatprep.mubr.bf16.mxu0 %v6793_v45 }
  0xc6   : > { %5245 = vmatprep.mubr.bf16.mxu1 %v5966_v59  ;;  %5274 = vmatpush3.bf16.msra.mxu1 %v5927_v53  ;;  %v7234_v53 = vld [vmem:[#allocation20_spill] sm:$0xff] }
  0xc7   : > { %5275 = vmatprep.subr.bf16.mxu1 %v5929_v35 }
  0xca   : > { %5276 = vmatpush3.bf16.msra.mxu1 %v5929_v35 }
  0xcb   : > { %5277 = vmatprep.subr.bf16.mxu1 %v5931_v42 }
  0xcc   : > { %5450 = vmatmul.mubr.bf16.gmra.mrb[20].mxu0 %v6813_v57 }
  0xcd   : > { %5246 = vmatmul.mubr.bf16.gmra.mrb[8].mxu1 %v7218_v63  ;;  %5453 = vmatprep.mubr.bf16.mxu0 %v6818_v51 }
  0xce   : > { %5249 = vmatprep.mubr.bf16.mxu1 %v7219_v37  ;;  %5278 = vmatpush3.bf16.msra.mxu1 %v5931_v42 }
  0xcf   : > { %5279 = vmatprep.subr.bf16.mxu1 %v5933_v33 }
  0xd2   : > { %5280 = vmatpush3.bf16.msra.mxu1 %v5933_v33 }
  0xd3   : > { %5281 = vmatprep.subr.bf16.mxu1 %v5935_v58 }
  0xd4   : > { %5454 = vmatmul.mubr.bf16.gmra.mrb[24].mxu0 %v6829_v39 }
  0xd5   : > { %5250 = vmatmul.mubr.bf16.gmra.mrb[12].mxu1 %v7220_v50  ;;  %5457 = vmatprep.mubr.bf16.mxu0 %v6835_v56 }
  0xd6   : > { %5253 = vmatprep.mubr.bf16.mxu1 %v5967_v6  ;;  %5282 = vmatpush3.bf16.msra.mxu1 %v5935_v58 }
  0xd7   : > { %5283 = vmatprep.subr.bf16.mxu1 %v5938_v46 }
  0xda   : > { %5284 = vmatpush3.bf16.msra.mxu1 %v5938_v46 }
  0xdb   : > { %5557 = vmatprep.subr.bf16.mxu1 %v5968_v29 }
  0xdc   : > { %5458 = vmatmul.mubr.bf16.gmra.mrb[28].mxu0 %v6871_v7 }
  0xdd   : > { %5254 = vmatmul.mubr.bf16.gmra.mrb[16].mxu1 %v5969_v43  ;;  %5477 = vmatprep.mubr.bf16.mxu0 %v6663_v22  ;;  %v5939_v22 = vld [vmem:[%s7125_s1 + $0x218] sm:$0xff]  }
  0xde   : > { %5257 = vmatprep.mubr.bf16.mxu1 %v5970_v32 }
  0xe4   : > { %5478 = vmatmul.mubr.bf16.vlgmr.msra.gmra.mrb[0].mxu0 %v6717_v11 }
  0xe5   : > { %5510 = vmatpush3.bf16.msra.mxu0 %v5932_v62  ;;  %5258 = vmatmul.mubr.bf16.gmra.mrb[20].mxu1 %v5971_v52 }
  0xe6   : > { %5481 = vmatprep.mubr.bf16.mxu0 %v6768_v25  ;;  %5511 = vmatprep.subr.bf16.mxu0 %v5934_v0 }
  0xe7   : > { %5261 = vmatprep.mubr.bf16.mxu1 %v5972_v1 }
  0xe9   : > { %5512 = vmatpush3.bf16.msra.mxu0 %v5934_v0 }
  0xea   : > { %5513 = vmatprep.subr.bf16.mxu0 %v5936_v48 }
  0xec   : > { %5482 = vmatmul.mubr.bf16.gmra.mrb[4].mxu0 %v6824_v5 }
  0xed   : > { %5262 = vmatmul.mubr.bf16.gmra.mrb[24].mxu1 %v5973_v10  ;;  %5485 = vmatprep.mubr.bf16.mxu0 %v6875_v14 }
  0xee   : > { %5514 = vmatpush3.bf16.msra.mxu0 %v5936_v48  ;;  %5265 = vmatprep.mubr.bf16.mxu1 %v5974_v28 }
  0xef   : > { %5515 = vmatprep.subr.bf16.mxu0 %v5939_v22 }
  0xf2   : > { %5516 = vmatpush3.bf16.msra.mxu0 %v5939_v22 }
  0xf3   : > { %5517 = vmatprep.subr.bf16.mxu0 %v5940_v27 }
  0xf4   : > { %5486 = vmatmul.mubr.bf16.gmra.mrb[8].mxu0 %v6877_v3 }
  0xf5   : > { %5266 = vmatmul.mubr.bf16.gmra.mrb[28].mxu1 %v5937_v19  ;;  %5489 = vmatprep.mubr.bf16.mxu0 %v6921_v41 }
  0xf6   : > { %5285 = vmatprep.mubr.bf16.mxu1 %v6923_v18  ;;  %5518 = vmatpush3.bf16.msra.mxu0 %v5940_v27  ;;  %v5981_v18 = vld [vmem:[%s7125_s1 + $0x138] sm:$0xff]  }
  0xf7   : > { %5519 = vmatprep.subr.bf16.mxu0 %v5941_v2 }
  0xfa   : > { %5520 = vmatpush3.bf16.msra.mxu0 %v5941_v2 }
  0xfb   : > { %5521 = vmatprep.subr.bf16.mxu0 %v5942_v31 }
  0xfc   : > { %5490 = vmatmul.mubr.bf16.gmra.mrb[12].mxu0 %v6927_v36 }
  0xfd   : > { %5286 = vmatmul.mubr.bf16.vlgmr.msra.gmra.mrb[0].mxu1 %v7221_v23  ;;  %5493 = vmatprep.mubr.bf16.mxu0 %v6784_v44 }
  0xfe   : > { %5565 = vmatpush3.bf16.msra.mxu1 %v5968_v29  ;;  %5289 = vmatprep.mubr.bf16.mxu1 %v7222_v16 }
  0xff   : > { %5558 = vmatprep.subr.bf16.mxu1 %v5975_v17  ;;  %5522 = vmatpush3.bf16.msra.mxu0 %v5942_v31 }
 0x100   : > { %5523 = vmatprep.subr.bf16.mxu0 %v5943_v8 }
 0x102   : > { %5566 = vmatpush3.bf16.msra.mxu1 %v5975_v17 }
 0x103   : > { %5559 = vmatprep.subr.bf16.mxu1 %v5976_v24  ;;  %5524 = vmatpush3.bf16.msra.mxu0 %v5943_v8 }
 0x104   : > { %5494 = vmatmul.mubr.bf16.gmra.mrb[16].mxu0 %v6793_v45 }
 0x105   : > { %5290 = vmatmul.mubr.bf16.gmra.mrb[4].mxu1 %v7223_v12  ;;  %5497 = vmatprep.mubr.bf16.mxu0 %v6813_v57 }
 0x106   : > { %5293 = vmatprep.mubr.bf16.mxu1 %v7224_v40  ;;  %5567 = vmatpush3.bf16.msra.mxu1 %v5976_v24 }
 0x107   : > { %5560 = vmatprep.subr.bf16.mxu1 %v5977_v49 }
 0x10a   : > { %5568 = vmatpush3.bf16.msra.mxu1 %v5977_v49 }
 0x10b   : > { %5561 = vmatprep.subr.bf16.mxu1 %v5978_v20 }
 0x10c   : > { %5498 = vmatmul.mubr.bf16.gmra.mrb[20].mxu0 %v6818_v51 }
 0x10d   : > { %5294 = vmatmul.mubr.bf16.gmra.mrb[8].mxu1 %v7225_v60  ;;  %5501 = vmatprep.mubr.bf16.mxu0 %v6829_v39 }
 0x10e   : > { %5297 = vmatprep.mubr.bf16.mxu1 %v7226_v54  ;;  %5569 = vmatpush3.bf16.msra.mxu1 %v5978_v20 }
 0x10f   : > { %5562 = vmatprep.subr.bf16.mxu1 %v5979_v15 }
 0x112   : > { %5570 = vmatpush3.bf16.msra.mxu1 %v5979_v15 }
 0x113   : > { %5563 = vmatprep.subr.bf16.mxu1 %v5980_v61 }
 0x114   : > { %5502 = vmatmul.mubr.bf16.gmra.mrb[24].mxu0 %v6835_v56 }
 0x115   : > { %5298 = vmatmul.mubr.bf16.gmra.mrb[12].mxu1 %v7227_v55  ;;  %5505 = vmatprep.mubr.bf16.mxu0 %v6871_v7 }
 0x116   : > { %5301 = vmatprep.mubr.bf16.mxu1 %v7228_v9  ;;  %5571 = vmatpush3.bf16.msra.mxu1 %v5980_v61 }
 0x117   : > { %5564 = vmatprep.subr.bf16.mxu1 %v5981_v18 }
 0x11a   : > { %5572 = vmatpush3.bf16.msra.mxu1 %v5981_v18 }
 0x11c   : > { %5506 = vmatmul.mubr.bf16.gmra.mrb[28].mxu0 %v6925_v47 }
 0x11d   : > { %5302 = vmatmul.mubr.bf16.gmra.mrb[16].mxu1 %v7229_v26  ;;  %5525 = vmatprep.mubr.bf16.mxu0 %v6717_v11  ;;  %v7235_v11 = vld [vmem:[#allocation22_spill] sm:$0xff] }
 0x11e   : > { %5305 = vmatprep.mubr.bf16.mxu1 %v7230_v34 }
 0x124   : > { %5526 = vmatmul.mubr.bf16.vlgmr.msra.gmra.mrb[0].mxu0 %v6768_v25  ;;  %v7236_v25 = vld [vmem:[#allocation17_spill] sm:$0xff] }
 0x125   : > { %5306 = vmatmul.mubr.bf16.gmra.mrb[20].mxu1 %v7231_v4  ;;  %5529 = vmatprep.mubr.bf16.mxu0 %v6824_v5 }
 0x126   : > { %5309 = vmatprep.mubr.bf16.mxu1 %v7232_v30 }
 0x12c   : > { %5530 = vmatmul.mubr.bf16.gmra.mrb[4].mxu0 %v6875_v14 }
 0x12d   : > { %5310 = vmatmul.mubr.bf16.gmra.mrb[24].mxu1 %v7233_v13  ;;  %5533 = vmatprep.mubr.bf16.mxu0 %v6877_v3 }
 0x12e   : > { %5313 = vmatprep.mubr.bf16.mxu1 %v7234_v53 }
 0x134   : > { %5534 = vmatmul.mubr.bf16.gmra.mrb[8].mxu0 %v6921_v41 }
 0x135   : > { %5314 = vmatmul.mubr.bf16.gmra.mrb[28].mxu1 %v7235_v11  ;;  %5537 = vmatprep.mubr.bf16.mxu0 %v6927_v36 }
 0x136   : > { %5349 = vmatprep.mubr.bf16.mxu1 %v7229_v26 }
 0x13c   : > { %5538 = vmatmul.mubr.bf16.gmra.mrb[12].mxu0 %v6784_v44  ;;  %v3761_v44 = vrot.slane %v7236_v25, 5 }
 0x13d   : > { %5350 = vmatmul.mubr.bf16.vlgmr.msra.gmra.mrb[16].mxu1 %v7230_v34  ;;  %5541 = vmatprep.mubr.bf16.mxu0 %v6793_v45  ;;  %v2998_v45 = vld [vmem:[#allocation2 + $0xcc] sm:$0xe] }
 0x13e   : > { %5353 = vmatprep.mubr.bf16.mxu1 %v7231_v4  ;;  %v4720_v5 = vrot.slane %v2998_v45, 9  ;;  %v3763_v14 = vrot.slane %v3761_v44, 4 }
 0x144   : > { %5542 = vmatmul.mubr.bf16.gmra.mrb[16].mxu0 %v6813_v57  ;;  %v7237_v57 = vld [vmem:[#allocation19_spill] sm:$0xff] }
 0x145   : > { %5354 = vmatmul.mubr.bf16.gmra.mrb[20].mxu1 %v7232_v30  ;;  %5545 = vmatprep.mubr.bf16.mxu0 %v6818_v51  ;;  %v3764_v3 = vrot.slane %v7237_v57, 5  ;;  %v7238_v51 = vld [vmem:[#allocation23_spill] sm:$0xff] }
 0x146   : > { %5357 = vmatprep.mubr.bf16.mxu1 %v7233_v13 }
 0x14c   : > { %5546 = vmatmul.mubr.bf16.gmra.mrb[20].mxu0 %v6829_v39  ;;  %v3762_v39 = vsel %vm6637_vm8, %v4720_v5, %v3761_v44 }
 0x14d   : > { %5358 = vmatmul.mubr.bf16.gmra.mrb[24].mxu1 %v7234_v53  ;;  %5549 = vmatprep.mubr.bf16.mxu0 %v6835_v56  ;;  %v3765_v56 = vsel %vm6637_vm8, %v3763_v14, %v3764_v3 }
 0x14e   : > { %5361 = vmatprep.mubr.bf16.mxu1 %v7235_v11  ;;  %v4737_v41 = vcombine.low %v3762_v39, %v3765_v56 }
 0x154   : > { %5550 = vmatmul.mubr.bf16.gmra.mrb[24].mxu0 %v6871_v7 }
 0x155   : > { %5362 = vmatmul.mubr.bf16.gmra.mrb[28].mxu1 %v7238_v51  ;;  %5553 = vmatprep.mubr.bf16.mxu0 %v6925_v47 }
 0x15c   : > { %5554 = vmatmul.mubr.bf16.gmra.mrb[28].mxu0 %v4737_v41 }
 0x1d0   : > { %v5287_v36 = vpop.f32.mrb[0].mxu1 }
 0x1d1   : > { %v2250_v62 = vpop.f32.mrb[1].mxu1 }
 0x1d2   : > { %v5288_v35 = vpop.f32.mrb[2].mxu1 }
 0x1d3   : > { %v2253_v21 = vpop.f32.mrb[3].mxu1 }
 0x1d8   : > { %v5291_v59 = vpop.f32.mrb[4].mxu1 }
 0x1d9   : > { %v2266_v42 = vpop.f32.mrb[5].mxu1 }
 0x1da   : > { %v5292_v33 = vpop.f32.mrb[6].mxu1 }
 0x1db   : > { %v2269_v7 = vpop.f32.mrb[7].mxu1 }
 0x1e0   : > { %v5295_v63 = vpop.f32.mrb[8].mxu1 }
 0x1e1   : > { %v2282_v37 = vpop.f32.mrb[9].mxu1 }
 0x1e2   : > { %v5296_v47 = vpop.f32.mrb[10].mxu1 }
 0x1e3   : > { %v2285_v58 = vpop.f32.mrb[11].mxu1 }
 0x1e8   : > { %v7078_v46 = vpop.f32.mrb[12].mxu1 }
 0x1e9   : > { %v7080_v50 = vpop.f32.mrb[13].mxu1 }
 0x1ea   : > { %v7082_v38 = vpop.f32.mrb[14].mxu1 }
 0x1eb   : > { %v7084_v6 = vpop.f32.mrb[15].mxu1 }
 0x1f7   : > { %v5527_v29 = vpop.f32.mrb[0].mxu0 }
 0x1f8   : > { %v5573_v43 = vadd.f32 %v5527_v29, %v5287_v36  ;;  %v3869_v32 = vpop.f32.mrb[1].mxu0 }
 0x1f9   : > { %v5574_v0 = vadd.f32 %v3869_v32, %v2250_v62  ;;  %v5528_v52 = vpop.f32.mrb[2].mxu0 }
 0x1fa   : > { %v5575_v48 = vadd.f32 %v5528_v52, %v5288_v35  ;;  %v3872_v1 = vpop.f32.mrb[3].mxu0  ;;  %v4228_v31 = vmul.f32 %v5573_v43, %v5573_v43 }
 0x1fb   : > { %v5576_v22 = vadd.f32 %v3872_v1, %v2253_v21  ;;  %v4226_v28 = vmul.f32 %v5574_v0, %v5574_v0 }
 0x1fc   : > { %v4822_v10 = vpack.c.bf16 %v5575_v48, %v5573_v43  ;;  %v4229_v12 = vmul.f32 %v5575_v48, %v5575_v48 }
 0x1fd   : > { %v4817_v27 = vpack.c.bf16 %v5576_v22, %v5574_v0  ;;  %v4188_v19 = vadd.f32 %v5576_v22, %v5574_v0  ;;  %v4227_v2 = vmul.f32 %v5576_v22, %v5576_v22 }
 0x1fe   : > { %4894 = vst [vmem:[%s7091_s27 + $0x8] sm:$0xff] %v4822_v10  }
 0x1ff   : > { %4818 = vst [vmem:[%s7091_s27] sm:$0xff] %v4817_v27   ;;  %v4189_v8 = vadd.f32 %v5573_v43, %v4188_v19  ;;  %v4258_v23 = vadd.f32 %v4227_v2, %v4226_v28  ;;  %v5531_v16 = vpop.f32.mrb[4].mxu0 }
 0x200   : > { %v5577_v17 = vadd.f32 %v5531_v16, %v5291_v59  ;;  %v3885_v24 = vpop.f32.mrb[5].mxu0 }
 0x201   : > { %v4259_v40 = vadd.f32 %v4258_v23, %v4228_v31  ;;  %v5578_v49 = vadd.f32 %v3885_v24, %v2266_v42  ;;  %v4190_v20 = vadd.f32 %v5575_v48, %v4189_v8  ;;  %v5532_v60 = vpop.f32.mrb[6].mxu0 }
 0x202   : > { %v5579_v54 = vadd.f32 %v5532_v60, %v5292_v33  ;;  %v3888_v15 = vpop.f32.mrb[7].mxu0  ;;  %v4232_v53 = vmul.f32 %v5577_v17, %v5577_v17 }
 0x203   : > { %v4191_v61 = vadd.f32 %v5578_v49, %v4190_v20  ;;  %v4230_v55 = vmul.f32 %v5578_v49, %v5578_v49  ;;  %v4260_v9 = vadd.f32 %v4259_v40, %v4229_v12  ;;  %v5580_v18 = vadd.f32 %v3888_v15, %v2269_v7 }
 0x204   : > { %v4832_v26 = vpack.c.bf16 %v5579_v54, %v5577_v17  ;;  %v4233_v14 = vmul.f32 %v5579_v54, %v5579_v54 }
 0x205   : > { %v4261_v34 = vadd.f32 %v4260_v9, %v4230_v55  ;;  %v4827_v4 = vpack.c.bf16 %v5580_v18, %v5578_v49  ;;  %v4192_v30 = vadd.f32 %v5580_v18, %v4191_v61  ;;  %v4231_v13 = vmul.f32 %v5580_v18, %v5580_v18 }
 0x206   : > { %4896 = vst [vmem:[%s7091_s27 + $0x18] sm:$0xff] %v4832_v26  }
 0x207   : > { %4895 = vst [vmem:[%s7091_s27 + $0x10] sm:$0xff] %v4827_v4   ;;  %v4193_v11 = vadd.f32 %v5577_v17, %v4192_v30  ;;  %v4262_v25 = vadd.f32 %v4261_v34, %v4231_v13  ;;  %v5535_v44 = vpop.f32.mrb[8].mxu0 }
 0x208   : > { %v5581_v45 = vadd.f32 %v5535_v44, %v5295_v63  ;;  %v3901_v5 = vpop.f32.mrb[9].mxu0 }
 0x209   : > { %v4263_v57 = vadd.f32 %v4262_v25, %v4232_v53  ;;  %v5582_v3 = vadd.f32 %v3901_v5, %v2282_v37  ;;  %v4194_v51 = vadd.f32 %v5579_v54, %v4193_v11  ;;  %v5536_v39 = vpop.f32.mrb[10].mxu0 }
 0x20a   : > { %v5583_v56 = vadd.f32 %v5536_v39, %v5296_v47  ;;  %v3904_v41 = vpop.f32.mrb[11].mxu0  ;;  %v4236_v63 = vmul.f32 %v5581_v45, %v5581_v45 }
 0x20b   : > { %v4195_v36 = vadd.f32 %v5582_v3, %v4194_v51  ;;  %v4234_v62 = vmul.f32 %v5582_v3, %v5582_v3  ;;  %v4264_v35 = vadd.f32 %v4263_v57, %v4233_v14  ;;  %v5584_v21 = vadd.f32 %v3904_v41, %v2285_v58 }
 0x20c   : > { %v4842_v59 = vpack.c.bf16 %v5583_v56, %v5581_v45  ;;  %v4237_v48 = vmul.f32 %v5583_v56, %v5583_v56 }
 0x20d   : > { %v4265_v42 = vadd.f32 %v4264_v35, %v4234_v62  ;;  %v4837_v33 = vpack.c.bf16 %v5584_v21, %v5582_v3  ;;  %v4196_v7 = vadd.f32 %v5584_v21, %v4195_v36  ;;  %v4235_v29 = vmul.f32 %v5584_v21, %v5584_v21 }
 0x20e   : > { %4898 = vst [vmem:[%s7091_s27 + $0x28] sm:$0xff] %v4842_v59  }
 0x20f   : > { %4897 = vst [vmem:[%s7091_s27 + $0x20] sm:$0xff] %v4837_v33   ;;  %v4197_v43 = vadd.f32 %v5581_v45, %v4196_v7  ;;  %v4266_v32 = vadd.f32 %v4265_v42, %v4235_v29  ;;  %v5539_v37 = vpop.f32.mrb[12].mxu0 }
 0x210   : > { %v5585_v0 = vadd.f32 %v5539_v37, %v7078_v46  ;;  %v3917_v52 = vpop.f32.mrb[13].mxu0  ;;  %v5351_v47 = vpop.f32.mrb[16].mxu1 }
 0x211   : > { %v4267_v1 = vadd.f32 %v4266_v32, %v4236_v63  ;;  %v5586_v22 = vadd.f32 %v3917_v52, %v7080_v50  ;;  %v4198_v58 = vadd.f32 %v5583_v56, %v4197_v43  ;;  %v5540_v10 = vpop.f32.mrb[14].mxu0  ;;  %v2600_v28 = vpop.f32.mrb[17].mxu1 }
 0x212   : > { %v5587_v27 = vadd.f32 %v5540_v10, %v7082_v38  ;;  %v3920_v19 = vpop.f32.mrb[15].mxu0  ;;  %v5352_v2 = vpop.f32.mrb[18].mxu1  ;;  %v4240_v49 = vmul.f32 %v5585_v0, %v5585_v0 }
 0x213   : > { %v4199_v31 = vadd.f32 %v5586_v22, %v4198_v58  ;;  %v4238_v8 = vmul.f32 %v5586_v22, %v5586_v22  ;;  %v4268_v23 = vadd.f32 %v4267_v1, %v4237_v48  ;;  %v5588_v46 = vadd.f32 %v3920_v19, %v7084_v6  ;;  %v2603_v16 = vpop.f32.mrb[19].mxu1 }
 0x214   : > { %v4852_v17 = vpack.c.bf16 %v5587_v27, %v5585_v0  ;;  %v4241_v55 = vmul.f32 %v5587_v27, %v5587_v27 }
 0x215   : > { %v4269_v24 = vadd.f32 %v4268_v23, %v4238_v8  ;;  %v4847_v12 = vpack.c.bf16 %v5588_v46, %v5586_v22  ;;  %v4200_v40 = vadd.f32 %v5588_v46, %v4199_v31  ;;  %v4239_v50 = vmul.f32 %v5588_v46, %v5588_v46 }
 0x216   : > { %4900 = vst [vmem:[%s7091_s27 + $0x38] sm:$0xff] %v4852_v17  }
 0x217   : > { %4899 = vst [vmem:[%s7091_s27 + $0x30] sm:$0xff] %v4847_v12   ;;  %v4201_v20 = vadd.f32 %v5585_v0, %v4200_v40  ;;  %v4270_v60 = vadd.f32 %v4269_v24, %v4239_v50  ;;  %v5543_v54 = vpop.f32.mrb[16].mxu0 }
 0x218   : > { %v5589_v38 = vadd.f32 %v5543_v54, %v5351_v47  ;;  %v3933_v15 = vpop.f32.mrb[17].mxu0  ;;  %v5355_v61 = vpop.f32.mrb[20].mxu1 }
 0x219   : > { %v4271_v9 = vadd.f32 %v4270_v60, %v4240_v49  ;;  %v5590_v18 = vadd.f32 %v3933_v15, %v2600_v28  ;;  %v4202_v26 = vadd.f32 %v5587_v27, %v4201_v20  ;;  %v5544_v6 = vpop.f32.mrb[18].mxu0  ;;  %v2616_v34 = vpop.f32.mrb[21].mxu1 }
 0x21a   : > { %v5591_v4 = vadd.f32 %v5544_v6, %v5352_v2  ;;  %v3936_v30 = vpop.f32.mrb[19].mxu0  ;;  %v5356_v13 = vpop.f32.mrb[22].mxu1  ;;  %v4244_v39 = vmul.f32 %v5589_v38, %v5589_v38 }
 0x21b   : > { %v4203_v53 = vadd.f32 %v5590_v18, %v4202_v26  ;;  %v4242_v11 = vmul.f32 %v5590_v18, %v5590_v18  ;;  %v4272_v25 = vadd.f32 %v4271_v9, %v4241_v55  ;;  %v5592_v44 = vadd.f32 %v3936_v30, %v2603_v16  ;;  %v2619_v45 = vpop.f32.mrb[23].mxu1 }
 0x21c   : > { %v4862_v5 = vpack.c.bf16 %v5591_v4, %v5589_v38  ;;  %v4245_v59 = vmul.f32 %v5591_v4, %v5591_v4 }
 0x21d   : > { %v4273_v14 = vadd.f32 %v4272_v25, %v4242_v11  ;;  %v4857_v57 = vpack.c.bf16 %v5592_v44, %v5590_v18  ;;  %v4204_v3 = vadd.f32 %v5592_v44, %v4203_v53  ;;  %v4243_v51 = vmul.f32 %v5592_v44, %v5592_v44 }
 0x21e   : > { %4902 = vst [vmem:[%s7091_s27 + $0x48] sm:$0xff] %v4862_v5  }
 0x21f   : > { %4901 = vst [vmem:[%s7091_s27 + $0x40] sm:$0xff] %v4857_v57   ;;  %v4205_v56 = vadd.f32 %v5589_v38, %v4204_v3  ;;  %v4274_v41 = vadd.f32 %v4273_v14, %v4243_v51  ;;  %v5547_v36 = vpop.f32.mrb[20].mxu0 }
 0x220   : > { %v5593_v62 = vadd.f32 %v5547_v36, %v5355_v61  ;;  %v3949_v35 = vpop.f32.mrb[21].mxu0  ;;  %v5359_v21 = vpop.f32.mrb[24].mxu1 }
 0x221   : > { %v4275_v42 = vadd.f32 %v4274_v41, %v4244_v39  ;;  %v5594_v33 = vadd.f32 %v3949_v35, %v2616_v34  ;;  %v4206_v7 = vadd.f32 %v5591_v4, %v4205_v56  ;;  %v5548_v29 = vpop.f32.mrb[22].mxu0  ;;  %v2632_v63 = vpop.f32.mrb[25].mxu1 }
 0x222   : > { %v5595_v43 = vadd.f32 %v5548_v29, %v5356_v13  ;;  %v3952_v32 = vpop.f32.mrb[23].mxu0  ;;  %v5360_v37 = vpop.f32.mrb[26].mxu1  ;;  %v4248_v19 = vmul.f32 %v5593_v62, %v5593_v62 }
 0x223   : > { %v4207_v0 = vadd.f32 %v5594_v33, %v4206_v7  ;;  %v4246_v52 = vmul.f32 %v5594_v33, %v5594_v33  ;;  %v4276_v47 = vadd.f32 %v4275_v42, %v4245_v59  ;;  %v5596_v48 = vadd.f32 %v3952_v32, %v2619_v45  ;;  %v2635_v1 = vpop.f32.mrb[27].mxu1 }
 0x224   : > { %v4872_v22 = vpack.c.bf16 %v5595_v43, %v5593_v62  ;;  %v4249_v17 = vmul.f32 %v5595_v43, %v5595_v43 }
 0x225   : > { %v4277_v58 = vadd.f32 %v4276_v47, %v4246_v52  ;;  %v4867_v10 = vpack.c.bf16 %v5596_v48, %v5594_v33  ;;  %v4208_v28 = vadd.f32 %v5596_v48, %v4207_v0  ;;  %v4247_v27 = vmul.f32 %v5596_v48, %v5596_v48 }
 0x226   : > { %4904 = vst [vmem:[%s7091_s27 + $0x58] sm:$0xff] %v4872_v22  }
 0x227   : > { %4903 = vst [vmem:[%s7091_s27 + $0x50] sm:$0xff] %v4867_v10   ;;  %v4209_v2 = vadd.f32 %v5593_v62, %v4208_v28  ;;  %v4278_v31 = vadd.f32 %v4277_v58, %v4247_v27  ;;  %v5551_v8 = vpop.f32.mrb[24].mxu0 }
 0x228   : > { %v5597_v23 = vadd.f32 %v5551_v8, %v5359_v21  ;;  %v3965_v46 = vpop.f32.mrb[25].mxu0  ;;  %v5363_v16 = vpop.f32.mrb[28].mxu1 }
 0x229   : > { %v4279_v24 = vadd.f32 %v4278_v31, %v4248_v19  ;;  %v5598_v12 = vadd.f32 %v3965_v46, %v2632_v63  ;;  %v4210_v40 = vadd.f32 %v5595_v43, %v4209_v2  ;;  %v5552_v50 = vpop.f32.mrb[26].mxu0  ;;  %v2648_v49 = vpop.f32.mrb[29].mxu1 }
 0x22a   : > { %v5599_v20 = vadd.f32 %v5552_v50, %v5360_v37  ;;  %v3968_v60 = vpop.f32.mrb[27].mxu0  ;;  %v5364_v54 = vpop.f32.mrb[30].mxu1  ;;  %v4252_v30 = vmul.f32 %v5597_v23, %v5597_v23 }
 0x22b   : > { %v4211_v38 = vadd.f32 %v5598_v12, %v4210_v40  ;;  %v4250_v15 = vmul.f32 %v5598_v12, %v5598_v12  ;;  %v4280_v61 = vadd.f32 %v4279_v24, %v4249_v17  ;;  %v5600_v55 = vadd.f32 %v3968_v60, %v2635_v1  ;;  %v2651_v9 = vpop.f32.mrb[31].mxu1 }
 0x22c   : > { %v4882_v18 = vpack.c.bf16 %v5599_v20, %v5597_v23  ;;  %v4253_v45 = vmul.f32 %v5599_v20, %v5599_v20 }
 0x22d   : > { %v4281_v26 = vadd.f32 %v4280_v61, %v4250_v15  ;;  %v4877_v6 = vpack.c.bf16 %v5600_v55, %v5598_v12  ;;  %v4212_v34 = vadd.f32 %v5600_v55, %v4211_v38  ;;  %v4251_v4 = vmul.f32 %v5600_v55, %v5600_v55 }
 0x22e   : > { %4906 = vst [vmem:[%s7091_s27 + $0x68] sm:$0xff] %v4882_v18  }
 0x22f   : > { %4905 = vst [vmem:[%s7091_s27 + $0x60] sm:$0xff] %v4877_v6   ;;  %v4213_v13 = vadd.f32 %v5597_v23, %v4212_v34  ;;  %v4282_v53 = vadd.f32 %v4281_v26, %v4251_v4  ;;  %v5555_v11 = vpop.f32.mrb[28].mxu0 }
 0x230   : > { %v5601_v25 = vadd.f32 %v5555_v11, %v5363_v16  ;;  %v3981_v44 = vpop.f32.mrb[29].mxu0 }
 0x231   : > { %v4283_v5 = vadd.f32 %v4282_v53, %v4252_v30  ;;  %v5602_v14 = vadd.f32 %v3981_v44, %v2648_v49  ;;  %v4214_v57 = vadd.f32 %v5599_v20, %v4213_v13  ;;  %v5556_v3 = vpop.f32.mrb[30].mxu0 }
 0x232   : > { %v5603_v51 = vadd.f32 %v5556_v3, %v5364_v54  ;;  %v3984_v39 = vpop.f32.mrb[31].mxu0  ;;  %v4256_v7 = vmul.f32 %v5601_v25, %v5601_v25 }
 0x233   : > { %v4215_v56 = vadd.f32 %v5602_v14, %v4214_v57  ;;  %v4254_v41 = vmul.f32 %v5602_v14, %v5602_v14  ;;  %v4284_v36 = vadd.f32 %v4283_v5, %v4253_v45  ;;  %v5604_v62 = vadd.f32 %v3984_v39, %v2651_v9 }
 0x234   : > { %v4892_v35 = vpack.c.bf16 %v5603_v51, %v5601_v25  ;;  %v4257_v43 = vmul.f32 %v5603_v51, %v5603_v51 }
 0x235   : > { %v4285_v21 = vadd.f32 %v4284_v36, %v4254_v41  ;;  %v4887_v59 = vpack.c.bf16 %v5604_v62, %v5602_v14  ;;  %v4216_v42 = vadd.f32 %v5604_v62, %v4215_v56  ;;  %v4255_v33 = vmul.f32 %v5604_v62, %v5604_v62 }
 0x236   : > { %4908 = vst [vmem:[%s7091_s27 + $0x78] sm:$0xff] %v4892_v35  }
 0x237   : > { %4907 = vst [vmem:[%s7091_s27 + $0x70] sm:$0xff] %v4887_v59   ;;  %v4217_v29 = vadd.f32 %v5601_v25, %v4216_v42  ;;  %v4286_v63 = vadd.f32 %v4285_v21, %v4255_v33 }
 0x239   : > { %v4218_v32 = vadd.f32 %v5603_v51, %v4217_v29  ;;  %v4287_v37 = vadd.f32 %v4286_v63, %v4256_v7 }
 0x23b   : > { %v4219_v0 = vrot.slane %v4218_v32, 4  ;;  %v4288_v52 = vadd.f32 %v4287_v37, %v4257_v43 }
 0x23d   : > { %v4220_v47 = vadd.f32 %v4219_v0, %v4218_v32  ;;  %v4289_v48 = vrot.slane %v4288_v52, 4 }
 0x23f   : > { %v4221_v1 = vrot.slane %v4220_v47, 2  ;;  %v4290_v22 = vadd.f32 %v4289_v48, %v4288_v52 }
 0x241   : > { %v4222_v58 = vadd.f32 %v4221_v1, %v4220_v47  ;;  %v4291_v10 = vrot.slane %v4290_v22, 2 }
 0x243   : > { %v4223_v28 = vrot.slane %v4222_v58, 1  ;;  %v4292_v27 = vadd.f32 %v4291_v10, %v4290_v22 }
 0x245   : > { %v4224_v19 = vadd.f32 %v4223_v28, %v4222_v58  ;;  %v4293_v2 = vrot.slane %v4292_v27, 1 }
 0x247   : > { %4225 = vst [vmem:[%s265_s29] sm:$0x1] %v4224_v19  ;;  %v4294_v31 = vadd.f32 %v4293_v2, %v4292_v27 }
 0x249   : > { %4295 = vst [vmem:[%s268_s8] sm:$0x1] %v4294_v31 }
 0x24a PF: > { %s17_s21 = sadd.s32 1, %s5988_s21  }
 0x24b   : > { %p14_p4 = scmp.ge.s32.totalorder %s17_s21, 4  }
 0x24d   :  { %16 = sbr.rel (!%p14_p4) target bundleno = 1 (0x1), region = 100 }

</bundles_post_ra>
